<compile_context>
chip_gen: v7x
topology: tpu7x:2x2x1
jax: 0.10.0
libtpu: 0.0.40
codegen_flags: <defaults>
</compile_context>

<pallas_src>
import functools

import jax
import jax.numpy as jnp
from jax import lax
from jax.experimental import pallas as pl
from jax.experimental.pallas import tpu as pltpu

LANE = 128


# -----------------------------------------------------------------------------
# Fused kernel: 2-layer LSTM (time loop) + folded trunk + MDN heads.
# One grid step processes one batch tile of BT rows.
# -----------------------------------------------------------------------------
def _fused_kernel(x_ref,                       # (1, T*BT, D)   time-major tile
                  wih0_ref, whh0_ref, b0_ref,  # (D,4Hp) (Hp,4Hp) (1,4Hp)
                  w1s_ref, b1_ref,             # (2Hp,4Hp) (1,4Hp) stacked layer-1
                  w1t_ref, b1t_ref,            # (T,Hp,128) (1,128) folded trunk-1
                  w2_ref, b2_ref,              # (128,128) (1,128)
                  w3_ref, b3_ref,              # (128,128) (1,128)
                  wh_ref, bh_ref,              # (128,HP) (1,HP)  concat heads
                  out_ref,                     # (BT, HP)  [pi | mu | L | Ld | 0]
                  xproj_ref,                   # scratch (T*BT, 4Hp) f32
                  *, T, BT, Hp, K, Od, ntri, HP):
    f32 = jnp.float32
    bf = jnp.bfloat16

    # ---- hoisted: layer-0 input projection for all T in one MXU op, staged --
    # ---- in VMEM scratch so it is not pinned in vregs across the loop.     --
    xproj_ref[...] = (
        jnp.dot(x_ref[0].astype(bf), wih0_ref[...], preferred_element_type=f32)
        + b0_ref[...])

    # Bias broadcast hoisted (JAX does not CSE broadcast_in_dim in loops).
    b1b = jnp.broadcast_to(b1_ref[...], (BT, 4 * Hp))

    def gates_to_hc(gates, c):
        # lane-aligned gate slices (Hp multiple of 128); PyTorch order i,f,g,o
        i_g = jax.nn.sigmoid(gates[:, 0 * Hp:1 * Hp])
        f_g = jax.nn.sigmoid(gates[:, 1 * Hp:2 * Hp])
        g_g = jnp.tanh(gates[:, 2 * Hp:3 * Hp])
        o_g = jax.nn.sigmoid(gates[:, 3 * Hp:4 * Hp])
        c_new = f_g * c + i_g * g_g
        return o_g * jnp.tanh(c_new), c_new

    c0 = jnp.zeros((BT, Hp), f32)
    c1 = jnp.zeros((BT, Hp), f32)
    h0b = jnp.zeros((BT, Hp), bf)     # bf16 copies of h, used as MXU LHS only
    h1b = jnp.zeros((BT, Hp), bf)
    # trunk accumulator starts at the trunk-1 bias; acc == z_flat @ W1 + b1
    acc = jnp.broadcast_to(b1t_ref[...], (BT, Hp))

    # Fully unrolled recurrence (T small & static).  Weights are read from
    # their VMEM refs at point of use so live ranges stay short.
    for t in range(T):
        g0 = (xproj_ref[t * BT:(t + 1) * BT, :]
              + jnp.dot(h0b, whh0_ref[...], preferred_element_type=f32))
        h0, c0 = gates_to_hc(g0, c0)
        h0b = h0.astype(bf)

        # layer-1 input + recurrent matmuls fused into one MXU op
        g1 = (jnp.dot(jnp.concatenate([h0b, h1b], axis=-1), w1s_ref[...],
                      preferred_element_type=f32) + b1b)
        h1, c1 = gates_to_hc(g1, c1)
        h1b = h1.astype(bf)

        # folded Linear(T*H0 -> H0): acc += h1_t @ W1[t]
        acc = acc + jnp.dot(h1b, w1t_ref[t], preferred_element_type=f32)

    # ---- MLP trunk (all widths zero-padded to 128 lanes) ----
    h = jnp.tanh(acc)                                                    # (BT,128)
    h = jnp.tanh(jnp.dot(h.astype(bf), w2_ref[...], preferred_element_type=f32)
                 + b2_ref[...])
    h = jnp.tanh(jnp.dot(h.astype(bf), w3_ref[...], preferred_element_type=f32)
                 + b3_ref[...])

    # ---- single concatenated head matmul -> one lane-dense (BT, HP) slab ----
    slab = (jnp.dot(h.astype(bf), wh_ref[...], preferred_element_type=f32)
            + bh_ref[...])

    cols = lax.broadcasted_iota(jnp.int32, (BT, HP), 1)
    pi_mask = cols < K
    off_ld = K + K * Od + ntri
    ld_mask = (cols >= off_ld) & (cols < off_ld + K * Od)

    # masked, numerically-stable softmax over the first K columns
    logits = jnp.where(pi_mask, slab, -jnp.inf)
    m = jnp.max(logits, axis=-1, keepdims=True)
    e = jnp.where(pi_mask, jnp.exp(slab - m), 0.0)
    s = jnp.sum(e, axis=-1, keepdims=True)
    pi_vals = e * pl.reciprocal(s, approx=True)

    out_ref[...] = jnp.where(pi_mask, pi_vals,
                             jnp.where(ld_mask, jnp.exp(slab), slab))


# -----------------------------------------------------------------------------
# Parameter construction (deterministic, PyTorch-style uniform ranges).
# -----------------------------------------------------------------------------
def _uniform(key, shape, bound):
    return jax.random.uniform(key, shape, jnp.float32, -bound, bound)


def init_params(key, *, inputd, hidden_layers, nsteps, ncomp, outputd):
    H0, H1, H2 = hidden_layers
    keys = iter(jax.random.split(key, 64))
    p = {}

    # LSTM layer 0 (inputd -> H0) and layer 1 (H0 -> H0), gate order i,f,g,o.
    k = 1.0 / jnp.sqrt(H0)
    p["lstm_wih0"] = _uniform(next(keys), (inputd, 4 * H0), k)
    p["lstm_whh0"] = _uniform(next(keys), (H0, 4 * H0), k)
    p["lstm_b0"] = (_uniform(next(keys), (1, 4 * H0), k)
                    + _uniform(next(keys), (1, 4 * H0), k))      # b_ih + b_hh
    p["lstm_wih1"] = _uniform(next(keys), (H0, 4 * H0), k)
    p["lstm_whh1"] = _uniform(next(keys), (H0, 4 * H0), k)
    p["lstm_b1"] = (_uniform(next(keys), (1, 4 * H0), k)
                    + _uniform(next(keys), (1, 4 * H0), k))

    def linear(kin, fan_in, fan_out):
        kk = 1.0 / jnp.sqrt(fan_in)
        return (_uniform(kin[0], (fan_in, fan_out), kk),
                _uniform(kin[1], (1, fan_out), kk))

    ntri = (ncomp * outputd * (outputd - 1)) // 2
    p["w1"], p["b1"] = linear((next(keys), next(keys)), H0 * nsteps, H0)
    p["w2"], p["b2"] = linear((next(keys), next(keys)), H0, H1)
    p["w3"], p["b3"] = linear((next(keys), next(keys)), H1, H2)
    p["wpi"], p["bpi"] = linear((next(keys), next(keys)), H2, ncomp)
    p["wl"], p["bl"] = linear((next(keys), next(keys)), H2, ntri)
    p["wld"], p["bld"] = linear((next(keys), next(keys)), H2, ncomp * outputd)
    p["wmu"], p["bmu"] = linear((next(keys), next(keys)), H2, ncomp * outputd)
    return p


def _round_up(n, m):
    return ((n + m - 1) // m) * m


def pack_params(p, *, nsteps, ncomp, outputd):
    """Pad / concatenate logical params into the kernel's lane-aligned layout.

    Weights are stored in bf16 (MXU operands); biases stay f32 (added to f32
    accumulations).  Zero padding keeps padded lanes exactly 0 through the
    recurrence (tanh(0)=0, padded weight/bias columns are 0).
    """
    H0 = p["lstm_whh0"].shape[0]
    Hp = max(LANE, _round_up(H0, LANE))          # padded hidden (gate) width
    assert H0 <= LANE and p["w2"].shape[1] <= LANE and p["w3"].shape[1] <= LANE
    bf = jnp.bfloat16
    f32 = jnp.float32

    def pad_gates(w):
        # (in, 4*H0) -> (in, 4*Hp): zero-pad each gate's columns to Hp lanes.
        n_in = w.shape[0]
        w4 = w.reshape(n_in, 4, H0)
        w4 = jnp.pad(w4, ((0, 0), (0, 0), (0, Hp - H0)))
        return w4.reshape(n_in, 4 * Hp)

    def pad2d(w, rows, cols):
        return jnp.pad(w, ((0, rows - w.shape[0]), (0, cols - w.shape[1])))

    packed = {}
    packed["wih0"] = pad_gates(p["lstm_wih0"]).astype(bf)                # (D,4Hp)
    packed["whh0"] = pad2d(pad_gates(p["lstm_whh0"]), Hp, 4 * Hp).astype(bf)
    packed["b0"] = pad_gates(p["lstm_b0"]).astype(f32)                   # (1,4Hp)

    # layer-1 input & recurrent weights stacked -> one MXU op per step.
    wih1 = pad2d(pad_gates(p["lstm_wih1"]), Hp, 4 * Hp)
    whh1 = pad2d(pad_gates(p["lstm_whh1"]), Hp, 4 * Hp)
    packed["w1s"] = jnp.concatenate([wih1, whh1], axis=0).astype(bf)     # (2Hp,4Hp)
    packed["b1"] = pad_gates(p["lstm_b1"]).astype(f32)

    # trunk Linear(T*H0 -> H0) split per timestep; rows -> Hp, cols -> 128.
    w1 = p["w1"].reshape(nsteps, H0, H0)
    w1 = jnp.pad(w1, ((0, 0), (0, Hp - H0), (0, LANE - H0)))
    packed["w1t"] = w1.astype(bf)                                        # (T,Hp,128)
    packed["b1t"] = pad2d(p["b1"], 1, LANE).astype(f32)                  # (1,128)
    packed["w2"] = pad2d(p["w2"], LANE, LANE).astype(bf)                 # (128,128)
    packed["b2"] = pad2d(p["b2"], 1, LANE).astype(f32)
    packed["w3"] = pad2d(p["w3"], LANE, LANE).astype(bf)                 # (128,128)
    packed["b3"] = pad2d(p["b3"], 1, LANE).astype(f32)

    # heads concatenated column-wise: [pi | mu | L | Ld], padded to >=128 lanes.
    whead = jnp.concatenate([p["wpi"], p["wmu"], p["wl"], p["wld"]], axis=1)
    bhead = jnp.concatenate([p["bpi"], p["bmu"], p["bl"], p["bld"]], axis=1)
    width = whead.shape[1]
    HP = max(LANE, _round_up(width, LANE))
    packed["whead"] = pad2d(whead, LANE, HP).astype(bf)                  # (128,HP)
    packed["bhead"] = pad2d(bhead, 1, HP).astype(f32)
    return packed


# -----------------------------------------------------------------------------
# Forward pass wrapper: grid over batch tiles, weights VMEM-resident.
# -----------------------------------------------------------------------------
@functools.partial(jax.jit, static_argnames=("ncomp", "outputd", "batch_tile"))
def mdlstm_forward(packed, x, *, ncomp, outputd, batch_tile=8):
    """x: (B, nsteps, inputd) float32 -> (pi, mu, L, L_diagonal)."""
    B, T, D = x.shape
    Hp = packed["whh0"].shape[0]
    HP = packed["whead"].shape[1]
    K, Od = ncomp, outputd
    ntri = (K * Od * (Od - 1)) // 2

    BT = batch_tile                        # 8 -> sublane-aligned tiles & stores
    Bpad = _round_up(max(B, BT), BT)
    G = Bpad // BT

    # Small layout prep: pad batch, group each batch tile into a time-major
    # (T*BT, D) slab so per-step slices in the kernel are sublane-aligned.
    # TODO(synk): at large B fold this transpose into the block load.
    xp = jnp.pad(x.astype(jnp.float32), ((0, Bpad - B), (0, 0), (0, 0)))
    x_tm = xp.reshape(G, BT, T, D).transpose(0, 2, 1, 3).reshape(G, T * BT, D)

    kernel = functools.partial(_fused_kernel, T=T, BT=BT, Hp=Hp,
                               K=K, Od=Od, ntri=ntri, HP=HP)

    def const_spec(arr):
        nd = arr.ndim
        # Same block index every grid step -> DMA'd once, stays VMEM-resident.
        return pl.BlockSpec(arr.shape, lambda b, _n=nd: (0,) * _n)

    weights = (packed["wih0"], packed["whh0"], packed["b0"],
               packed["w1s"], packed["b1"],
               packed["w1t"], packed["b1t"],
               packed["w2"], packed["b2"], packed["w3"], packed["b3"],
               packed["whead"], packed["bhead"])

    grid_spec = pltpu.PrefetchScalarGridSpec(
        num_scalar_prefetch=0,
        grid=(G,),
        in_specs=[pl.BlockSpec((1, T * BT, D), lambda b: (b, 0, 0))]
                 + [const_spec(w) for w in weights],
        out_specs=pl.BlockSpec((BT, HP), lambda b: (b, 0)),
        scratch_shapes=[pltpu.VMEM((T * BT, 4 * Hp), jnp.float32)],
    )

    slab = pl.pallas_call(
        kernel,
        out_shape=jax.ShapeDtypeStruct((Bpad, HP), jnp.float32),
        grid_spec=grid_spec,
        compiler_params=pltpu.CompilerParams(
            dimension_semantics=("parallel",),
            vmem_limit_bytes=32 * 1024 * 1024),
    )(x_tm, *weights)

    off_mu = K
    off_l = off_mu + K * Od
    off_ld = off_l + ntri
    pi = slab[:B, :K]
    mu = slab[:B, off_mu:off_mu + K * Od].reshape(B, Od, K)
    L = slab[:B, off_l:off_l + ntri].reshape(B, (Od * (Od - 1)) // 2, K)
    L_diag = slab[:B, off_ld:off_ld + K * Od].reshape(B, Od, K)
    return pi, mu, L, L_diag


# -----------------------------------------------------------------------------
# Pure-JAX references.
# -----------------------------------------------------------------------------
def mdlstm_reference(params, x, *, ncomp, outputd):
    """Full-f32 (HIGHEST precision) reference of the module's forward pass."""
    B, T, _ = x.shape
    H0 = params["lstm_whh0"].shape[0]
    hp = jax.lax.Precision.HIGHEST

    def cell(xt, h, c, wih, whh, b):
        g = jnp.dot(xt, wih, precision=hp) + jnp.dot(h, whh, precision=hp) + b
        i = jax.nn.sigmoid(g[:, 0 * H0:1 * H0])
        f = jax.nn.sigmoid(g[:, 1 * H0:2 * H0])
        gg = jnp.tanh(g[:, 2 * H0:3 * H0])
        o = jax.nn.sigmoid(g[:, 3 * H0:4 * H0])
        c = f * c + i * gg
        return o * jnp.tanh(c), c

    def scan_fn(carry, xt):
        h0, c0, h1, c1 = carry
        h0, c0 = cell(xt, h0, c0, params["lstm_wih0"], params["lstm_whh0"],
                      params["lstm_b0"])
        h1, c1 = cell(h0, h1, c1, params["lstm_wih1"], params["lstm_whh1"],
                      params["lstm_b1"])
        return (h0, c0, h1, c1), h1

    z0 = jnp.zeros((B, H0), jnp.float32)
    _, hs = lax.scan(scan_fn, (z0, z0, z0, z0), jnp.transpose(x, (1, 0, 2)))
    z = jnp.transpose(hs, (1, 0, 2)).reshape(B, T * H0)

    def lin(v, w, b):
        return jnp.dot(v, w, precision=hp) + b

    h = jnp.tanh(lin(z, params["w1"], params["b1"]))
    h = jnp.tanh(lin(h, params["w2"], params["b2"]))
    h = jnp.tanh(lin(h, params["w3"], params["b3"]))
    pi = jax.nn.softmax(lin(h, params["wpi"], params["bpi"]), axis=-1)
    mu = lin(h, params["wmu"], params["bmu"]).reshape(B, outputd, ncomp)
    L = lin(h, params["wl"], params["bl"]).reshape(
        B, (outputd * (outputd - 1)) // 2, ncomp)
    Ld = jnp.exp(lin(h, params["wld"], params["bld"])).reshape(B, outputd, ncomp)
    return pi, mu, L, Ld


def mdlstm_bf16_mirror(params, x, *, ncomp, outputd):
    """Pure-JAX mirror of the kernel arithmetic (bf16 MXU operands, f32 acc)."""
    bf = jnp.bfloat16
    f32 = jnp.float32
    B, T, _ = x.shape
    H0 = params["lstm_whh0"].shape[0]

    def bdot(a, w):
        return jnp.dot(a.astype(bf), w.astype(bf), preferred_element_type=f32)

    def cell(g, c):
        i = jax.nn.sigmoid(g[:, 0 * H0:1 * H0])
        f = jax.nn.sigmoid(g[:, 1 * H0:2 * H0])
        gg = jnp.tanh(g[:, 2 * H0:3 * H0])
        o = jax.nn.sigmoid(g[:, 3 * H0:4 * H0])
        c = f * c + i * gg
        return o * jnp.tanh(c), c

    h0 = jnp.zeros((B, H0), f32)
    c0 = jnp.zeros((B, H0), f32)
    h1 = jnp.zeros((B, H0), f32)
    c1 = jnp.zeros((B, H0), f32)
    w1 = params["w1"].reshape(T, H0, H0)
    acc = jnp.broadcast_to(params["b1"], (B, H0))
    for t in range(T):
        xt = x[:, t, :].astype(f32)
        g0 = (bdot(xt, params["lstm_wih0"]) + params["lstm_b0"]
              + bdot(h0, params["lstm_whh0"]))
        h0, c0 = cell(g0, c0)
        g1 = (bdot(h0, params["lstm_wih1"]) + bdot(h1, params["lstm_whh1"])
              + params["lstm_b1"])
        h1, c1 = cell(g1, c1)
        acc = acc + bdot(h1, w1[t])

    h = jnp.tanh(acc)
    h = jnp.tanh(bdot(h, params["w2"]) + params["b2"])
    h = jnp.tanh(bdot(h, params["w3"]) + params["b3"])
    pi = jax.nn.softmax(bdot(h, params["wpi"]) + params["bpi"], axis=-1)
    mu = (bdot(h, params["wmu"]) + params["bmu"]).reshape(B, outputd, ncomp)
    L = (bdot(h, params["wl"]) + params["bl"]).reshape(
        B, (outputd * (outputd - 1)) // 2, ncomp)
    Ld = jnp.exp(bdot(h, params["wld"]) + params["bld"]).reshape(
        B, outputd, ncomp)
    return pi, mu, L, Ld


# -----------------------------------------------------------------------------
if __name__ == "__main__":
    # Small, module-consistent configuration.
    B, T, D = 2, 8, 4                 # batch, nsteps, inputd
    hidden_layers = [50, 24, 24]      # module default
    ncomp, outputd = 10, 3            # K gaussians, output dim

    key = jax.random.PRNGKey(0)
    pkey, xkey = jax.random.split(key)
    params = init_params(pkey, inputd=D, hidden_layers=hidden_layers,
                         nsteps=T, ncomp=ncomp, outputd=outputd)
    packed = pack_params(params, nsteps=T, ncomp=ncomp, outputd=outputd)
    x = jax.random.normal(xkey, (B, T, D), jnp.float32)

    out = mdlstm_forward(packed, x, ncomp=ncomp, outputd=outputd)
    pi, mu, L, L_diag = jax.block_until_ready(out)

    # Shape checks (mirror the PyTorch forward's returns).
    assert pi.shape == (B, ncomp)
    assert mu.shape == (B, outputd, ncomp)
    assert L.shape == (B, (outputd * (outputd - 1)) // 2, ncomp)
    assert L_diag.shape == (B, outputd, ncomp)

    # (1) Tight check vs a pure-JAX mirror of the kernel's bf16-MXU arithmetic.
    mir = mdlstm_bf16_mirror(params, x, ncomp=ncomp, outputd=outputd)
    for got, want in zip((pi, mu, L, L_diag), mir):
        err = float(jnp.max(jnp.abs(got - want)))
        assert jnp.allclose(got, want, atol=5e-3, rtol=5e-3), err

    # (2) Sanity check vs the full-f32 reference (looser: bf16 MXU operands).
    ref = mdlstm_reference(params, x, ncomp=ncomp, outputd=outputd)
    for got, want in zip((pi, mu, L, L_diag), ref):
        err = float(jnp.max(jnp.abs(got - want)))
        assert jnp.allclose(got, want, atol=5e-2, rtol=5e-2), err

    print("KERNEL_OK")
</pallas_src>

<mosaic_0001>
module attributes {stable_mosaic.version = 11 : i64} {
  func.func @_fused_kernel(%arg0: i32, %arg1: memref<1x64x4xf32, #tpu.memory_space<vmem>>, %arg2: memref<4x512xbf16, #tpu.memory_space<vmem>>, %arg3: memref<128x512xbf16, #tpu.memory_space<vmem>>, %arg4: memref<1x512xf32, #tpu.memory_space<vmem>>, %arg5: memref<256x512xbf16, #tpu.memory_space<vmem>>, %arg6: memref<1x512xf32, #tpu.memory_space<vmem>>, %arg7: memref<8x128x128xbf16, #tpu.memory_space<vmem>>, %arg8: memref<1x128xf32, #tpu.memory_space<vmem>>, %arg9: memref<128x128xbf16, #tpu.memory_space<vmem>>, %arg10: memref<1x128xf32, #tpu.memory_space<vmem>>, %arg11: memref<128x128xbf16, #tpu.memory_space<vmem>>, %arg12: memref<1x128xf32, #tpu.memory_space<vmem>>, %arg13: memref<128x128xbf16, #tpu.memory_space<vmem>>, %arg14: memref<1x128xf32, #tpu.memory_space<vmem>>, %arg15: memref<8x128xf32, #tpu.memory_space<vmem>>, %arg16: memref<64x512xf32, #tpu.memory_space<vmem>>) attributes {dimension_semantics = [#tpu.dimension_semantics<parallel>], iteration_bounds = array<i64: 1>, scalar_prefetch = 0 : i64, scratch_operands = 1 : i64, tpu.core_type = #tpu.core_type<tc>, window_params = [{transform_indices = @transform_0, window_bounds = array<i64: 1, 64, 4>}, {pipeline_mode = #tpu.pipeline_mode<synchronous>, transform_indices = @transform_1, window_bounds = array<i64: 4, 512>}, {pipeline_mode = #tpu.pipeline_mode<synchronous>, transform_indices = @transform_2, window_bounds = array<i64: 128, 512>}, {pipeline_mode = #tpu.pipeline_mode<synchronous>, transform_indices = @transform_3, window_bounds = array<i64: 1, 512>}, {pipeline_mode = #tpu.pipeline_mode<synchronous>, transform_indices = @transform_4, window_bounds = array<i64: 256, 512>}, {pipeline_mode = #tpu.pipeline_mode<synchronous>, transform_indices = @transform_5, window_bounds = array<i64: 1, 512>}, {pipeline_mode = #tpu.pipeline_mode<synchronous>, transform_indices = @transform_6, window_bounds = array<i64: 8, 128, 128>}, {pipeline_mode = #tpu.pipeline_mode<synchronous>, transform_indices = @transform_7, window_bounds = array<i64: 1, 128>}, {pipeline_mode = #tpu.pipeline_mode<synchronous>, transform_indices = @transform_8, window_bounds = array<i64: 128, 128>}, {pipeline_mode = #tpu.pipeline_mode<synchronous>, transform_indices = @transform_9, window_bounds = array<i64: 1, 128>}, {pipeline_mode = #tpu.pipeline_mode<synchronous>, transform_indices = @transform_10, window_bounds = array<i64: 128, 128>}, {pipeline_mode = #tpu.pipeline_mode<synchronous>, transform_indices = @transform_11, window_bounds = array<i64: 1, 128>}, {pipeline_mode = #tpu.pipeline_mode<synchronous>, transform_indices = @transform_12, window_bounds = array<i64: 128, 128>}, {pipeline_mode = #tpu.pipeline_mode<synchronous>, transform_indices = @transform_13, window_bounds = array<i64: 1, 128>}, {transform_indices = @transform_14, window_bounds = array<i64: 8, 128>}]} {
    %c0 = arith.constant 0 : index
    %c0_0 = arith.constant 0 : index
    %c0_1 = arith.constant 0 : index
    %0 = vector.load %arg1[%c0, %c0_0, %c0_1] : memref<1x64x4xf32, #tpu.memory_space<vmem>>, vector<1x64x4xf32>
    %1 = vector.shape_cast %0 : vector<1x64x4xf32> to vector<64x4xf32>
    %2 = arith.truncf %1 : vector<64x4xf32> to vector<64x4xbf16>
    %c0_2 = arith.constant 0 : index
    %c0_3 = arith.constant 0 : index
    %3 = vector.load %arg2[%c0_2, %c0_3] : memref<4x512xbf16, #tpu.memory_space<vmem>>, vector<4x512xbf16>
    %cst = arith.constant dense<0.000000e+00> : vector<64x512xf32>
    %4 = tpu.matmul %2, %3, %cst {dimension_numbers = #tpu.dot_dimension_numbers<[1], [0], [0], [1], [0, 0, 1, 1], [], []>} : vector<64x4xbf16>, vector<4x512xbf16>, vector<64x512xf32> -> vector<64x512xf32>
    %c0_4 = arith.constant 0 : index
    %c0_5 = arith.constant 0 : index
    %5 = vector.load %arg4[%c0_4, %c0_5] : memref<1x512xf32, #tpu.memory_space<vmem>>, vector<1x512xf32>
    %6 = vector.broadcast %5 : vector<1x512xf32> to vector<64x512xf32>
    %7 = arith.addf %4, %6 : vector<64x512xf32>
    %c0_6 = arith.constant 0 : index
    %c0_7 = arith.constant 0 : index
    %8 = vector.load %arg16[%c0_6, %c0_7] : memref<64x512xf32, #tpu.memory_space<vmem>>, vector<64x512xf32>
    tpu.vector_store %arg16[%c0_6, %c0_7], %7 {strides = array<i32>} : memref<64x512xf32, #tpu.memory_space<vmem>>, vector<64x512xf32>,
    %c0_8 = arith.constant 0 : index
    %c0_9 = arith.constant 0 : index
    %9 = vector.load %arg6[%c0_8, %c0_9] : memref<1x512xf32, #tpu.memory_space<vmem>>, vector<1x512xf32>
    %10 = vector.shape_cast %9 : vector<1x512xf32> to vector<1x512xf32>
    %11 = vector.broadcast %10 : vector<1x512xf32> to vector<8x512xf32>
    %cst_10 = arith.constant 0.000000e+00 : f32
    %12 = vector.broadcast %cst_10 : f32 to vector<8x128xf32>
    %cst_11 = arith.constant 0.000000e+00 : f32
    %13 = vector.broadcast %cst_11 : f32 to vector<8x128xf32>
    %cst_12 = arith.constant 0.000000e+00 : bf16
    %14 = vector.broadcast %cst_12 : bf16 to vector<8x128xbf16>
    %cst_13 = arith.constant 0.000000e+00 : bf16
    %15 = vector.broadcast %cst_13 : bf16 to vector<8x128xbf16>
    %c0_14 = arith.constant 0 : index
    %c0_15 = arith.constant 0 : index
    %16 = vector.load %arg8[%c0_14, %c0_15] : memref<1x128xf32, #tpu.memory_space<vmem>>, vector<1x128xf32>
    %17 = vector.shape_cast %16 : vector<1x128xf32> to vector<1x128xf32>
    %18 = vector.broadcast %17 : vector<1x128xf32> to vector<8x128xf32>
    %c0_16 = arith.constant 0 : index
    %c0_17 = arith.constant 0 : index
    %19 = vector.load %arg16[%c0_16, %c0_17] : memref<64x512xf32, #tpu.memory_space<vmem>>, vector<8x512xf32>
    %c0_18 = arith.constant 0 : index
    %c0_19 = arith.constant 0 : index
    %20 = vector.load %arg3[%c0_18, %c0_19] : memref<128x512xbf16, #tpu.memory_space<vmem>>, vector<128x512xbf16>
    %cst_20 = arith.constant dense<0.000000e+00> : vector<8x512xf32>
    %21 = tpu.matmul %14, %20, %cst_20 {dimension_numbers = #tpu.dot_dimension_numbers<[1], [0], [0], [1], [0, 0, 1, 1], [], []>} : vector<8x128xbf16>, vector<128x512xbf16>, vector<8x512xf32> -> vector<8x512xf32>
    %22 = arith.addf %19, %21 : vector<8x512xf32>
    %23 = vector.extract_strided_slice %22 {offsets = [0, 0], sizes = [8, 128], strides = [1, 1]} : vector<8x512xf32> to vector<8x128xf32>
    %24 = arith.negf %23 : vector<8x128xf32>
    %25 = math.exp %24 : vector<8x128xf32>
    %cst_21 = arith.constant 1.000000e+00 : f32
    %26 = vector.broadcast %cst_21 : f32 to vector<8x128xf32>
    %27 = arith.addf %26, %25 : vector<8x128xf32>
    %28 = arith.divf %26, %27 : vector<8x128xf32>
    %29 = vector.extract_strided_slice %22 {offsets = [0, 128], sizes = [8, 128], strides = [1, 1]} : vector<8x512xf32> to vector<8x128xf32>
    %30 = arith.negf %29 : vector<8x128xf32>
    %31 = math.exp %30 : vector<8x128xf32>
    %cst_22 = arith.constant 1.000000e+00 : f32
    %32 = vector.broadcast %cst_22 : f32 to vector<8x128xf32>
    %33 = arith.addf %32, %31 : vector<8x128xf32>
    %34 = arith.divf %32, %33 : vector<8x128xf32>
    %35 = vector.extract_strided_slice %22 {offsets = [0, 256], sizes = [8, 128], strides = [1, 1]} : vector<8x512xf32> to vector<8x128xf32>
    %36 = math.tanh %35 : vector<8x128xf32>
    %37 = vector.extract_strided_slice %22 {offsets = [0, 384], sizes = [8, 128], strides = [1, 1]} : vector<8x512xf32> to vector<8x128xf32>
    %38 = arith.negf %37 : vector<8x128xf32>
    %39 = math.exp %38 : vector<8x128xf32>
    %cst_23 = arith.constant 1.000000e+00 : f32
    %40 = vector.broadcast %cst_23 : f32 to vector<8x128xf32>
    %41 = arith.addf %40, %39 : vector<8x128xf32>
    %42 = arith.divf %40, %41 : vector<8x128xf32>
    %43 = arith.mulf %34, %12 : vector<8x128xf32>
    %44 = arith.mulf %28, %36 : vector<8x128xf32>
    %45 = arith.addf %43, %44 : vector<8x128xf32>
    %46 = math.tanh %45 : vector<8x128xf32>
    %47 = arith.mulf %42, %46 : vector<8x128xf32>
    %48 = arith.truncf %47 : vector<8x128xf32> to vector<8x128xbf16>
    %49 = tpu.concatenate %48, %15 in 1 : vector<8x128xbf16>, vector<8x128xbf16> -> vector<8x256xbf16>
    %c0_24 = arith.constant 0 : index
    %c0_25 = arith.constant 0 : index
    %50 = vector.load %arg5[%c0_24, %c0_25] : memref<256x512xbf16, #tpu.memory_space<vmem>>, vector<256x512xbf16>
    %cst_26 = arith.constant dense<0.000000e+00> : vector<8x512xf32>
    %51 = tpu.matmul %49, %50, %cst_26 {dimension_numbers = #tpu.dot_dimension_numbers<[1], [0], [0], [1], [0, 0, 1, 1], [], []>} : vector<8x256xbf16>, vector<256x512xbf16>, vector<8x512xf32> -> vector<8x512xf32>
    %52 = arith.addf %51, %11 : vector<8x512xf32>
    %53 = vector.extract_strided_slice %52 {offsets = [0, 0], sizes = [8, 128], strides = [1, 1]} : vector<8x512xf32> to vector<8x128xf32>
    %54 = arith.negf %53 : vector<8x128xf32>
    %55 = math.exp %54 : vector<8x128xf32>
    %cst_27 = arith.constant 1.000000e+00 : f32
    %56 = vector.broadcast %cst_27 : f32 to vector<8x128xf32>
    %57 = arith.addf %56, %55 : vector<8x128xf32>
    %58 = arith.divf %56, %57 : vector<8x128xf32>
    %59 = vector.extract_strided_slice %52 {offsets = [0, 128], sizes = [8, 128], strides = [1, 1]} : vector<8x512xf32> to vector<8x128xf32>
    %60 = arith.negf %59 : vector<8x128xf32>
    %61 = math.exp %60 : vector<8x128xf32>
    %cst_28 = arith.constant 1.000000e+00 : f32
    %62 = vector.broadcast %cst_28 : f32 to vector<8x128xf32>
    %63 = arith.addf %62, %61 : vector<8x128xf32>
    %64 = arith.divf %62, %63 : vector<8x128xf32>
    %65 = vector.extract_strided_slice %52 {offsets = [0, 256], sizes = [8, 128], strides = [1, 1]} : vector<8x512xf32> to vector<8x128xf32>
    %66 = math.tanh %65 : vector<8x128xf32>
    %67 = vector.extract_strided_slice %52 {offsets = [0, 384], sizes = [8, 128], strides = [1, 1]} : vector<8x512xf32> to vector<8x128xf32>
    %68 = arith.negf %67 : vector<8x128xf32>
    %69 = math.exp %68 : vector<8x128xf32>
    %cst_29 = arith.constant 1.000000e+00 : f32
    %70 = vector.broadcast %cst_29 : f32 to vector<8x128xf32>
    %71 = arith.addf %70, %69 : vector<8x128xf32>
    %72 = arith.divf %70, %71 : vector<8x128xf32>
    %73 = arith.mulf %64, %13 : vector<8x128xf32>
    %74 = arith.mulf %58, %66 : vector<8x128xf32>
    %75 = arith.addf %73, %74 : vector<8x128xf32>
    %76 = math.tanh %75 : vector<8x128xf32>
    %77 = arith.mulf %72, %76 : vector<8x128xf32>
    %78 = arith.truncf %77 : vector<8x128xf32> to vector<8x128xbf16>
    %c0_30 = arith.constant 0 : index
    %c0_31 = arith.constant 0 : index
    %c0_32 = arith.constant 0 : index
    %79 = vector.load %arg7[%c0_30, %c0_31, %c0_32] : memref<8x128x128xbf16, #tpu.memory_space<vmem>>, vector<1x128x128xbf16>
    %80 = vector.shape_cast %79 : vector<1x128x128xbf16> to vector<128x128xbf16>
    %cst_33 = arith.constant dense<0.000000e+00> : vector<8x128xf32>
    %81 = tpu.matmul %78, %80, %cst_33 {dimension_numbers = #tpu.dot_dimension_numbers<[1], [0], [0], [1], [0, 0, 1, 1], [], []>} : vector<8x128xbf16>, vector<128x128xbf16>, vector<8x128xf32> -> vector<8x128xf32>
    %82 = arith.addf %18, %81 : vector<8x128xf32>
    %c8 = arith.constant 8 : index
    %c0_34 = arith.constant 0 : index
    %83 = vector.load %arg16[%c8, %c0_34] : memref<64x512xf32, #tpu.memory_space<vmem>>, vector<8x512xf32>
    %c0_35 = arith.constant 0 : index
    %c0_36 = arith.constant 0 : index
    %84 = vector.load %arg3[%c0_35, %c0_36] : memref<128x512xbf16, #tpu.memory_space<vmem>>, vector<128x512xbf16>
    %cst_37 = arith.constant dense<0.000000e+00> : vector<8x512xf32>
    %85 = tpu.matmul %48, %84, %cst_37 {dimension_numbers = #tpu.dot_dimension_numbers<[1], [0], [0], [1], [0, 0, 1, 1], [], []>} : vector<8x128xbf16>, vector<128x512xbf16>, vector<8x512xf32> -> vector<8x512xf32>
    %86 = arith.addf %83, %85 : vector<8x512xf32>
    %87 = vector.extract_strided_slice %86 {offsets = [0, 0], sizes = [8, 128], strides = [1, 1]} : vector<8x512xf32> to vector<8x128xf32>
    %88 = arith.negf %87 : vector<8x128xf32>
    %89 = math.exp %88 : vector<8x128xf32>
    %cst_38 = arith.constant 1.000000e+00 : f32
    %90 = vector.broadcast %cst_38 : f32 to vector<8x128xf32>
    %91 = arith.addf %90, %89 : vector<8x128xf32>
    %92 = arith.divf %90, %91 : vector<8x128xf32>
    %93 = vector.extract_strided_slice %86 {offsets = [0, 128], sizes = [8, 128], strides = [1, 1]} : vector<8x512xf32> to vector<8x128xf32>
    %94 = arith.negf %93 : vector<8x128xf32>
    %95 = math.exp %94 : vector<8x128xf32>
    %cst_39 = arith.constant 1.000000e+00 : f32
    %96 = vector.broadcast %cst_39 : f32 to vector<8x128xf32>
    %97 = arith.addf %96, %95 : vector<8x128xf32>
    %98 = arith.divf %96, %97 : vector<8x128xf32>
    %99 = vector.extract_strided_slice %86 {offsets = [0, 256], sizes = [8, 128], strides = [1, 1]} : vector<8x512xf32> to vector<8x128xf32>
    %100 = math.tanh %99 : vector<8x128xf32>
    %101 = vector.extract_strided_slice %86 {offsets = [0, 384], sizes = [8, 128], strides = [1, 1]} : vector<8x512xf32> to vector<8x128xf32>
    %102 = arith.negf %101 : vector<8x128xf32>
    %103 = math.exp %102 : vector<8x128xf32>
    %cst_40 = arith.constant 1.000000e+00 : f32
    %104 = vector.broadcast %cst_40 : f32 to vector<8x128xf32>
    %105 = arith.addf %104, %103 : vector<8x128xf32>
    %106 = arith.divf %104, %105 : vector<8x128xf32>
    %107 = arith.mulf %98, %45 : vector<8x128xf32>
    %108 = arith.mulf %92, %100 : vector<8x128xf32>
    %109 = arith.addf %107, %108 : vector<8x128xf32>
    %110 = math.tanh %109 : vector<8x128xf32>
    %111 = arith.mulf %106, %110 : vector<8x128xf32>
    %112 = arith.truncf %111 : vector<8x128xf32> to vector<8x128xbf16>
    %113 = tpu.concatenate %112, %78 in 1 : vector<8x128xbf16>, vector<8x128xbf16> -> vector<8x256xbf16>
    %c0_41 = arith.constant 0 : index
    %c0_42 = arith.constant 0 : index
    %114 = vector.load %arg5[%c0_41, %c0_42] : memref<256x512xbf16, #tpu.memory_space<vmem>>, vector<256x512xbf16>
    %cst_43 = arith.constant dense<0.000000e+00> : vector<8x512xf32>
    %115 = tpu.matmul %113, %114, %cst_43 {dimension_numbers = #tpu.dot_dimension_numbers<[1], [0], [0], [1], [0, 0, 1, 1], [], []>} : vector<8x256xbf16>, vector<256x512xbf16>, vector<8x512xf32> -> vector<8x512xf32>
    %116 = arith.addf %115, %11 : vector<8x512xf32>
    %117 = vector.extract_strided_slice %116 {offsets = [0, 0], sizes = [8, 128], strides = [1, 1]} : vector<8x512xf32> to vector<8x128xf32>
    %118 = arith.negf %117 : vector<8x128xf32>
    %119 = math.exp %118 : vector<8x128xf32>
    %cst_44 = arith.constant 1.000000e+00 : f32
    %120 = vector.broadcast %cst_44 : f32 to vector<8x128xf32>
    %121 = arith.addf %120, %119 : vector<8x128xf32>
    %122 = arith.divf %120, %121 : vector<8x128xf32>
    %123 = vector.extract_strided_slice %116 {offsets = [0, 128], sizes = [8, 128], strides = [1, 1]} : vector<8x512xf32> to vector<8x128xf32>
    %124 = arith.negf %123 : vector<8x128xf32>
    %125 = math.exp %124 : vector<8x128xf32>
    %cst_45 = arith.constant 1.000000e+00 : f32
    %126 = vector.broadcast %cst_45 : f32 to vector<8x128xf32>
    %127 = arith.addf %126, %125 : vector<8x128xf32>
    %128 = arith.divf %126, %127 : vector<8x128xf32>
    %129 = vector.extract_strided_slice %116 {offsets = [0, 256], sizes = [8, 128], strides = [1, 1]} : vector<8x512xf32> to vector<8x128xf32>
    %130 = math.tanh %129 : vector<8x128xf32>
    %131 = vector.extract_strided_slice %116 {offsets = [0, 384], sizes = [8, 128], strides = [1, 1]} : vector<8x512xf32> to vector<8x128xf32>
    %132 = arith.negf %131 : vector<8x128xf32>
    %133 = math.exp %132 : vector<8x128xf32>
    %cst_46 = arith.constant 1.000000e+00 : f32
    %134 = vector.broadcast %cst_46 : f32 to vector<8x128xf32>
    %135 = arith.addf %134, %133 : vector<8x128xf32>
    %136 = arith.divf %134, %135 : vector<8x128xf32>
    %137 = arith.mulf %128, %75 : vector<8x128xf32>
    %138 = arith.mulf %122, %130 : vector<8x128xf32>
    %139 = arith.addf %137, %138 : vector<8x128xf32>
    %140 = math.tanh %139 : vector<8x128xf32>
    %141 = arith.mulf %136, %140 : vector<8x128xf32>
    %142 = arith.truncf %141 : vector<8x128xf32> to vector<8x128xbf16>
    %c1 = arith.constant 1 : index
    %c0_47 = arith.constant 0 : index
    %c0_48 = arith.constant 0 : index
    %143 = vector.load %arg7[%c1, %c0_47, %c0_48] : memref<8x128x128xbf16, #tpu.memory_space<vmem>>, vector<1x128x128xbf16>
    %144 = vector.shape_cast %143 : vector<1x128x128xbf16> to vector<128x128xbf16>
    %cst_49 = arith.constant dense<0.000000e+00> : vector<8x128xf32>
    %145 = tpu.matmul %142, %144, %cst_49 {dimension_numbers = #tpu.dot_dimension_numbers<[1], [0], [0], [1], [0, 0, 1, 1], [], []>} : vector<8x128xbf16>, vector<128x128xbf16>, vector<8x128xf32> -> vector<8x128xf32>
    %146 = arith.addf %82, %145 : vector<8x128xf32>
    %c16 = arith.constant 16 : index
    %c0_50 = arith.constant 0 : index
    %147 = vector.load %arg16[%c16, %c0_50] : memref<64x512xf32, #tpu.memory_space<vmem>>, vector<8x512xf32>
    %c0_51 = arith.constant 0 : index
    %c0_52 = arith.constant 0 : index
    %148 = vector.load %arg3[%c0_51, %c0_52] : memref<128x512xbf16, #tpu.memory_space<vmem>>, vector<128x512xbf16>
    %cst_53 = arith.constant dense<0.000000e+00> : vector<8x512xf32>
    %149 = tpu.matmul %112, %148, %cst_53 {dimension_numbers = #tpu.dot_dimension_numbers<[1], [0], [0], [1], [0, 0, 1, 1], [], []>} : vector<8x128xbf16>, vector<128x512xbf16>, vector<8x512xf32> -> vector<8x512xf32>
    %150 = arith.addf %147, %149 : vector<8x512xf32>
    %151 = vector.extract_strided_slice %150 {offsets = [0, 0], sizes = [8, 128], strides = [1, 1]} : vector<8x512xf32> to vector<8x128xf32>
    %152 = arith.negf %151 : vector<8x128xf32>
    %153 = math.exp %152 : vector<8x128xf32>
    %cst_54 = arith.constant 1.000000e+00 : f32
    %154 = vector.broadcast %cst_54 : f32 to vector<8x128xf32>
    %155 = arith.addf %154, %153 : vector<8x128xf32>
    %156 = arith.divf %154, %155 : vector<8x128xf32>
    %157 = vector.extract_strided_slice %150 {offsets = [0, 128], sizes = [8, 128], strides = [1, 1]} : vector<8x512xf32> to vector<8x128xf32>
    %158 = arith.negf %157 : vector<8x128xf32>
    %159 = math.exp %158 : vector<8x128xf32>
    %cst_55 = arith.constant 1.000000e+00 : f32
    %160 = vector.broadcast %cst_55 : f32 to vector<8x128xf32>
    %161 = arith.addf %160, %159 : vector<8x128xf32>
    %162 = arith.divf %160, %161 : vector<8x128xf32>
    %163 = vector.extract_strided_slice %150 {offsets = [0, 256], sizes = [8, 128], strides = [1, 1]} : vector<8x512xf32> to vector<8x128xf32>
    %164 = math.tanh %163 : vector<8x128xf32>
    %165 = vector.extract_strided_slice %150 {offsets = [0, 384], sizes = [8, 128], strides = [1, 1]} : vector<8x512xf32> to vector<8x128xf32>
    %166 = arith.negf %165 : vector<8x128xf32>
    %167 = math.exp %166 : vector<8x128xf32>
    %cst_56 = arith.constant 1.000000e+00 : f32
    %168 = vector.broadcast %cst_56 : f32 to vector<8x128xf32>
    %169 = arith.addf %168, %167 : vector<8x128xf32>
    %170 = arith.divf %168, %169 : vector<8x128xf32>
    %171 = arith.mulf %162, %109 : vector<8x128xf32>
    %172 = arith.mulf %156, %164 : vector<8x128xf32>
    %173 = arith.addf %171, %172 : vector<8x128xf32>
    %174 = math.tanh %173 : vector<8x128xf32>
    %175 = arith.mulf %170, %174 : vector<8x128xf32>
    %176 = arith.truncf %175 : vector<8x128xf32> to vector<8x128xbf16>
    %177 = tpu.concatenate %176, %142 in 1 : vector<8x128xbf16>, vector<8x128xbf16> -> vector<8x256xbf16>
    %c0_57 = arith.constant 0 : index
    %c0_58 = arith.constant 0 : index
    %178 = vector.load %arg5[%c0_57, %c0_58] : memref<256x512xbf16, #tpu.memory_space<vmem>>, vector<256x512xbf16>
    %cst_59 = arith.constant dense<0.000000e+00> : vector<8x512xf32>
    %179 = tpu.matmul %177, %178, %cst_59 {dimension_numbers = #tpu.dot_dimension_numbers<[1], [0], [0], [1], [0, 0, 1, 1], [], []>} : vector<8x256xbf16>, vector<256x512xbf16>, vector<8x512xf32> -> vector<8x512xf32>
    %180 = arith.addf %179, %11 : vector<8x512xf32>
    %181 = vector.extract_strided_slice %180 {offsets = [0, 0], sizes = [8, 128], strides = [1, 1]} : vector<8x512xf32> to vector<8x128xf32>
    %182 = arith.negf %181 : vector<8x128xf32>
    %183 = math.exp %182 : vector<8x128xf32>
    %cst_60 = arith.constant 1.000000e+00 : f32
    %184 = vector.broadcast %cst_60 : f32 to vector<8x128xf32>
    %185 = arith.addf %184, %183 : vector<8x128xf32>
    %186 = arith.divf %184, %185 : vector<8x128xf32>
    %187 = vector.extract_strided_slice %180 {offsets = [0, 128], sizes = [8, 128], strides = [1, 1]} : vector<8x512xf32> to vector<8x128xf32>
    %188 = arith.negf %187 : vector<8x128xf32>
    %189 = math.exp %188 : vector<8x128xf32>
    %cst_61 = arith.constant 1.000000e+00 : f32
    %190 = vector.broadcast %cst_61 : f32 to vector<8x128xf32>
    %191 = arith.addf %190, %189 : vector<8x128xf32>
    %192 = arith.divf %190, %191 : vector<8x128xf32>
    %193 = vector.extract_strided_slice %180 {offsets = [0, 256], sizes = [8, 128], strides = [1, 1]} : vector<8x512xf32> to vector<8x128xf32>
    %194 = math.tanh %193 : vector<8x128xf32>
    %195 = vector.extract_strided_slice %180 {offsets = [0, 384], sizes = [8, 128], strides = [1, 1]} : vector<8x512xf32> to vector<8x128xf32>
    %196 = arith.negf %195 : vector<8x128xf32>
    %197 = math.exp %196 : vector<8x128xf32>
    %cst_62 = arith.constant 1.000000e+00 : f32
    %198 = vector.broadcast %cst_62 : f32 to vector<8x128xf32>
    %199 = arith.addf %198, %197 : vector<8x128xf32>
    %200 = arith.divf %198, %199 : vector<8x128xf32>
    %201 = arith.mulf %192, %139 : vector<8x128xf32>
    %202 = arith.mulf %186, %194 : vector<8x128xf32>
    %203 = arith.addf %201, %202 : vector<8x128xf32>
    %204 = math.tanh %203 : vector<8x128xf32>
    %205 = arith.mulf %200, %204 : vector<8x128xf32>
    %206 = arith.truncf %205 : vector<8x128xf32> to vector<8x128xbf16>
    %c2 = arith.constant 2 : index
    %c0_63 = arith.constant 0 : index
    %c0_64 = arith.constant 0 : index
    %207 = vector.load %arg7[%c2, %c0_63, %c0_64] : memref<8x128x128xbf16, #tpu.memory_space<vmem>>, vector<1x128x128xbf16>
    %208 = vector.shape_cast %207 : vector<1x128x128xbf16> to vector<128x128xbf16>
    %cst_65 = arith.constant dense<0.000000e+00> : vector<8x128xf32>
    %209 = tpu.matmul %206, %208, %cst_65 {dimension_numbers = #tpu.dot_dimension_numbers<[1], [0], [0], [1], [0, 0, 1, 1], [], []>} : vector<8x128xbf16>, vector<128x128xbf16>, vector<8x128xf32> -> vector<8x128xf32>
    %210 = arith.addf %146, %209 : vector<8x128xf32>
    %c24 = arith.constant 24 : index
    %c0_66 = arith.constant 0 : index
    %211 = vector.load %arg16[%c24, %c0_66] : memref<64x512xf32, #tpu.memory_space<vmem>>, vector<8x512xf32>
    %c0_67 = arith.constant 0 : index
    %c0_68 = arith.constant 0 : index
    %212 = vector.load %arg3[%c0_67, %c0_68] : memref<128x512xbf16, #tpu.memory_space<vmem>>, vector<128x512xbf16>
    %cst_69 = arith.constant dense<0.000000e+00> : vector<8x512xf32>
    %213 = tpu.matmul %176, %212, %cst_69 {dimension_numbers = #tpu.dot_dimension_numbers<[1], [0], [0], [1], [0, 0, 1, 1], [], []>} : vector<8x128xbf16>, vector<128x512xbf16>, vector<8x512xf32> -> vector<8x512xf32>
    %214 = arith.addf %211, %213 : vector<8x512xf32>
    %215 = vector.extract_strided_slice %214 {offsets = [0, 0], sizes = [8, 128], strides = [1, 1]} : vector<8x512xf32> to vector<8x128xf32>
    %216 = arith.negf %215 : vector<8x128xf32>
    %217 = math.exp %216 : vector<8x128xf32>
    %cst_70 = arith.constant 1.000000e+00 : f32
    %218 = vector.broadcast %cst_70 : f32 to vector<8x128xf32>
    %219 = arith.addf %218, %217 : vector<8x128xf32>
    %220 = arith.divf %218, %219 : vector<8x128xf32>
    %221 = vector.extract_strided_slice %214 {offsets = [0, 128], sizes = [8, 128], strides = [1, 1]} : vector<8x512xf32> to vector<8x128xf32>
    %222 = arith.negf %221 : vector<8x128xf32>
    %223 = math.exp %222 : vector<8x128xf32>
    %cst_71 = arith.constant 1.000000e+00 : f32
    %224 = vector.broadcast %cst_71 : f32 to vector<8x128xf32>
    %225 = arith.addf %224, %223 : vector<8x128xf32>
    %226 = arith.divf %224, %225 : vector<8x128xf32>
    %227 = vector.extract_strided_slice %214 {offsets = [0, 256], sizes = [8, 128], strides = [1, 1]} : vector<8x512xf32> to vector<8x128xf32>
    %228 = math.tanh %227 : vector<8x128xf32>
    %229 = vector.extract_strided_slice %214 {offsets = [0, 384], sizes = [8, 128], strides = [1, 1]} : vector<8x512xf32> to vector<8x128xf32>
    %230 = arith.negf %229 : vector<8x128xf32>
    %231 = math.exp %230 : vector<8x128xf32>
    %cst_72 = arith.constant 1.000000e+00 : f32
    %232 = vector.broadcast %cst_72 : f32 to vector<8x128xf32>
    %233 = arith.addf %232, %231 : vector<8x128xf32>
    %234 = arith.divf %232, %233 : vector<8x128xf32>
    %235 = arith.mulf %226, %173 : vector<8x128xf32>
    %236 = arith.mulf %220, %228 : vector<8x128xf32>
    %237 = arith.addf %235, %236 : vector<8x128xf32>
    %238 = math.tanh %237 : vector<8x128xf32>
    %239 = arith.mulf %234, %238 : vector<8x128xf32>
    %240 = arith.truncf %239 : vector<8x128xf32> to vector<8x128xbf16>
    %241 = tpu.concatenate %240, %206 in 1 : vector<8x128xbf16>, vector<8x128xbf16> -> vector<8x256xbf16>
    %c0_73 = arith.constant 0 : index
    %c0_74 = arith.constant 0 : index
    %242 = vector.load %arg5[%c0_73, %c0_74] : memref<256x512xbf16, #tpu.memory_space<vmem>>, vector<256x512xbf16>
    %cst_75 = arith.constant dense<0.000000e+00> : vector<8x512xf32>
    %243 = tpu.matmul %241, %242, %cst_75 {dimension_numbers = #tpu.dot_dimension_numbers<[1], [0], [0], [1], [0, 0, 1, 1], [], []>} : vector<8x256xbf16>, vector<256x512xbf16>, vector<8x512xf32> -> vector<8x512xf32>
    %244 = arith.addf %243, %11 : vector<8x512xf32>
    %245 = vector.extract_strided_slice %244 {offsets = [0, 0], sizes = [8, 128], strides = [1, 1]} : vector<8x512xf32> to vector<8x128xf32>
    %246 = arith.negf %245 : vector<8x128xf32>
    %247 = math.exp %246 : vector<8x128xf32>
    %cst_76 = arith.constant 1.000000e+00 : f32
    %248 = vector.broadcast %cst_76 : f32 to vector<8x128xf32>
    %249 = arith.addf %248, %247 : vector<8x128xf32>
    %250 = arith.divf %248, %249 : vector<8x128xf32>
    %251 = vector.extract_strided_slice %244 {offsets = [0, 128], sizes = [8, 128], strides = [1, 1]} : vector<8x512xf32> to vector<8x128xf32>
    %252 = arith.negf %251 : vector<8x128xf32>
    %253 = math.exp %252 : vector<8x128xf32>
    %cst_77 = arith.constant 1.000000e+00 : f32
    %254 = vector.broadcast %cst_77 : f32 to vector<8x128xf32>
    %255 = arith.addf %254, %253 : vector<8x128xf32>
    %256 = arith.divf %254, %255 : vector<8x128xf32>
    %257 = vector.extract_strided_slice %244 {offsets = [0, 256], sizes = [8, 128], strides = [1, 1]} : vector<8x512xf32> to vector<8x128xf32>
    %258 = math.tanh %257 : vector<8x128xf32>
    %259 = vector.extract_strided_slice %244 {offsets = [0, 384], sizes = [8, 128], strides = [1, 1]} : vector<8x512xf32> to vector<8x128xf32>
    %260 = arith.negf %259 : vector<8x128xf32>
    %261 = math.exp %260 : vector<8x128xf32>
    %cst_78 = arith.constant 1.000000e+00 : f32
    %262 = vector.broadcast %cst_78 : f32 to vector<8x128xf32>
    %263 = arith.addf %262, %261 : vector<8x128xf32>
    %264 = arith.divf %262, %263 : vector<8x128xf32>
    %265 = arith.mulf %256, %203 : vector<8x128xf32>
    %266 = arith.mulf %250, %258 : vector<8x128xf32>
    %267 = arith.addf %265, %266 : vector<8x128xf32>
    %268 = math.tanh %267 : vector<8x128xf32>
    %269 = arith.mulf %264, %268 : vector<8x128xf32>
    %270 = arith.truncf %269 : vector<8x128xf32> to vector<8x128xbf16>
    %c3 = arith.constant 3 : index
    %c0_79 = arith.constant 0 : index
    %c0_80 = arith.constant 0 : index
    %271 = vector.load %arg7[%c3, %c0_79, %c0_80] : memref<8x128x128xbf16, #tpu.memory_space<vmem>>, vector<1x128x128xbf16>
    %272 = vector.shape_cast %271 : vector<1x128x128xbf16> to vector<128x128xbf16>
    %cst_81 = arith.constant dense<0.000000e+00> : vector<8x128xf32>
    %273 = tpu.matmul %270, %272, %cst_81 {dimension_numbers = #tpu.dot_dimension_numbers<[1], [0], [0], [1], [0, 0, 1, 1], [], []>} : vector<8x128xbf16>, vector<128x128xbf16>, vector<8x128xf32> -> vector<8x128xf32>
    %274 = arith.addf %210, %273 : vector<8x128xf32>
    %c32 = arith.constant 32 : index
    %c0_82 = arith.constant 0 : index
    %275 = vector.load %arg16[%c32, %c0_82] : memref<64x512xf32, #tpu.memory_space<vmem>>, vector<8x512xf32>
    %c0_83 = arith.constant 0 : index
    %c0_84 = arith.constant 0 : index
    %276 = vector.load %arg3[%c0_83, %c0_84] : memref<128x512xbf16, #tpu.memory_space<vmem>>, vector<128x512xbf16>
    %cst_85 = arith.constant dense<0.000000e+00> : vector<8x512xf32>
    %277 = tpu.matmul %240, %276, %cst_85 {dimension_numbers = #tpu.dot_dimension_numbers<[1], [0], [0], [1], [0, 0, 1, 1], [], []>} : vector<8x128xbf16>, vector<128x512xbf16>, vector<8x512xf32> -> vector<8x512xf32>
    %278 = arith.addf %275, %277 : vector<8x512xf32>
    %279 = vector.extract_strided_slice %278 {offsets = [0, 0], sizes = [8, 128], strides = [1, 1]} : vector<8x512xf32> to vector<8x128xf32>
    %280 = arith.negf %279 : vector<8x128xf32>
    %281 = math.exp %280 : vector<8x128xf32>
    %cst_86 = arith.constant 1.000000e+00 : f32
    %282 = vector.broadcast %cst_86 : f32 to vector<8x128xf32>
    %283 = arith.addf %282, %281 : vector<8x128xf32>
    %284 = arith.divf %282, %283 : vector<8x128xf32>
    %285 = vector.extract_strided_slice %278 {offsets = [0, 128], sizes = [8, 128], strides = [1, 1]} : vector<8x512xf32> to vector<8x128xf32>
    %286 = arith.negf %285 : vector<8x128xf32>
    %287 = math.exp %286 : vector<8x128xf32>
    %cst_87 = arith.constant 1.000000e+00 : f32
    %288 = vector.broadcast %cst_87 : f32 to vector<8x128xf32>
    %289 = arith.addf %288, %287 : vector<8x128xf32>
    %290 = arith.divf %288, %289 : vector<8x128xf32>
    %291 = vector.extract_strided_slice %278 {offsets = [0, 256], sizes = [8, 128], strides = [1, 1]} : vector<8x512xf32> to vector<8x128xf32>
    %292 = math.tanh %291 : vector<8x128xf32>
    %293 = vector.extract_strided_slice %278 {offsets = [0, 384], sizes = [8, 128], strides = [1, 1]} : vector<8x512xf32> to vector<8x128xf32>
    %294 = arith.negf %293 : vector<8x128xf32>
    %295 = math.exp %294 : vector<8x128xf32>
    %cst_88 = arith.constant 1.000000e+00 : f32
    %296 = vector.broadcast %cst_88 : f32 to vector<8x128xf32>
    %297 = arith.addf %296, %295 : vector<8x128xf32>
    %298 = arith.divf %296, %297 : vector<8x128xf32>
    %299 = arith.mulf %290, %237 : vector<8x128xf32>
    %300 = arith.mulf %284, %292 : vector<8x128xf32>
    %301 = arith.addf %299, %300 : vector<8x128xf32>
    %302 = math.tanh %301 : vector<8x128xf32>
    %303 = arith.mulf %298, %302 : vector<8x128xf32>
    %304 = arith.truncf %303 : vector<8x128xf32> to vector<8x128xbf16>
    %305 = tpu.concatenate %304, %270 in 1 : vector<8x128xbf16>, vector<8x128xbf16> -> vector<8x256xbf16>
    %c0_89 = arith.constant 0 : index
    %c0_90 = arith.constant 0 : index
    %306 = vector.load %arg5[%c0_89, %c0_90] : memref<256x512xbf16, #tpu.memory_space<vmem>>, vector<256x512xbf16>
    %cst_91 = arith.constant dense<0.000000e+00> : vector<8x512xf32>
    %307 = tpu.matmul %305, %306, %cst_91 {dimension_numbers = #tpu.dot_dimension_numbers<[1], [0], [0], [1], [0, 0, 1, 1], [], []>} : vector<8x256xbf16>, vector<256x512xbf16>, vector<8x512xf32> -> vector<8x512xf32>
    %308 = arith.addf %307, %11 : vector<8x512xf32>
    %309 = vector.extract_strided_slice %308 {offsets = [0, 0], sizes = [8, 128], strides = [1, 1]} : vector<8x512xf32> to vector<8x128xf32>
    %310 = arith.negf %309 : vector<8x128xf32>
    %311 = math.exp %310 : vector<8x128xf32>
    %cst_92 = arith.constant 1.000000e+00 : f32
    %312 = vector.broadcast %cst_92 : f32 to vector<8x128xf32>
    %313 = arith.addf %312, %311 : vector<8x128xf32>
    %314 = arith.divf %312, %313 : vector<8x128xf32>
    %315 = vector.extract_strided_slice %308 {offsets = [0, 128], sizes = [8, 128], strides = [1, 1]} : vector<8x512xf32> to vector<8x128xf32>
    %316 = arith.negf %315 : vector<8x128xf32>
    %317 = math.exp %316 : vector<8x128xf32>
    %cst_93 = arith.constant 1.000000e+00 : f32
    %318 = vector.broadcast %cst_93 : f32 to vector<8x128xf32>
    %319 = arith.addf %318, %317 : vector<8x128xf32>
    %320 = arith.divf %318, %319 : vector<8x128xf32>
    %321 = vector.extract_strided_slice %308 {offsets = [0, 256], sizes = [8, 128], strides = [1, 1]} : vector<8x512xf32> to vector<8x128xf32>
    %322 = math.tanh %321 : vector<8x128xf32>
    %323 = vector.extract_strided_slice %308 {offsets = [0, 384], sizes = [8, 128], strides = [1, 1]} : vector<8x512xf32> to vector<8x128xf32>
    %324 = arith.negf %323 : vector<8x128xf32>
    %325 = math.exp %324 : vector<8x128xf32>
    %cst_94 = arith.constant 1.000000e+00 : f32
    %326 = vector.broadcast %cst_94 : f32 to vector<8x128xf32>
    %327 = arith.addf %326, %325 : vector<8x128xf32>
    %328 = arith.divf %326, %327 : vector<8x128xf32>
    %329 = arith.mulf %320, %267 : vector<8x128xf32>
    %330 = arith.mulf %314, %322 : vector<8x128xf32>
    %331 = arith.addf %329, %330 : vector<8x128xf32>
    %332 = math.tanh %331 : vector<8x128xf32>
    %333 = arith.mulf %328, %332 : vector<8x128xf32>
    %334 = arith.truncf %333 : vector<8x128xf32> to vector<8x128xbf16>
    %c4 = arith.constant 4 : index
    %c0_95 = arith.constant 0 : index
    %c0_96 = arith.constant 0 : index
    %335 = vector.load %arg7[%c4, %c0_95, %c0_96] : memref<8x128x128xbf16, #tpu.memory_space<vmem>>, vector<1x128x128xbf16>
    %336 = vector.shape_cast %335 : vector<1x128x128xbf16> to vector<128x128xbf16>
    %cst_97 = arith.constant dense<0.000000e+00> : vector<8x128xf32>
    %337 = tpu.matmul %334, %336, %cst_97 {dimension_numbers = #tpu.dot_dimension_numbers<[1], [0], [0], [1], [0, 0, 1, 1], [], []>} : vector<8x128xbf16>, vector<128x128xbf16>, vector<8x128xf32> -> vector<8x128xf32>
    %338 = arith.addf %274, %337 : vector<8x128xf32>
    %c40 = arith.constant 40 : index
    %c0_98 = arith.constant 0 : index
    %339 = vector.load %arg16[%c40, %c0_98] : memref<64x512xf32, #tpu.memory_space<vmem>>, vector<8x512xf32>
    %c0_99 = arith.constant 0 : index
    %c0_100 = arith.constant 0 : index
    %340 = vector.load %arg3[%c0_99, %c0_100] : memref<128x512xbf16, #tpu.memory_space<vmem>>, vector<128x512xbf16>
    %cst_101 = arith.constant dense<0.000000e+00> : vector<8x512xf32>
    %341 = tpu.matmul %304, %340, %cst_101 {dimension_numbers = #tpu.dot_dimension_numbers<[1], [0], [0], [1], [0, 0, 1, 1], [], []>} : vector<8x128xbf16>, vector<128x512xbf16>, vector<8x512xf32> -> vector<8x512xf32>
    %342 = arith.addf %339, %341 : vector<8x512xf32>
    %343 = vector.extract_strided_slice %342 {offsets = [0, 0], sizes = [8, 128], strides = [1, 1]} : vector<8x512xf32> to vector<8x128xf32>
    %344 = arith.negf %343 : vector<8x128xf32>
    %345 = math.exp %344 : vector<8x128xf32>
    %cst_102 = arith.constant 1.000000e+00 : f32
    %346 = vector.broadcast %cst_102 : f32 to vector<8x128xf32>
    %347 = arith.addf %346, %345 : vector<8x128xf32>
    %348 = arith.divf %346, %347 : vector<8x128xf32>
    %349 = vector.extract_strided_slice %342 {offsets = [0, 128], sizes = [8, 128], strides = [1, 1]} : vector<8x512xf32> to vector<8x128xf32>
    %350 = arith.negf %349 : vector<8x128xf32>
    %351 = math.exp %350 : vector<8x128xf32>
    %cst_103 = arith.constant 1.000000e+00 : f32
    %352 = vector.broadcast %cst_103 : f32 to vector<8x128xf32>
    %353 = arith.addf %352, %351 : vector<8x128xf32>
    %354 = arith.divf %352, %353 : vector<8x128xf32>
    %355 = vector.extract_strided_slice %342 {offsets = [0, 256], sizes = [8, 128], strides = [1, 1]} : vector<8x512xf32> to vector<8x128xf32>
    %356 = math.tanh %355 : vector<8x128xf32>
    %357 = vector.extract_strided_slice %342 {offsets = [0, 384], sizes = [8, 128], strides = [1, 1]} : vector<8x512xf32> to vector<8x128xf32>
    %358 = arith.negf %357 : vector<8x128xf32>
    %359 = math.exp %358 : vector<8x128xf32>
    %cst_104 = arith.constant 1.000000e+00 : f32
    %360 = vector.broadcast %cst_104 : f32 to vector<8x128xf32>
    %361 = arith.addf %360, %359 : vector<8x128xf32>
    %362 = arith.divf %360, %361 : vector<8x128xf32>
    %363 = arith.mulf %354, %301 : vector<8x128xf32>
    %364 = arith.mulf %348, %356 : vector<8x128xf32>
    %365 = arith.addf %363, %364 : vector<8x128xf32>
    %366 = math.tanh %365 : vector<8x128xf32>
    %367 = arith.mulf %362, %366 : vector<8x128xf32>
    %368 = arith.truncf %367 : vector<8x128xf32> to vector<8x128xbf16>
    %369 = tpu.concatenate %368, %334 in 1 : vector<8x128xbf16>, vector<8x128xbf16> -> vector<8x256xbf16>
    %c0_105 = arith.constant 0 : index
    %c0_106 = arith.constant 0 : index
    %370 = vector.load %arg5[%c0_105, %c0_106] : memref<256x512xbf16, #tpu.memory_space<vmem>>, vector<256x512xbf16>
    %cst_107 = arith.constant dense<0.000000e+00> : vector<8x512xf32>
    %371 = tpu.matmul %369, %370, %cst_107 {dimension_numbers = #tpu.dot_dimension_numbers<[1], [0], [0], [1], [0, 0, 1, 1], [], []>} : vector<8x256xbf16>, vector<256x512xbf16>, vector<8x512xf32> -> vector<8x512xf32>
    %372 = arith.addf %371, %11 : vector<8x512xf32>
    %373 = vector.extract_strided_slice %372 {offsets = [0, 0], sizes = [8, 128], strides = [1, 1]} : vector<8x512xf32> to vector<8x128xf32>
    %374 = arith.negf %373 : vector<8x128xf32>
    %375 = math.exp %374 : vector<8x128xf32>
    %cst_108 = arith.constant 1.000000e+00 : f32
    %376 = vector.broadcast %cst_108 : f32 to vector<8x128xf32>
    %377 = arith.addf %376, %375 : vector<8x128xf32>
    %378 = arith.divf %376, %377 : vector<8x128xf32>
    %379 = vector.extract_strided_slice %372 {offsets = [0, 128], sizes = [8, 128], strides = [1, 1]} : vector<8x512xf32> to vector<8x128xf32>
    %380 = arith.negf %379 : vector<8x128xf32>
    %381 = math.exp %380 : vector<8x128xf32>
    %cst_109 = arith.constant 1.000000e+00 : f32
    %382 = vector.broadcast %cst_109 : f32 to vector<8x128xf32>
    %383 = arith.addf %382, %381 : vector<8x128xf32>
    %384 = arith.divf %382, %383 : vector<8x128xf32>
    %385 = vector.extract_strided_slice %372 {offsets = [0, 256], sizes = [8, 128], strides = [1, 1]} : vector<8x512xf32> to vector<8x128xf32>
    %386 = math.tanh %385 : vector<8x128xf32>
    %387 = vector.extract_strided_slice %372 {offsets = [0, 384], sizes = [8, 128], strides = [1, 1]} : vector<8x512xf32> to vector<8x128xf32>
    %388 = arith.negf %387 : vector<8x128xf32>
    %389 = math.exp %388 : vector<8x128xf32>
    %cst_110 = arith.constant 1.000000e+00 : f32
    %390 = vector.broadcast %cst_110 : f32 to vector<8x128xf32>
    %391 = arith.addf %390, %389 : vector<8x128xf32>
    %392 = arith.divf %390, %391 : vector<8x128xf32>
    %393 = arith.mulf %384, %331 : vector<8x128xf32>
    %394 = arith.mulf %378, %386 : vector<8x128xf32>
    %395 = arith.addf %393, %394 : vector<8x128xf32>
    %396 = math.tanh %395 : vector<8x128xf32>
    %397 = arith.mulf %392, %396 : vector<8x128xf32>
    %398 = arith.truncf %397 : vector<8x128xf32> to vector<8x128xbf16>
    %c5 = arith.constant 5 : index
    %c0_111 = arith.constant 0 : index
    %c0_112 = arith.constant 0 : index
    %399 = vector.load %arg7[%c5, %c0_111, %c0_112] : memref<8x128x128xbf16, #tpu.memory_space<vmem>>, vector<1x128x128xbf16>
    %400 = vector.shape_cast %399 : vector<1x128x128xbf16> to vector<128x128xbf16>
    %cst_113 = arith.constant dense<0.000000e+00> : vector<8x128xf32>
    %401 = tpu.matmul %398, %400, %cst_113 {dimension_numbers = #tpu.dot_dimension_numbers<[1], [0], [0], [1], [0, 0, 1, 1], [], []>} : vector<8x128xbf16>, vector<128x128xbf16>, vector<8x128xf32> -> vector<8x128xf32>
    %402 = arith.addf %338, %401 : vector<8x128xf32>
    %c48 = arith.constant 48 : index
    %c0_114 = arith.constant 0 : index
    %403 = vector.load %arg16[%c48, %c0_114] : memref<64x512xf32, #tpu.memory_space<vmem>>, vector<8x512xf32>
    %c0_115 = arith.constant 0 : index
    %c0_116 = arith.constant 0 : index
    %404 = vector.load %arg3[%c0_115, %c0_116] : memref<128x512xbf16, #tpu.memory_space<vmem>>, vector<128x512xbf16>
    %cst_117 = arith.constant dense<0.000000e+00> : vector<8x512xf32>
    %405 = tpu.matmul %368, %404, %cst_117 {dimension_numbers = #tpu.dot_dimension_numbers<[1], [0], [0], [1], [0, 0, 1, 1], [], []>} : vector<8x128xbf16>, vector<128x512xbf16>, vector<8x512xf32> -> vector<8x512xf32>
    %406 = arith.addf %403, %405 : vector<8x512xf32>
    %407 = vector.extract_strided_slice %406 {offsets = [0, 0], sizes = [8, 128], strides = [1, 1]} : vector<8x512xf32> to vector<8x128xf32>
    %408 = arith.negf %407 : vector<8x128xf32>
    %409 = math.exp %408 : vector<8x128xf32>
    %cst_118 = arith.constant 1.000000e+00 : f32
    %410 = vector.broadcast %cst_118 : f32 to vector<8x128xf32>
    %411 = arith.addf %410, %409 : vector<8x128xf32>
    %412 = arith.divf %410, %411 : vector<8x128xf32>
    %413 = vector.extract_strided_slice %406 {offsets = [0, 128], sizes = [8, 128], strides = [1, 1]} : vector<8x512xf32> to vector<8x128xf32>
    %414 = arith.negf %413 : vector<8x128xf32>
    %415 = math.exp %414 : vector<8x128xf32>
    %cst_119 = arith.constant 1.000000e+00 : f32
    %416 = vector.broadcast %cst_119 : f32 to vector<8x128xf32>
    %417 = arith.addf %416, %415 : vector<8x128xf32>
    %418 = arith.divf %416, %417 : vector<8x128xf32>
    %419 = vector.extract_strided_slice %406 {offsets = [0, 256], sizes = [8, 128], strides = [1, 1]} : vector<8x512xf32> to vector<8x128xf32>
    %420 = math.tanh %419 : vector<8x128xf32>
    %421 = vector.extract_strided_slice %406 {offsets = [0, 384], sizes = [8, 128], strides = [1, 1]} : vector<8x512xf32> to vector<8x128xf32>
    %422 = arith.negf %421 : vector<8x128xf32>
    %423 = math.exp %422 : vector<8x128xf32>
    %cst_120 = arith.constant 1.000000e+00 : f32
    %424 = vector.broadcast %cst_120 : f32 to vector<8x128xf32>
    %425 = arith.addf %424, %423 : vector<8x128xf32>
    %426 = arith.divf %424, %425 : vector<8x128xf32>
    %427 = arith.mulf %418, %365 : vector<8x128xf32>
    %428 = arith.mulf %412, %420 : vector<8x128xf32>
    %429 = arith.addf %427, %428 : vector<8x128xf32>
    %430 = math.tanh %429 : vector<8x128xf32>
    %431 = arith.mulf %426, %430 : vector<8x128xf32>
    %432 = arith.truncf %431 : vector<8x128xf32> to vector<8x128xbf16>
    %433 = tpu.concatenate %432, %398 in 1 : vector<8x128xbf16>, vector<8x128xbf16> -> vector<8x256xbf16>
    %c0_121 = arith.constant 0 : index
    %c0_122 = arith.constant 0 : index
    %434 = vector.load %arg5[%c0_121, %c0_122] : memref<256x512xbf16, #tpu.memory_space<vmem>>, vector<256x512xbf16>
    %cst_123 = arith.constant dense<0.000000e+00> : vector<8x512xf32>
    %435 = tpu.matmul %433, %434, %cst_123 {dimension_numbers = #tpu.dot_dimension_numbers<[1], [0], [0], [1], [0, 0, 1, 1], [], []>} : vector<8x256xbf16>, vector<256x512xbf16>, vector<8x512xf32> -> vector<8x512xf32>
    %436 = arith.addf %435, %11 : vector<8x512xf32>
    %437 = vector.extract_strided_slice %436 {offsets = [0, 0], sizes = [8, 128], strides = [1, 1]} : vector<8x512xf32> to vector<8x128xf32>
    %438 = arith.negf %437 : vector<8x128xf32>
    %439 = math.exp %438 : vector<8x128xf32>
    %cst_124 = arith.constant 1.000000e+00 : f32
    %440 = vector.broadcast %cst_124 : f32 to vector<8x128xf32>
    %441 = arith.addf %440, %439 : vector<8x128xf32>
    %442 = arith.divf %440, %441 : vector<8x128xf32>
    %443 = vector.extract_strided_slice %436 {offsets = [0, 128], sizes = [8, 128], strides = [1, 1]} : vector<8x512xf32> to vector<8x128xf32>
    %444 = arith.negf %443 : vector<8x128xf32>
    %445 = math.exp %444 : vector<8x128xf32>
    %cst_125 = arith.constant 1.000000e+00 : f32
    %446 = vector.broadcast %cst_125 : f32 to vector<8x128xf32>
    %447 = arith.addf %446, %445 : vector<8x128xf32>
    %448 = arith.divf %446, %447 : vector<8x128xf32>
    %449 = vector.extract_strided_slice %436 {offsets = [0, 256], sizes = [8, 128], strides = [1, 1]} : vector<8x512xf32> to vector<8x128xf32>
    %450 = math.tanh %449 : vector<8x128xf32>
    %451 = vector.extract_strided_slice %436 {offsets = [0, 384], sizes = [8, 128], strides = [1, 1]} : vector<8x512xf32> to vector<8x128xf32>
    %452 = arith.negf %451 : vector<8x128xf32>
    %453 = math.exp %452 : vector<8x128xf32>
    %cst_126 = arith.constant 1.000000e+00 : f32
    %454 = vector.broadcast %cst_126 : f32 to vector<8x128xf32>
    %455 = arith.addf %454, %453 : vector<8x128xf32>
    %456 = arith.divf %454, %455 : vector<8x128xf32>
    %457 = arith.mulf %448, %395 : vector<8x128xf32>
    %458 = arith.mulf %442, %450 : vector<8x128xf32>
    %459 = arith.addf %457, %458 : vector<8x128xf32>
    %460 = math.tanh %459 : vector<8x128xf32>
    %461 = arith.mulf %456, %460 : vector<8x128xf32>
    %462 = arith.truncf %461 : vector<8x128xf32> to vector<8x128xbf16>
    %c6 = arith.constant 6 : index
    %c0_127 = arith.constant 0 : index
    %c0_128 = arith.constant 0 : index
    %463 = vector.load %arg7[%c6, %c0_127, %c0_128] : memref<8x128x128xbf16, #tpu.memory_space<vmem>>, vector<1x128x128xbf16>
    %464 = vector.shape_cast %463 : vector<1x128x128xbf16> to vector<128x128xbf16>
    %cst_129 = arith.constant dense<0.000000e+00> : vector<8x128xf32>
    %465 = tpu.matmul %462, %464, %cst_129 {dimension_numbers = #tpu.dot_dimension_numbers<[1], [0], [0], [1], [0, 0, 1, 1], [], []>} : vector<8x128xbf16>, vector<128x128xbf16>, vector<8x128xf32> -> vector<8x128xf32>
    %466 = arith.addf %402, %465 : vector<8x128xf32>
    %c56 = arith.constant 56 : index
    %c0_130 = arith.constant 0 : index
    %467 = vector.load %arg16[%c56, %c0_130] : memref<64x512xf32, #tpu.memory_space<vmem>>, vector<8x512xf32>
    %c0_131 = arith.constant 0 : index
    %c0_132 = arith.constant 0 : index
    %468 = vector.load %arg3[%c0_131, %c0_132] : memref<128x512xbf16, #tpu.memory_space<vmem>>, vector<128x512xbf16>
    %cst_133 = arith.constant dense<0.000000e+00> : vector<8x512xf32>
    %469 = tpu.matmul %432, %468, %cst_133 {dimension_numbers = #tpu.dot_dimension_numbers<[1], [0], [0], [1], [0, 0, 1, 1], [], []>} : vector<8x128xbf16>, vector<128x512xbf16>, vector<8x512xf32> -> vector<8x512xf32>
    %470 = arith.addf %467, %469 : vector<8x512xf32>
    %471 = vector.extract_strided_slice %470 {offsets = [0, 0], sizes = [8, 128], strides = [1, 1]} : vector<8x512xf32> to vector<8x128xf32>
    %472 = arith.negf %471 : vector<8x128xf32>
    %473 = math.exp %472 : vector<8x128xf32>
    %cst_134 = arith.constant 1.000000e+00 : f32
    %474 = vector.broadcast %cst_134 : f32 to vector<8x128xf32>
    %475 = arith.addf %474, %473 : vector<8x128xf32>
    %476 = arith.divf %474, %475 : vector<8x128xf32>
    %477 = vector.extract_strided_slice %470 {offsets = [0, 128], sizes = [8, 128], strides = [1, 1]} : vector<8x512xf32> to vector<8x128xf32>
    %478 = arith.negf %477 : vector<8x128xf32>
    %479 = math.exp %478 : vector<8x128xf32>
    %cst_135 = arith.constant 1.000000e+00 : f32
    %480 = vector.broadcast %cst_135 : f32 to vector<8x128xf32>
    %481 = arith.addf %480, %479 : vector<8x128xf32>
    %482 = arith.divf %480, %481 : vector<8x128xf32>
    %483 = vector.extract_strided_slice %470 {offsets = [0, 256], sizes = [8, 128], strides = [1, 1]} : vector<8x512xf32> to vector<8x128xf32>
    %484 = math.tanh %483 : vector<8x128xf32>
    %485 = vector.extract_strided_slice %470 {offsets = [0, 384], sizes = [8, 128], strides = [1, 1]} : vector<8x512xf32> to vector<8x128xf32>
    %486 = arith.negf %485 : vector<8x128xf32>
    %487 = math.exp %486 : vector<8x128xf32>
    %cst_136 = arith.constant 1.000000e+00 : f32
    %488 = vector.broadcast %cst_136 : f32 to vector<8x128xf32>
    %489 = arith.addf %488, %487 : vector<8x128xf32>
    %490 = arith.divf %488, %489 : vector<8x128xf32>
    %491 = arith.mulf %482, %429 : vector<8x128xf32>
    %492 = arith.mulf %476, %484 : vector<8x128xf32>
    %493 = arith.addf %491, %492 : vector<8x128xf32>
    %494 = math.tanh %493 : vector<8x128xf32>
    %495 = arith.mulf %490, %494 : vector<8x128xf32>
    %496 = arith.truncf %495 : vector<8x128xf32> to vector<8x128xbf16>
    %497 = tpu.concatenate %496, %462 in 1 : vector<8x128xbf16>, vector<8x128xbf16> -> vector<8x256xbf16>
    %c0_137 = arith.constant 0 : index
    %c0_138 = arith.constant 0 : index
    %498 = vector.load %arg5[%c0_137, %c0_138] : memref<256x512xbf16, #tpu.memory_space<vmem>>, vector<256x512xbf16>
    %cst_139 = arith.constant dense<0.000000e+00> : vector<8x512xf32>
    %499 = tpu.matmul %497, %498, %cst_139 {dimension_numbers = #tpu.dot_dimension_numbers<[1], [0], [0], [1], [0, 0, 1, 1], [], []>} : vector<8x256xbf16>, vector<256x512xbf16>, vector<8x512xf32> -> vector<8x512xf32>
    %500 = arith.addf %499, %11 : vector<8x512xf32>
    %501 = vector.extract_strided_slice %500 {offsets = [0, 0], sizes = [8, 128], strides = [1, 1]} : vector<8x512xf32> to vector<8x128xf32>
    %502 = arith.negf %501 : vector<8x128xf32>
    %503 = math.exp %502 : vector<8x128xf32>
    %cst_140 = arith.constant 1.000000e+00 : f32
    %504 = vector.broadcast %cst_140 : f32 to vector<8x128xf32>
    %505 = arith.addf %504, %503 : vector<8x128xf32>
    %506 = arith.divf %504, %505 : vector<8x128xf32>
    %507 = vector.extract_strided_slice %500 {offsets = [0, 128], sizes = [8, 128], strides = [1, 1]} : vector<8x512xf32> to vector<8x128xf32>
    %508 = arith.negf %507 : vector<8x128xf32>
    %509 = math.exp %508 : vector<8x128xf32>
    %cst_141 = arith.constant 1.000000e+00 : f32
    %510 = vector.broadcast %cst_141 : f32 to vector<8x128xf32>
    %511 = arith.addf %510, %509 : vector<8x128xf32>
    %512 = arith.divf %510, %511 : vector<8x128xf32>
    %513 = vector.extract_strided_slice %500 {offsets = [0, 256], sizes = [8, 128], strides = [1, 1]} : vector<8x512xf32> to vector<8x128xf32>
    %514 = math.tanh %513 : vector<8x128xf32>
    %515 = vector.extract_strided_slice %500 {offsets = [0, 384], sizes = [8, 128], strides = [1, 1]} : vector<8x512xf32> to vector<8x128xf32>
    %516 = arith.negf %515 : vector<8x128xf32>
    %517 = math.exp %516 : vector<8x128xf32>
    %cst_142 = arith.constant 1.000000e+00 : f32
    %518 = vector.broadcast %cst_142 : f32 to vector<8x128xf32>
    %519 = arith.addf %518, %517 : vector<8x128xf32>
    %520 = arith.divf %518, %519 : vector<8x128xf32>
    %521 = arith.mulf %512, %459 : vector<8x128xf32>
    %522 = arith.mulf %506, %514 : vector<8x128xf32>
    %523 = arith.addf %521, %522 : vector<8x128xf32>
    %524 = math.tanh %523 : vector<8x128xf32>
    %525 = arith.mulf %520, %524 : vector<8x128xf32>
    %526 = arith.truncf %525 : vector<8x128xf32> to vector<8x128xbf16>
    %c7 = arith.constant 7 : index
    %c0_143 = arith.constant 0 : index
    %c0_144 = arith.constant 0 : index
    %527 = vector.load %arg7[%c7, %c0_143, %c0_144] : memref<8x128x128xbf16, #tpu.memory_space<vmem>>, vector<1x128x128xbf16>
    %528 = vector.shape_cast %527 : vector<1x128x128xbf16> to vector<128x128xbf16>
    %cst_145 = arith.constant dense<0.000000e+00> : vector<8x128xf32>
    %529 = tpu.matmul %526, %528, %cst_145 {dimension_numbers = #tpu.dot_dimension_numbers<[1], [0], [0], [1], [0, 0, 1, 1], [], []>} : vector<8x128xbf16>, vector<128x128xbf16>, vector<8x128xf32> -> vector<8x128xf32>
    %530 = arith.addf %466, %529 : vector<8x128xf32>
    %531 = math.tanh %530 : vector<8x128xf32>
    %532 = arith.truncf %531 : vector<8x128xf32> to vector<8x128xbf16>
    %c0_146 = arith.constant 0 : index
    %c0_147 = arith.constant 0 : index
    %533 = vector.load %arg9[%c0_146, %c0_147] : memref<128x128xbf16, #tpu.memory_space<vmem>>, vector<128x128xbf16>
    %cst_148 = arith.constant dense<0.000000e+00> : vector<8x128xf32>
    %534 = tpu.matmul %532, %533, %cst_148 {dimension_numbers = #tpu.dot_dimension_numbers<[1], [0], [0], [1], [0, 0, 1, 1], [], []>} : vector<8x128xbf16>, vector<128x128xbf16>, vector<8x128xf32> -> vector<8x128xf32>
    %c0_149 = arith.constant 0 : index
    %c0_150 = arith.constant 0 : index
    %535 = vector.load %arg10[%c0_149, %c0_150] : memref<1x128xf32, #tpu.memory_space<vmem>>, vector<1x128xf32>
    %536 = vector.broadcast %535 : vector<1x128xf32> to vector<8x128xf32>
    %537 = arith.addf %534, %536 : vector<8x128xf32>
    %538 = math.tanh %537 : vector<8x128xf32>
    %539 = arith.truncf %538 : vector<8x128xf32> to vector<8x128xbf16>
    %c0_151 = arith.constant 0 : index
    %c0_152 = arith.constant 0 : index
    %540 = vector.load %arg11[%c0_151, %c0_152] : memref<128x128xbf16, #tpu.memory_space<vmem>>, vector<128x128xbf16>
    %cst_153 = arith.constant dense<0.000000e+00> : vector<8x128xf32>
    %541 = tpu.matmul %539, %540, %cst_153 {dimension_numbers = #tpu.dot_dimension_numbers<[1], [0], [0], [1], [0, 0, 1, 1], [], []>} : vector<8x128xbf16>, vector<128x128xbf16>, vector<8x128xf32> -> vector<8x128xf32>
    %c0_154 = arith.constant 0 : index
    %c0_155 = arith.constant 0 : index
    %542 = vector.load %arg12[%c0_154, %c0_155] : memref<1x128xf32, #tpu.memory_space<vmem>>, vector<1x128xf32>
    %543 = vector.broadcast %542 : vector<1x128xf32> to vector<8x128xf32>
    %544 = arith.addf %541, %543 : vector<8x128xf32>
    %545 = math.tanh %544 : vector<8x128xf32>
    %546 = arith.truncf %545 : vector<8x128xf32> to vector<8x128xbf16>
    %c0_156 = arith.constant 0 : index
    %c0_157 = arith.constant 0 : index
    %547 = vector.load %arg13[%c0_156, %c0_157] : memref<128x128xbf16, #tpu.memory_space<vmem>>, vector<128x128xbf16>
    %cst_158 = arith.constant dense<0.000000e+00> : vector<8x128xf32>
    %548 = tpu.matmul %546, %547, %cst_158 {dimension_numbers = #tpu.dot_dimension_numbers<[1], [0], [0], [1], [0, 0, 1, 1], [], []>} : vector<8x128xbf16>, vector<128x128xbf16>, vector<8x128xf32> -> vector<8x128xf32>
    %c0_159 = arith.constant 0 : index
    %c0_160 = arith.constant 0 : index
    %549 = vector.load %arg14[%c0_159, %c0_160] : memref<1x128xf32, #tpu.memory_space<vmem>>, vector<1x128xf32>
    %550 = vector.broadcast %549 : vector<1x128xf32> to vector<8x128xf32>
    %551 = arith.addf %548, %550 : vector<8x128xf32>
    %552 = tpu.iota {dimensions = array<i32: 1>} : vector<8x128xi32>
    %c10_i32 = arith.constant 10 : i32
    %553 = vector.broadcast %c10_i32 : i32 to vector<8x128xi32>
    %554 = arith.cmpi slt, %552, %553 : vector<8x128xi32>
    %c70_i32 = arith.constant 70 : i32
    %555 = vector.broadcast %c70_i32 : i32 to vector<8x128xi32>
    %556 = arith.cmpi sge, %552, %555 : vector<8x128xi32>
    %c100_i32 = arith.constant 100 : i32
    %557 = vector.broadcast %c100_i32 : i32 to vector<8x128xi32>
    %558 = arith.cmpi slt, %552, %557 : vector<8x128xi32>
    %559 = arith.andi %556, %558 : vector<8x128xi1>
    %cst_161 = arith.constant 0xFF800000 : f32
    %560 = vector.broadcast %cst_161 : f32 to vector<8x128xf32>
    %561 = arith.select %554, %551, %560 : vector<8x128xi1>, vector<8x128xf32>
    %cst_162 = arith.constant dense<0xFF800000> : vector<8xf32>
    %562 = vector.multi_reduction <maximumf>, %561, %cst_162 [1] : vector<8x128xf32> to vector<8xf32>
    %563 = vector.shape_cast %562 : vector<8xf32> to vector<8x1xf32>
    %564 = vector.broadcast %563 : vector<8x1xf32> to vector<8x128xf32>
    %565 = arith.subf %551, %564 : vector<8x128xf32>
    %566 = math.exp %565 : vector<8x128xf32>
    %cst_163 = arith.constant 0.000000e+00 : f32
    %567 = vector.broadcast %cst_163 : f32 to vector<8x128xf32>
    %568 = arith.select %554, %566, %567 : vector<8x128xi1>, vector<8x128xf32>
    %cst_164 = arith.constant dense<0.000000e+00> : vector<8xf32>
    %569 = vector.multi_reduction <add>, %568, %cst_164 [1] : vector<8x128xf32> to vector<8xf32>
    %570 = vector.shape_cast %569 : vector<8xf32> to vector<8x1xf32>
    %571 = tpu.reciprocal %570 {approx = true} : vector<8x1xf32> -> vector<8x1xf32>
    %572 = vector.broadcast %571 : vector<8x1xf32> to vector<8x128xf32>
    %573 = arith.mulf %568, %572 : vector<8x128xf32>
    %574 = math.exp %551 : vector<8x128xf32>
    %575 = arith.select %559, %574, %551 : vector<8x128xi1>, vector<8x128xf32>
    %576 = arith.select %554, %573, %575 : vector<8x128xi1>, vector<8x128xf32>
    %c0_165 = arith.constant 0 : index
    %c0_166 = arith.constant 0 : index
    %577 = vector.load %arg15[%c0_165, %c0_166] : memref<8x128xf32, #tpu.memory_space<vmem>>, vector<8x128xf32>
    tpu.vector_store %arg15[%c0_165, %c0_166], %576 {strides = array<i32>} : memref<8x128xf32, #tpu.memory_space<vmem>>, vector<8x128xf32>,
    return
  }
  func.func @transform_0(%arg0: i32) -> (i32, i32, i32) {
    %c0_i32 = arith.constant 0 : i32
    %c0_i32_0 = arith.constant 0 : i32
    %c0_i32_1 = arith.constant 0 : i32
    return %arg0, %c0_i32, %c0_i32_0 : i32, i32, i32
  }
  func.func @transform_1(%arg0: i32) -> (i32, i32) {
    %c0_i32 = arith.constant 0 : i32
    %c0_i32_0 = arith.constant 0 : i32
    %c0_i32_1 = arith.constant 0 : i32
    return %c0_i32, %c0_i32_0 : i32, i32
  }
  func.func @transform_2(%arg0: i32) -> (i32, i32) {
    %c0_i32 = arith.constant 0 : i32
    %c0_i32_0 = arith.constant 0 : i32
    %c0_i32_1 = arith.constant 0 : i32
    return %c0_i32, %c0_i32_0 : i32, i32
  }
  func.func @transform_3(%arg0: i32) -> (i32, i32) {
    %c0_i32 = arith.constant 0 : i32
    %c0_i32_0 = arith.constant 0 : i32
    %c0_i32_1 = arith.constant 0 : i32
    return %c0_i32, %c0_i32_0 : i32, i32
  }
  func.func @transform_4(%arg0: i32) -> (i32, i32) {
    %c0_i32 = arith.constant 0 : i32
    %c0_i32_0 = arith.constant 0 : i32
    %c0_i32_1 = arith.constant 0 : i32
    return %c0_i32, %c0_i32_0 : i32, i32
  }
  func.func @transform_5(%arg0: i32) -> (i32, i32) {
    %c0_i32 = arith.constant 0 : i32
    %c0_i32_0 = arith.constant 0 : i32
    %c0_i32_1 = arith.constant 0 : i32
    return %c0_i32, %c0_i32_0 : i32, i32
  }
  func.func @transform_6(%arg0: i32) -> (i32, i32, i32) {
    %c0_i32 = arith.constant 0 : i32
    %c0_i32_0 = arith.constant 0 : i32
    %c0_i32_1 = arith.constant 0 : i32
    %c0_i32_2 = arith.constant 0 : i32
    return %c0_i32, %c0_i32_0, %c0_i32_1 : i32, i32, i32
  }
  func.func @transform_7(%arg0: i32) -> (i32, i32) {
    %c0_i32 = arith.constant 0 : i32
    %c0_i32_0 = arith.constant 0 : i32
    %c0_i32_1 = arith.constant 0 : i32
    return %c0_i32, %c0_i32_0 : i32, i32
  }
  func.func @transform_8(%arg0: i32) -> (i32, i32) {
    %c0_i32 = arith.constant 0 : i32
    %c0_i32_0 = arith.constant 0 : i32
    %c0_i32_1 = arith.constant 0 : i32
    return %c0_i32, %c0_i32_0 : i32, i32
  }
  func.func @transform_9(%arg0: i32) -> (i32, i32) {
    %c0_i32 = arith.constant 0 : i32
    %c0_i32_0 = arith.constant 0 : i32
    %c0_i32_1 = arith.constant 0 : i32
    return %c0_i32, %c0_i32_0 : i32, i32
  }
  func.func @transform_10(%arg0: i32) -> (i32, i32) {
    %c0_i32 = arith.constant 0 : i32
    %c0_i32_0 = arith.constant 0 : i32
    %c0_i32_1 = arith.constant 0 : i32
    return %c0_i32, %c0_i32_0 : i32, i32
  }
  func.func @transform_11(%arg0: i32) -> (i32, i32) {
    %c0_i32 = arith.constant 0 : i32
    %c0_i32_0 = arith.constant 0 : i32
    %c0_i32_1 = arith.constant 0 : i32
    return %c0_i32, %c0_i32_0 : i32, i32
  }
  func.func @transform_12(%arg0: i32) -> (i32, i32) {
    %c0_i32 = arith.constant 0 : i32
    %c0_i32_0 = arith.constant 0 : i32
    %c0_i32_1 = arith.constant 0 : i32
    return %c0_i32, %c0_i32_0 : i32, i32
  }
  func.func @transform_13(%arg0: i32) -> (i32, i32) {
    %c0_i32 = arith.constant 0 : i32
    %c0_i32_0 = arith.constant 0 : i32
    %c0_i32_1 = arith.constant 0 : i32
    return %c0_i32, %c0_i32_0 : i32, i32
  }
  func.func @transform_14(%arg0: i32) -> (i32, i32) {
    %c0_i32 = arith.constant 0 : i32
    %c0_i32_0 = arith.constant 0 : i32
    return %arg0, %c0_i32 : i32, i32
  }
}

</mosaic_0001>

<bundles_post_ra>
// kernel: mdlstm_forward.1
= control target key start
LH: loop header
LB: loop body
LE: loop exit
PB: predicated region body
PF: predicated region fallthrough
CT: control target
= control target key end

     0   :  { %19 = vsyncpa [#allocation4], 0  ;;  %s7326_s0 = inlined_call_operand.vmem [shape: f32[1,64,4], index: 0, kind: input, shape index: {}]   ;;  %s7327_s1 = inlined_call_operand.vmem [shape: bf16[4,512], index: 1, kind: input, shape index: {}]   ;;  %s7328_s2 = inlined_call_operand.hbm [shape: bf16[128,512], index: 2, kind: input, shape index: {}]   ;;  %s7329_s3 = inlined_call_operand.hbm [shape: f32[1,512], index: 3, kind: input, shape index: {}]   ;;  %s7330_s4 = inlined_call_operand.hbm [shape: bf16[256,512], index: 4, kind: input, shape index: {}]   ;;  %s7331_s5 = inlined_call_operand.vmem [shape: f32[1,512], index: 5, kind: input, shape index: {}]   ;;  %s7332_s6 = inlined_call_operand.hbm [shape: bf16[8,128,128], index: 6, kind: input, shape index: {}]   ;;  %s7333_s7 = inlined_call_operand.vmem [shape: f32[1,128], index: 7, kind: input, shape index: {}]   ;;  %s7334_s8 = inlined_call_operand.vmem [shape: bf16[128,128], index: 8, kind: input, shape index: {}]   ;;  %s7335_s9 = inlined_call_operand.vmem [shape: f32[1,128], index: 9, kind: input, shape index: {}]   ;;  %s7336_s10 = inlined_call_operand.vmem [shape: bf16[128,128], index: 10, kind: input, shape index: {}]   ;;  %s7337_s11 = inlined_call_operand.vmem [shape: f32[1,128], index: 11, kind: input, shape index: {}]   ;;  %s7338_s12 = inlined_call_operand.hbm [shape: bf16[128,128], index: 12, kind: input, shape index: {}]   ;;  %s7339_s13 = inlined_call_operand.vmem [shape: f32[1,128], index: 13, kind: input, shape index: {}]   ;;  %s7340_s14 = inlined_call_operand.vmem [shape: f32[8,128], index: 14, kind: output, shape index: {}]  }
   0x1   :  { %20 = vsyncpa [#allocation6], 0 }
   0x2   :  { %21 = vsyncpa [#allocation9], 0  ;;  %s5412_s29 = smov [#allocation5]   ;;  %s5413_s15 = smov [#allocation8]  }
   0x3   :  { %s44_s30 = sshll.u32 %s5412_s29, 4  ;;  %s67_s16 = sshll.u32 %s5413_s15, 4  ;;  %s45_s30 = int_to_ptr.vmem [resolvable:$true] %s44_s30  ;;  %s5500_s16 = int_to_ptr.vmem [resolvable:$true] %s67_s16 }
   0x4   :  { %s5296_s19 = scalar_lea.hbm %s7329_s3, 64 }
   0x5   :  { %p5297_p0 = scmp.ne.s32.totalorder %s7329_s3, %s5296_s19  ;;  %p5300_p1 = scmp.lt.u32.totalorder %s5296_s19, %s7329_s3 }
   0x7   :  { %p5302_p2 = pnand %p5300_p1, %p5297_p0 }
   0x9   :  { %5305 = shalt.err (!%p5302_p2)
}
   0xa   :  { %s5306_s24 = scalar_lea.vmem %s45_s30, 64  ;;  %p5311_p4 = scmp.lt.s32.totalorder %s45_s30, %s45_s30 }
   0xb   :  { %p5307_p3 = scmp.ne.s32.totalorder %s45_s30, %s5306_s24  ;;  %p5312_p5 = scmp.lt.s32.totalorder %s5306_s24, %s5306_s24 }
   0xd   :  { %p5313_p6 = por %p5312_p5, %p5311_p4 }
   0xf   :  { %p5314_p7 = pnand %p5313_p6, %p5307_p3 }
  0x11   :  { %5317 = shalt.err (!%p5314_p7)
}
  0x12   :  { %47 = dma.hbm_to_vmem [thread:$0]  %s7329_s3, 64, %s45_s30, [#allocation6]  }
  0x13   :  { %s5318_s29 = scalar_lea.hbm %s7332_s6, 8192 }
  0x14   :  { %p5319_p8 = scmp.ne.s32.totalorder %s7332_s6, %s5318_s29  ;;  %p5322_p9 = scmp.lt.u32.totalorder %s5318_s29, %s7332_s6 }
  0x16   :  { %p5324_p10 = pnand %p5322_p9, %p5319_p8 }
  0x18   :  { %5327 = shalt.err (!%p5324_p10)
}
  0x19   :  { %s5328_s20 = scalar_lea.vmem %s5500_s16, 8192  ;;  %p5333_p12 = scmp.lt.s32.totalorder %s5500_s16, %s5500_s16 }
  0x1a   :  { %p5329_p11 = scmp.ne.s32.totalorder %s5500_s16, %s5328_s20  ;;  %p5334_p13 = scmp.lt.s32.totalorder %s5328_s20, %s5328_s20 }
  0x1c   :  { %p5335_p0 = por %p5334_p13, %p5333_p12 }
  0x1e   :  { %p5336_p1 = pnand %p5335_p0, %p5329_p11 }
  0x20   :  { %5339 = shalt.err (!%p5336_p1)
}
  0x21   :  { %s5414_s3 = smov 64   ;;  %s5415_s30 = smov 4  }
  0x22   :  { %73 = dma.hbm_to_vmem [thread:$0]  %s7332_s6, 8192, %s5500_s16, [#allocation9], %s5414_s3, %s5414_s3, %s5415_s30  }
  0x23   :  { %s5416_s23 = smov [#allocation3]   ;;  %s5340_s27 = scalar_lea.hbm %s7328_s2, 4096 }
  0x24   :  { %s31_s24 = sshll.u32 %s5416_s23, 4  ;;  %p5341_p2 = scmp.ne.s32.totalorder %s7328_s2, %s5340_s27  ;;  %s32_s24 = int_to_ptr.vmem [resolvable:$true] %s31_s24 }
  0x25   :  { %p5344_p3 = scmp.lt.u32.totalorder %s5340_s27, %s7328_s2 }
  0x27   :  { %p5346_p4 = pnand %p5344_p3, %p5341_p2 }
  0x29   :  { %5349 = shalt.err (!%p5346_p4)
}
  0x2a   :  { %s5350_s18 = scalar_lea.vmem %s32_s24, 4096  ;;  %p5355_p6 = scmp.lt.s32.totalorder %s32_s24, %s32_s24 }
  0x2b   :  { %p5351_p5 = scmp.ne.s32.totalorder %s32_s24, %s5350_s18  ;;  %p5356_p7 = scmp.lt.s32.totalorder %s5350_s18, %s5350_s18 }
  0x2d   :  { %p5357_p8 = por %p5356_p7, %p5355_p6 }
  0x2f   :  { %p5358_p9 = pnand %p5357_p8, %p5351_p5 }
  0x31   :  { %5361 = shalt.err (!%p5358_p9)
}
  0x32   :  { %s5417_s6 = smov 256   ;;  %s5418_s16 = smov 16  }
  0x33   :  { %37 = dma.hbm_to_vmem [thread:$0]  %s7328_s2, 4096, %s32_s24, [#allocation4], %s5417_s6, %s5417_s6, %s5418_s16  }
  0x34   :  { %s5419_s21 = smov [#allocation7]   ;;  %s5420_s23 = smov [#allocation10]  }
  0x35   :  { %s53_s22 = sshll.u32 %s5419_s21, 4  ;;  %s89_s25 = sshll.u32 %s5420_s23, 4  ;;  %s54_s22 = int_to_ptr.vmem [resolvable:$true] %s53_s22  ;;  %s90_s25 = int_to_ptr.vmem [resolvable:$true] %s89_s25 }
  0x36   :  { %s5362_s28 = scalar_lea.hbm %s7330_s4, 8192 }
  0x37   :  { %p5363_p10 = scmp.ne.s32.totalorder %s7330_s4, %s5362_s28  ;;  %p5366_p11 = scmp.lt.u32.totalorder %s5362_s28, %s7330_s4 }
  0x39   :  { %p5368_p12 = pnand %p5366_p11, %p5363_p10 }
  0x3b   :  { %5371 = shalt.err (!%p5368_p12)
}
  0x3c   :  { %s5372_s2 = scalar_lea.vmem %s54_s22, 8192  ;;  %p5377_p0 = scmp.lt.s32.totalorder %s54_s22, %s54_s22 }
  0x3d   :  { %p5373_p13 = scmp.ne.s32.totalorder %s54_s22, %s5372_s2  ;;  %p5378_p1 = scmp.lt.s32.totalorder %s5372_s2, %s5372_s2 }
  0x3f   :  { %p5379_p2 = por %p5378_p1, %p5377_p0 }
  0x41   :  { %p5380_p3 = pnand %p5379_p2, %p5373_p13 }
  0x43   :  { %5383 = shalt.err (!%p5380_p3)
}
  0x44   :  { %59 = dma.hbm_to_vmem [thread:$0]  %s7330_s4, 8192, %s54_s22, [#allocation6], %s5417_s6, %s5417_s6, %s5418_s16  }
  0x45   :  { %s5384_s23 = scalar_lea.hbm %s7338_s12, 1024 }
  0x46   :  { %p5385_p4 = scmp.ne.s32.totalorder %s7338_s12, %s5384_s23  ;;  %p5388_p5 = scmp.lt.u32.totalorder %s5384_s23, %s7338_s12 }
  0x48   :  { %p5390_p6 = pnand %p5388_p5, %p5385_p4 }
  0x4a   :  { %5393 = shalt.err (!%p5390_p6)
}
  0x4b   :  { %s5394_s15 = scalar_lea.vmem %s90_s25, 1024  ;;  %p5399_p8 = scmp.lt.s32.totalorder %s90_s25, %s90_s25 }
  0x4c   :  { %p5395_p7 = scmp.ne.s32.totalorder %s90_s25, %s5394_s15  ;;  %p5400_p9 = scmp.lt.s32.totalorder %s5394_s15, %s5394_s15 }
  0x4e   :  { %p5401_p10 = por %p5400_p9, %p5399_p8 }
  0x50   :  { %p5402_p11 = pnand %p5401_p10, %p5395_p7 }
  0x52   :  { %5405 = shalt.err (!%p5402_p11)
}
  0x53   :  { %95 = dma.hbm_to_vmem [thread:$0]  %s7338_s12, 1024, %s90_s25, [#allocation9], %s5414_s3, %s5414_s3, %s5415_s30  }
  0x54   :  { %5406 = dma.done.wait [#allocation4], 4096  }
  0x55   :  { %5407 = vsyncadd [#allocation4], 4294963200 }
  0x56   :  { %5408 = dma.done.wait [#allocation6], 8256  }
  0x57   :  { %5409 = vsyncadd [#allocation6], 4294959040 }
  0x58   :  { %5410 = dma.done.wait [#allocation9], 9216  }
  0x59   :  { %5411 = vsyncadd [#allocation9], 4294958080  ;;  %v7341_v0 = vlaneseq  ;;  %v5421_v1 = vmov 1983009808   ;;  %v7342_v3 = vmov 0   ;;  %v126_v7 = vld [vmem:[%s7327_s1] sm:$0xff] }
  0x5a   :  { %v152_v2 = vunpack.c.l.s4 %v5421_v1  ;;  %225 = vmatprep.mubr.bf16.mxu0 %v7342_v3  ;;  %298 = vmatprep.mubr.bf16.mxu1 %v7342_v3  ;;  %vm180_vm0 = vcmask 1041408   ;;  %v150_v9 = vcombine.high %v126_v7, %v126_v7  ;;  %v114_v10 = vld [vmem:[%s7326_s0] sm:$0xff]  ;;  %v115_v11 = vld [vmem:[%s7326_s0 + $0x8] sm:$0xff]  ;;  %vm167_vm1 = vcmask 31744   ;;  %v116_v25 = vld [vmem:[%s7326_s0 + $0x10] sm:$0xff] }
  0x5b   :  { %v5576_v4 = vshrl.u32 %v7341_v0, 7  ;;  %v5589_v15 = vld [vmem:[#allocation3 + $0x4] ss:$16 sps:$4 sm:$0xff]   ;;  %v122_v18 = vpack.c.bf16 %v115_v11, %v114_v10  ;;  %v4578_v19 = vld [vmem:[#allocation3 + $0xc] ss:$16 sps:$4 sm:$0xff]   ;;  %vm5424_vm2 = vmmov 0  }
  0x5c   :  { %v153_v5 = vunpack.c.0.s8 %v152_v2  ;;  %v4577_v20 = vld [vmem:[#allocation3] ss:$16 sps:$4 sm:$0xff]   ;;  %v4581_v21 = vld [vmem:[#allocation3 + $0x24] ss:$16 sps:$4 sm:$0xff]   ;;  %v4580_v22 = vld [vmem:[#allocation3 + $0x8] ss:$16 sps:$4 sm:$0xff]  }
  0x5d   :  { %v4583_v23 = vld [vmem:[#allocation3 + $0x20] ss:$16 sps:$4 sm:$0xff]   ;;  %v4584_v24 = vld [vmem:[#allocation3 + $0x2c] ss:$16 sps:$4 sm:$0xff]   ;;  %v4587_v27 = vld [vmem:[#allocation3 + $0x44] ss:$16 sps:$4 sm:$0xff]  }
  0x5e   :  { %v156_v6 = vsub.s32 %v153_v5, %v5576_v4  ;;  %v117_v26 = vld [vmem:[%s7326_s0 + $0x18] sm:$0xff]  ;;  %v4589_v31 = vld [vmem:[#allocation3 + $0x40] ss:$16 sps:$4 sm:$0xff]   ;;  %v4593_v32 = vld [vmem:[#allocation3 + $0x64] ss:$16 sps:$4 sm:$0xff]  }
  0x5f   :  { %v4586_v28 = vld [vmem:[#allocation3 + $0x28] ss:$16 sps:$4 sm:$0xff]   ;;  %v123_v29 = vpack.c.bf16 %v117_v26, %v116_v25  ;;  %v4590_v30 = vld [vmem:[#allocation3 + $0x4c] ss:$16 sps:$4 sm:$0xff]   ;;  %v4595_v35 = vld [vmem:[#allocation3 + $0x60] ss:$16 sps:$4 sm:$0xff]  }
  0x60   :  { %v157_v8 = vrot.slane %v126_v7, %v156_v6  ;;  %v164_v14 = vrot.slane %v150_v9, %v156_v6  ;;  %v4592_v33 = vld [vmem:[#allocation3 + $0x48] ss:$16 sps:$4 sm:$0xff]   ;;  %v4596_v34 = vld [vmem:[#allocation3 + $0x6c] ss:$16 sps:$4 sm:$0xff]   ;;  %v118_v36 = vld [vmem:[%s7326_s0 + $0x20] sm:$0xff] }
  0x61   :  { %v119_v37 = vld [vmem:[%s7326_s0 + $0x28] sm:$0xff]  ;;  %v4599_v38 = vld [vmem:[#allocation3 + $0x84] ss:$16 sps:$4 sm:$0xff]   ;;  %v4601_v41 = vld [vmem:[#allocation3 + $0x80] ss:$16 sps:$4 sm:$0xff]  }
  0x62   :  { %v165_v12 = vcombine.high %v157_v8, %v157_v8  ;;  %v182_v13 = vsel %vm180_vm0, %v157_v8, 0  ;;  %v166_v16 = vcombine.high %v164_v14, %v164_v14  ;;  %v188_v17 = vsel %vm180_vm0, %v164_v14, 0  ;;  %v4598_v39 = vld [vmem:[#allocation3 + $0x68] ss:$16 sps:$4 sm:$0xff]   ;;  %v4602_v42 = vld [vmem:[#allocation3 + $0x8c] ss:$16 sps:$4 sm:$0xff]  }
  0x63   :  { %v124_v40 = vpack.c.bf16 %v119_v37, %v118_v36  ;;  %v4604_v43 = vld [vmem:[#allocation3 + $0x88] ss:$16 sps:$4 sm:$0xff]   ;;  %v4605_v44 = vld [vmem:[#allocation3 + $0xa4] ss:$16 sps:$4 sm:$0xff]   ;;  %v4608_v45 = vld [vmem:[#allocation3 + $0xac] ss:$16 sps:$4 sm:$0xff]  }
  0x64   :  { %3967 = vmatprep.subr.msk.bf16.mxu0 %vm180_vm0, %v165_v12  ;;  %3972 = vmatprep.subr.msk.bf16.mxu1 %vm180_vm0, %v166_v16  ;;  %v4607_v46 = vld [vmem:[#allocation3 + $0xa0] ss:$16 sps:$4 sm:$0xff]   ;;  %v121_v48 = vld [vmem:[%s7326_s0 + $0x38] sm:$0xff]  ;;  %v4611_v49 = vld [vmem:[#allocation3 + $0xc4] ss:$16 sps:$4 sm:$0xff]  }
  0x65   :  { %194 = vmatpush1.bf16.msra.mxu0 %v182_v13  ;;  %267 = vmatpush1.bf16.msra.mxu1 %v188_v17  ;;  %v120_v47 = vld [vmem:[%s7326_s0 + $0x30] sm:$0xff]  ;;  %v4610_v50 = vld [vmem:[#allocation3 + $0xa8] ss:$16 sps:$4 sm:$0xff]   ;;  %v4614_v51 = vld [vmem:[#allocation3 + $0xcc] ss:$16 sps:$4 sm:$0xff]  }
  0x66   :  { %596 = vmatprep.subr.bf16.mxu0 %v5589_v15  ;;  %637 = vmatprep.subr.bf16.mxu1 %v4578_v19  ;;  %v4613_v52 = vld [vmem:[#allocation3 + $0xc0] ss:$16 sps:$4 sm:$0xff]   ;;  %v125_v53 = vpack.c.bf16 %v121_v48, %v120_v47  ;;  %v5625_v54 = vld [vmem:[#allocation3 + $0xe4] ss:$16 sps:$4 sm:$0xff]   ;;  %v4616_v55 = vld [vmem:[#allocation3 + $0xc8] ss:$16 sps:$4 sm:$0xff]  }
  0x67   :  { %v4620_v56 = vld [vmem:[#allocation3 + $0xec] ss:$16 sps:$4 sm:$0xff]   ;;  %v5627_v57 = vld [vmem:[#allocation3 + $0xe0] ss:$16 sps:$4 sm:$0xff]   ;;  %v4622_v58 = vld [vmem:[#allocation3 + $0xe8] ss:$16 sps:$4 sm:$0xff]  }
  0x68   :  { %3968 = vmatmul.mubr.msk.bf16.vlgmr.msra.gmra.mrb[0].mxu0 %vm167_vm1, %v122_v18  ;;  %3973 = vmatmul.mubr.msk.bf16.vlgmr.msra.gmra.mrb[0].mxu1 %vm167_vm1, %v122_v18  ;;  %v5639_v59 = vld [vmem:[#allocation7 + $0xc] ss:$16 sps:$4 sm:$0xff]   ;;  %v5641_v60 = vld [vmem:[#allocation7 + $0x4] ss:$16 sps:$4 sm:$0xff]   ;;  %v5643_v61 = vld [vmem:[#allocation7 + $0x8] ss:$16 sps:$4 sm:$0xff]  }
  0x69   :  { %597 = vmatpush1.bf16.msra.mxu0 %v4577_v20  ;;  %235 = vmatprep.mubr.bf16.mxu0 %v7342_v3  ;;  %v5646_v62 = vld [vmem:[#allocation7] ss:$16 sps:$4 sm:$0xff]   ;;  %v5651_v63 = vld [vmem:[#allocation7 + $0x2c] ss:$16 sps:$4 sm:$0xff]   ;;  %v5653_v1 = vld [vmem:[#allocation7 + $0x24] ss:$16 sps:$4 sm:$0xff]  }
  0x6a   :  { %598 = vmatprep.subr.bf16.mxu0 %v4581_v21  ;;  %638 = vmatpush1.bf16.msra.mxu1 %v4580_v22  ;;  %7553 = vst [vmem:[#allocation14_spill] sm:$0xff] %v5651_v63  ;;  %v5655_v2 = vld [vmem:[#allocation7 + $0x28] ss:$16 sps:$4 sm:$0xff]   ;;  %v5658_v5 = vld [vmem:[#allocation7 + $0x20] ss:$16 sps:$4 sm:$0xff]  }
  0x6b   :  { %308 = vmatprep.mubr.bf16.mxu1 %v7342_v3  ;;  %639 = vmatprep.subr.bf16.mxu1 %v4584_v24  ;;  %7554 = vst [vmem:[#allocation15_spill] sm:$0xff] %v5655_v2  ;;  %v5663_v6 = vld [vmem:[#allocation7 + $0x4c] ss:$16 sps:$4 sm:$0xff]   ;;  %v5665_v7 = vld [vmem:[#allocation7 + $0x44] ss:$16 sps:$4 sm:$0xff]  }
  0x6c   :  { %7555 = vst [vmem:[#allocation16_spill] sm:$0xff] %v5663_v6  ;;  %v5667_v8 = vld [vmem:[#allocation7 + $0x48] ss:$16 sps:$4 sm:$0xff]   ;;  %v5670_v9 = vld [vmem:[#allocation7 + $0x40] ss:$16 sps:$4 sm:$0xff]  }
  0x6d   :  { %599 = vmatpush1.bf16.msra.mxu0 %v4583_v23  ;;  %7556 = vst [vmem:[#allocation17_spill] sm:$0xff] %v5667_v8  ;;  %v5675_v10 = vld [vmem:[#allocation7 + $0x6c] ss:$16 sps:$4 sm:$0xff]   ;;  %v5677_v11 = vld [vmem:[#allocation7 + $0x64] ss:$16 sps:$4 sm:$0xff]  }
  0x6e   :  { %600 = vmatprep.subr.bf16.mxu0 %v4587_v27  ;;  %640 = vmatpush1.bf16.msra.mxu1 %v4586_v28  ;;  %7557 = vst [vmem:[#allocation18_spill] sm:$0xff] %v5675_v10  ;;  %v5679_v12 = vld [vmem:[#allocation7 + $0x68] ss:$16 sps:$4 sm:$0xff]   ;;  %v5682_v13 = vld [vmem:[#allocation7 + $0x60] ss:$16 sps:$4 sm:$0xff]  }
  0x6f   :  { %641 = vmatprep.subr.bf16.mxu1 %v4590_v30  ;;  %7558 = vst [vmem:[#allocation19_spill] sm:$0xff] %v5679_v12  ;;  %v5687_v14 = vld [vmem:[#allocation7 + $0x8c] ss:$16 sps:$4 sm:$0xff]   ;;  %v5689_v16 = vld [vmem:[#allocation7 + $0x84] ss:$16 sps:$4 sm:$0xff]  }
  0x70   :  { %3969 = vmatmul.mubr.msk.bf16.gmra.mrb[4].mxu0 %vm167_vm1, %v123_v29  ;;  %3974 = vmatmul.mubr.msk.bf16.gmra.mrb[4].mxu1 %vm167_vm1, %v123_v29  ;;  %7559 = vst [vmem:[#allocation20_spill] sm:$0xff] %v5687_v14  ;;  %v5691_v17 = vld [vmem:[#allocation7 + $0x88] ss:$16 sps:$4 sm:$0xff]   ;;  %v5696_v18 = vld [vmem:[#allocation7 + $0x80] ss:$16 sps:$4 sm:$0xff]  }
  0x71   :  { %601 = vmatpush1.bf16.msra.mxu0 %v4589_v31  ;;  %245 = vmatprep.mubr.bf16.mxu0 %v7342_v3  ;;  %7560 = vst [vmem:[#allocation21_spill] sm:$0xff] %v5691_v17  ;;  %v5699_v19 = vld [vmem:[#allocation7 + $0xac] ss:$16 sps:$4 sm:$0xff]   ;;  %v5701_v20 = vld [vmem:[#allocation7 + $0xa4] ss:$16 sps:$4 sm:$0xff]  }
  0x72   :  { %602 = vmatprep.subr.bf16.mxu0 %v4593_v32  ;;  %642 = vmatpush1.bf16.msra.mxu1 %v4592_v33  ;;  %7561 = vst [vmem:[#allocation22_spill] sm:$0xff] %v5699_v19  ;;  %v5703_v21 = vld [vmem:[#allocation7 + $0xa8] ss:$16 sps:$4 sm:$0xff]   ;;  %v5706_v22 = vld [vmem:[#allocation7 + $0xa0] ss:$16 sps:$4 sm:$0xff]  }
  0x73   :  { %318 = vmatprep.mubr.bf16.mxu1 %v7342_v3  ;;  %643 = vmatprep.subr.bf16.mxu1 %v4596_v34  ;;  %7562 = vst [vmem:[#allocation23_spill] sm:$0xff] %v5703_v21  ;;  %v5711_v23 = vld [vmem:[#allocation7 + $0xcc] ss:$16 sps:$4 sm:$0xff]   ;;  %v5713_v24 = vld [vmem:[#allocation7 + $0xc4] ss:$16 sps:$4 sm:$0xff]  }
  0x74   :  { %7563 = vst [vmem:[#allocation24_spill] sm:$0xff] %v5711_v23  ;;  %v5715_v25 = vld [vmem:[#allocation7 + $0xc8] ss:$16 sps:$4 sm:$0xff]   ;;  %v5718_v26 = vld [vmem:[#allocation7 + $0xc0] ss:$16 sps:$4 sm:$0xff]  }
  0x75   :  { %603 = vmatpush1.bf16.msra.mxu0 %v4595_v35  ;;  %7564 = vst [vmem:[#allocation25_spill] sm:$0xff] %v5715_v25  ;;  %v5723_v27 = vld [vmem:[#allocation7 + $0xec] ss:$16 sps:$4 sm:$0xff]   ;;  %v5725_v28 = vld [vmem:[#allocation7 + $0xe4] ss:$16 sps:$4 sm:$0xff]  }
  0x76   :  { %604 = vmatprep.subr.bf16.mxu0 %v4599_v38  ;;  %644 = vmatpush1.bf16.msra.mxu1 %v4598_v39  ;;  %7565 = vst [vmem:[#allocation26_spill] sm:$0xff] %v5723_v27  ;;  %v5727_v29 = vld [vmem:[#allocation7 + $0xe8] ss:$16 sps:$4 sm:$0xff]   ;;  %v5730_v30 = vld [vmem:[#allocation7 + $0xe0] ss:$16 sps:$4 sm:$0xff]  }
  0x77   :  { %645 = vmatprep.subr.bf16.mxu1 %v4602_v42  ;;  %7566 = vst [vmem:[#allocation27_spill] sm:$0xff] %v5727_v29  ;;  %v5735_v31 = vld [vmem:[#allocation7 + $0x10c] ss:$16 sps:$4 sm:$0xff]   ;;  %v5737_v32 = vld [vmem:[#allocation7 + $0x104] ss:$16 sps:$4 sm:$0xff]  }
  0x78   :  { %3970 = vmatmul.mubr.msk.bf16.gmra.mrb[8].mxu0 %vm167_vm1, %v124_v40  ;;  %3975 = vmatmul.mubr.msk.bf16.gmra.mrb[8].mxu1 %vm167_vm1, %v124_v40  ;;  %7567 = vst [vmem:[#allocation28_spill] sm:$0xff] %v5735_v31  ;;  %v5739_v33 = vld [vmem:[#allocation7 + $0x108] ss:$16 sps:$4 sm:$0xff]   ;;  %v5742_v34 = vld [vmem:[#allocation7 + $0x100] ss:$16 sps:$4 sm:$0xff]  }
  0x79   :  { %605 = vmatpush1.bf16.msra.mxu0 %v4601_v41  ;;  %255 = vmatprep.mubr.bf16.mxu0 %v7342_v3  ;;  %7568 = vst [vmem:[#allocation29_spill] sm:$0xff] %v5739_v33  ;;  %v5747_v35 = vld [vmem:[#allocation7 + $0x12c] ss:$16 sps:$4 sm:$0xff]   ;;  %v5749_v36 = vld [vmem:[#allocation7 + $0x124] ss:$16 sps:$4 sm:$0xff]  }
  0x7a   :  { %606 = vmatprep.subr.bf16.mxu0 %v4605_v44  ;;  %646 = vmatpush1.bf16.msra.mxu1 %v4604_v43  ;;  %7569 = vst [vmem:[#allocation30_spill] sm:$0xff] %v5747_v35  ;;  %v5751_v37 = vld [vmem:[#allocation7 + $0x128] ss:$16 sps:$4 sm:$0xff]   ;;  %v5754_v38 = vld [vmem:[#allocation7 + $0x120] ss:$16 sps:$4 sm:$0xff]  }
  0x7b   :  { %328 = vmatprep.mubr.bf16.mxu1 %v7342_v3  ;;  %647 = vmatprep.subr.bf16.mxu1 %v4608_v45  ;;  %7570 = vst [vmem:[#allocation31_spill] sm:$0xff] %v5751_v37  ;;  %v5759_v39 = vld [vmem:[#allocation7 + $0x14c] ss:$16 sps:$4 sm:$0xff]   ;;  %v5761_v40 = vld [vmem:[#allocation7 + $0x144] ss:$16 sps:$4 sm:$0xff]  }
  0x7c   :  { %7571 = vst [vmem:[#allocation32_spill] sm:$0xff] %v5759_v39  ;;  %v5763_v41 = vld [vmem:[#allocation7 + $0x148] ss:$16 sps:$4 sm:$0xff]   ;;  %v5766_v42 = vld [vmem:[#allocation7 + $0x140] ss:$16 sps:$4 sm:$0xff]  }
  0x7d   :  { %607 = vmatpush1.bf16.msra.mxu0 %v4607_v46  ;;  %7572 = vst [vmem:[#allocation33_spill] sm:$0xff] %v5763_v41  ;;  %v5771_v43 = vld [vmem:[#allocation7 + $0x16c] ss:$16 sps:$4 sm:$0xff]   ;;  %v5773_v44 = vld [vmem:[#allocation7 + $0x164] ss:$16 sps:$4 sm:$0xff]  }
  0x7e   :  { %608 = vmatprep.subr.bf16.mxu0 %v4611_v49  ;;  %648 = vmatpush1.bf16.msra.mxu1 %v4610_v50  ;;  %7573 = vst [vmem:[#allocation34_spill] sm:$0xff] %v5771_v43  ;;  %v5775_v45 = vld [vmem:[#allocation7 + $0x168] ss:$16 sps:$4 sm:$0xff]   ;;  %v5778_v46 = vld [vmem:[#allocation7 + $0x160] ss:$16 sps:$4 sm:$0xff]  }
  0x7f   :  { %649 = vmatprep.subr.bf16.mxu1 %v4614_v51  ;;  %7574 = vst [vmem:[#allocation35_spill] sm:$0xff] %v5775_v45  ;;  %v5783_v47 = vld [vmem:[#allocation7 + $0x18c] ss:$16 sps:$4 sm:$0xff]   ;;  %v5785_v48 = vld [vmem:[#allocation7 + $0x184] ss:$16 sps:$4 sm:$0xff]  }
  0x80   :  { %3971 = vmatmul.mubr.msk.bf16.gmra.mrb[12].mxu0 %vm167_vm1, %v125_v53  ;;  %3976 = vmatmul.mubr.msk.bf16.gmra.mrb[12].mxu1 %vm167_vm1, %v125_v53  ;;  %7575 = vst [vmem:[#allocation36_spill] sm:$0xff] %v5783_v47  ;;  %v5787_v49 = vld [vmem:[#allocation7 + $0x188] ss:$16 sps:$4 sm:$0xff]   ;;  %v5790_v50 = vld [vmem:[#allocation7 + $0x180] ss:$16 sps:$4 sm:$0xff]  }
  0x81   :  { %609 = vmatpush1.bf16.msra.mxu0 %v4613_v52  ;;  %628 = vmatprep.mubr.bf16.mxu0 %v7342_v3  ;;  %7576 = vst [vmem:[#allocation37_spill] sm:$0xff] %v5787_v49  ;;  %v5792_v51 = vld [vmem:[#allocation7 + $0x1ac] ss:$16 sps:$4 sm:$0xff]   ;;  %v5794_v52 = vld [vmem:[#allocation7 + $0x1a4] ss:$16 sps:$4 sm:$0xff]  }
  0x82   :  { %610 = vmatprep.subr.bf16.mxu0 %v5625_v54  ;;  %650 = vmatpush1.bf16.msra.mxu1 %v4616_v55  ;;  %7577 = vst [vmem:[#allocation38_spill] sm:$0xff] %v5792_v51  ;;  %v5798_v53 = vld [vmem:[#allocation7 + $0x1a8] ss:$16 sps:$4 sm:$0xff]   ;;  %v5802_v55 = vld [vmem:[#allocation7 + $0x1a0] ss:$16 sps:$4 sm:$0xff]  }
  0x83   :  { %669 = vmatprep.mubr.bf16.mxu1 %v7342_v3  ;;  %651 = vmatprep.subr.bf16.mxu1 %v4620_v56  ;;  %7578 = vst [vmem:[#allocation39_spill] sm:$0xff] %v5798_v53  ;;  %v5804_v56 = vld [vmem:[#allocation7 + $0x1cc] ss:$16 sps:$4 sm:$0xff]   ;;  %v5810_v0 = vld [vmem:[#allocation7 + $0x1c8] ss:$16 sps:$4 sm:$0xff]  }
  0x84   :  { %7579 = vst [vmem:[#allocation40_spill] sm:$0xff] %v5804_v56  ;;  %7580 = vst [vmem:[#allocation41_spill] sm:$0xff] %v5810_v0 }
  0x85   :  { %611 = vmatpush1.bf16.msra.mxu0 %v5627_v57 }
  0x86   :  { %652 = vmatpush1.bf16.msra.mxu1 %v4622_v58  ;;  %1091 = vmatprep.subr.bf16.mxu0 %v5641_v60  ;;  %v5807_v58 = vld [vmem:[#allocation7 + $0x1c4] ss:$16 sps:$4 sm:$0xff]  }
  0x87   :  { %1132 = vmatprep.subr.bf16.mxu1 %v5639_v59 }
  0x88   :  { %629 = vmatmul.mubr.bf16.vlgmr.msra.gmra.mrb[16].mxu0 %v7342_v3 }
  0x89   :  { %1123 = vmatprep.mubr.bf16.mxu0 %v7342_v3  ;;  %670 = vmatmul.mubr.bf16.vlgmr.msra.gmra.mrb[16].mxu1 %v7342_v3 }
  0x8a   :  { %1164 = vmatprep.mubr.bf16.mxu1 %v7342_v3  ;;  %1133 = vmatpush1.bf16.msra.mxu1 %v5643_v61  ;;  %v5814_v3 = vld [vmem:[#allocation7 + $0x1c0] ss:$16 sps:$4 sm:$0xff]  }
  0x8b   :  { %1092 = vmatpush1.bf16.msra.mxu0 %v5646_v62  ;;  %1134 = vmatprep.subr.bf16.mxu1 %v5651_v63 }
  0x8c   :  { %1093 = vmatprep.subr.bf16.mxu0 %v5653_v1 }
  0x8e   :  { %1135 = vmatpush1.bf16.msra.mxu1 %v5655_v2 }
  0x8f   :  { %1094 = vmatpush1.bf16.msra.mxu0 %v5658_v5  ;;  %1136 = vmatprep.subr.bf16.mxu1 %v5663_v6 }
  0x90   :  { %1095 = vmatprep.subr.bf16.mxu0 %v5665_v7 }
  0x92   :  { %1137 = vmatpush1.bf16.msra.mxu1 %v5667_v8 }
  0x93   :  { %1096 = vmatpush1.bf16.msra.mxu0 %v5670_v9  ;;  %1138 = vmatprep.subr.bf16.mxu1 %v5675_v10 }
  0x94   :  { %1097 = vmatprep.subr.bf16.mxu0 %v5677_v11 }
  0x96   :  { %1139 = vmatpush1.bf16.msra.mxu1 %v5679_v12 }
  0x97   :  { %1098 = vmatpush1.bf16.msra.mxu0 %v5682_v13  ;;  %1140 = vmatprep.subr.bf16.mxu1 %v5687_v14 }
  0x98   :  { %1099 = vmatprep.subr.bf16.mxu0 %v5689_v16 }
  0x9a   :  { %1141 = vmatpush1.bf16.msra.mxu1 %v5691_v17 }
  0x9b   :  { %1100 = vmatpush1.bf16.msra.mxu0 %v5696_v18  ;;  %1142 = vmatprep.subr.bf16.mxu1 %v5699_v19 }
  0x9c   :  { %1101 = vmatprep.subr.bf16.mxu0 %v5701_v20 }
  0x9e   :  { %1143 = vmatpush1.bf16.msra.mxu1 %v5703_v21 }
  0x9f   :  { %1102 = vmatpush1.bf16.msra.mxu0 %v5706_v22  ;;  %1144 = vmatprep.subr.bf16.mxu1 %v5711_v23 }
  0xa0   :  { %1103 = vmatprep.subr.bf16.mxu0 %v5713_v24 }
  0xa2   :  { %1145 = vmatpush1.bf16.msra.mxu1 %v5715_v25 }
  0xa3   :  { %1104 = vmatpush1.bf16.msra.mxu0 %v5718_v26  ;;  %1146 = vmatprep.subr.bf16.mxu1 %v5723_v27 }
  0xa4   :  { %1105 = vmatprep.subr.bf16.mxu0 %v5725_v28 }
  0xa6   :  { %1147 = vmatpush1.bf16.msra.mxu1 %v5727_v29 }
  0xa7   :  { %1106 = vmatpush1.bf16.msra.mxu0 %v5730_v30  ;;  %1148 = vmatprep.subr.bf16.mxu1 %v5735_v31 }
  0xa8   :  { %1107 = vmatprep.subr.bf16.mxu0 %v5737_v32 }
  0xaa   :  { %1149 = vmatpush1.bf16.msra.mxu1 %v5739_v33 }
  0xab   :  { %1108 = vmatpush1.bf16.msra.mxu0 %v5742_v34  ;;  %1150 = vmatprep.subr.bf16.mxu1 %v5747_v35 }
  0xac   :  { %1109 = vmatprep.subr.bf16.mxu0 %v5749_v36 }
  0xae   :  { %1151 = vmatpush1.bf16.msra.mxu1 %v5751_v37 }
  0xaf   :  { %1110 = vmatpush1.bf16.msra.mxu0 %v5754_v38  ;;  %1152 = vmatprep.subr.bf16.mxu1 %v5759_v39 }
  0xb0   :  { %1111 = vmatprep.subr.bf16.mxu0 %v5761_v40 }
  0xb2   :  { %1153 = vmatpush1.bf16.msra.mxu1 %v5763_v41  ;;  %v7393_v41 = vsub.s32 3, %v5576_v4 }
  0xb3   :  { %1112 = vmatpush1.bf16.msra.mxu0 %v5766_v42  ;;  %1154 = vmatprep.subr.bf16.mxu1 %v5771_v43  ;;  %v7388_v43 = vsub.s32 1, %v5576_v4 }
  0xb4   :  { %1113 = vmatprep.subr.bf16.mxu0 %v5773_v44 }
  0xb6   :  { %1155 = vmatpush1.bf16.msra.mxu1 %v5775_v45  ;;  %v127_v45 = vld [vmem:[#allocation5] sm:$0xf] }
  0xb7   :  { %1114 = vmatpush1.bf16.msra.mxu0 %v5778_v46  ;;  %1156 = vmatprep.subr.bf16.mxu1 %v5783_v47  ;;  %v5822_v47 = vld [vmem:[#allocation7 + $0x1e8] ss:$16 sps:$4 sm:$0xff]   ;;  %v136_v37 = vrot.slane %v127_v45, %v7388_v43  ;;  %v5852_v31 = vrot.slane %v127_v45, %v7393_v41 }
  0xb8   :  { %1115 = vmatprep.subr.bf16.mxu0 %v5785_v48  ;;  %7582 = vst [vmem:[#allocation43_spill] sm:$0xff] %v5822_v47 }
  0xba   :  { %1157 = vmatpush1.bf16.msra.mxu1 %v5787_v49  ;;  %v5816_v49 = vld [vmem:[#allocation7 + $0x1ec] ss:$16 sps:$4 sm:$0xff]  }
  0xbb   :  { %1116 = vmatpush1.bf16.msra.mxu0 %v5790_v50  ;;  %1158 = vmatprep.subr.bf16.mxu1 %v5792_v51  ;;  %7581 = vst [vmem:[#allocation42_spill] sm:$0xff] %v5816_v49  ;;  %v5819_v51 = vld [vmem:[#allocation7 + $0x1e4] ss:$16 sps:$4 sm:$0xff]  }
  0xbc   :  { %1117 = vmatprep.subr.bf16.mxu0 %v5794_v52 }
  0xbe   :  { %1159 = vmatpush1.bf16.msra.mxu1 %v5798_v53  ;;  %v5826_v53 = vld [vmem:[#allocation7 + $0x1e0] ss:$16 sps:$4 sm:$0xff]  }
  0xbf   :  { %1118 = vmatpush1.bf16.msra.mxu0 %v5802_v55  ;;  %1160 = vmatprep.subr.bf16.mxu1 %v5804_v56  ;;  %v7378_v56 = vsub.s32 0, %v5576_v4 }
  0xc0   :  { %1119 = vmatprep.subr.bf16.mxu0 %v5807_v58 }
  0xc1   :  { %v5840_v39 = vrot.slane %v127_v45, %v7378_v56 }
  0xc2   :  { %1161 = vmatpush1.bf16.msra.mxu1 %v5810_v0  ;;  %v7385_v0 = vsub.s32 2, %v5576_v4 }
  0xc3   :  { %1120 = vmatpush1.bf16.msra.mxu0 %v5814_v3  ;;  %1162 = vmatprep.subr.bf16.mxu1 %v5816_v49 }
  0xc4   :  { %1121 = vmatprep.subr.bf16.mxu0 %v5819_v51 }
  0xc6   :  { %1163 = vmatpush1.bf16.msra.mxu1 %v5822_v47 }
  0xc7   :  { %1122 = vmatpush1.bf16.msra.mxu0 %v5826_v53  ;;  %1307 = vmatprep.subr.bf16.mxu1 %v5589_v15  ;;  %v5846_v15 = vrot.slane %v127_v45, %v7385_v0 }
 0x13b   :  { %v5836_v49 = vpop.f32.mrb[0].mxu0  ;;  %v300_v33 = vpop.f32.mrb[0].mxu1 }
 0x13c   :  { %v5842_v47 = vpop.f32.mrb[1].mxu0  ;;  %v302_v27 = vpop.f32.mrb[1].mxu1 }
 0x13d   :  { %v231_v35 = vpop.f32.mrb[2].mxu0  ;;  %v304_v23 = vpop.f32.mrb[2].mxu1 }
 0x13e   :  { %v5855_v29 = vadd.f32 %v231_v35, %v5840_v39  ;;  %v233_v56 = vpop.f32.mrb[3].mxu0  ;;  %v5860_v0 = vadd.f32 %v304_v23, %v5846_v15  ;;  %v306_v21 = vpop.f32.mrb[3].mxu1 }
 0x13f   :  { %v5857_v25 = vadd.f32 %v233_v56, %v136_v37  ;;  %v5863_v43 = vadd.f32 %v306_v21, %v5852_v31 }
 0x140   :  { %7583 = vst [vmem:[#allocation44_spill] sm:$0xff] %v5860_v0 }
 0x141   :  { %7584 = vst [vmem:[#allocation45_spill] sm:$0xff] %v5863_v43 }
 0x143   :  { %v237_v19 = vpop.f32.mrb[4].mxu0  ;;  %v310_v14 = vpop.f32.mrb[4].mxu1 }
 0x144   :  { %v5866_v17 = vadd.f32 %v237_v19, %v5840_v39  ;;  %v239_v45 = vpop.f32.mrb[5].mxu0  ;;  %v5874_v23 = vadd.f32 %v310_v14, %v5846_v15  ;;  %v312_v0 = vpop.f32.mrb[5].mxu1 }
 0x145   :  { %v5868_v41 = vadd.f32 %v239_v45, %v136_v37  ;;  %v241_v35 = vpop.f32.mrb[6].mxu0  ;;  %v5879_v21 = vadd.f32 %v312_v0, %v5852_v31  ;;  %v314_v19 = vpop.f32.mrb[6].mxu1 }
 0x146   :  { %7585 = vst [vmem:[#allocation46_spill] sm:$0xff] %v5866_v17  ;;  %v5871_v56 = vadd.f32 %v241_v35, %v5840_v39  ;;  %v243_v12 = vpop.f32.mrb[7].mxu0  ;;  %7588 = vst [vmem:[#allocation49_spill] sm:$0xff] %v5874_v23  ;;  %v5882_v17 = vadd.f32 %v314_v19, %v5846_v15  ;;  %v316_v45 = vpop.f32.mrb[7].mxu1 }
 0x147   :  { %7586 = vst [vmem:[#allocation47_spill] sm:$0xff] %v5868_v41  ;;  %v5876_v10 = vadd.f32 %v243_v12, %v136_v37  ;;  %7590 = vst [vmem:[#allocation51_spill] sm:$0xff] %v5879_v21  ;;  %v5885_v41 = vadd.f32 %v316_v45, %v5852_v31 }
 0x148   :  { %7587 = vst [vmem:[#allocation48_spill] sm:$0xff] %v5871_v56  ;;  %7591 = vst [vmem:[#allocation52_spill] sm:$0xff] %v5882_v17 }
 0x149   :  { %7589 = vst [vmem:[#allocation50_spill] sm:$0xff] %v5876_v10  ;;  %7592 = vst [vmem:[#allocation53_spill] sm:$0xff] %v5885_v41 }
 0x14b   :  { %v247_v35 = vpop.f32.mrb[8].mxu0  ;;  %v320_v10 = vpop.f32.mrb[8].mxu1 }
 0x14c   :  { %v5888_v56 = vadd.f32 %v247_v35, %v5840_v39  ;;  %v249_v14 = vpop.f32.mrb[9].mxu0  ;;  %v5896_v19 = vadd.f32 %v320_v10, %v5846_v15  ;;  %v322_v17 = vpop.f32.mrb[9].mxu1 }
 0x14d   :  { %v5890_v23 = vadd.f32 %v249_v14, %v136_v37  ;;  %v251_v12 = vpop.f32.mrb[10].mxu0  ;;  %v5901_v45 = vadd.f32 %v322_v17, %v5852_v31  ;;  %v324_v35 = vpop.f32.mrb[10].mxu1 }
 0x14e   :  { %7593 = vst [vmem:[#allocation54_spill] sm:$0xff] %v5888_v56  ;;  %v5893_v0 = vadd.f32 %v251_v12, %v5840_v39  ;;  %v253_v21 = vpop.f32.mrb[11].mxu0  ;;  %7596 = vst [vmem:[#allocation57_spill] sm:$0xff] %v5896_v19  ;;  %v5904_v56 = vadd.f32 %v324_v35, %v5846_v15  ;;  %v326_v14 = vpop.f32.mrb[11].mxu1 }
 0x14f   :  { %7594 = vst [vmem:[#allocation55_spill] sm:$0xff] %v5890_v23  ;;  %v5898_v43 = vadd.f32 %v253_v21, %v136_v37  ;;  %7598 = vst [vmem:[#allocation59_spill] sm:$0xff] %v5901_v45  ;;  %v5907_v23 = vadd.f32 %v326_v14, %v5852_v31 }
 0x150   :  { %7595 = vst [vmem:[#allocation56_spill] sm:$0xff] %v5893_v0  ;;  %7599 = vst [vmem:[#allocation60_spill] sm:$0xff] %v5904_v56 }
 0x151   :  { %7597 = vst [vmem:[#allocation58_spill] sm:$0xff] %v5898_v43  ;;  %7600 = vst [vmem:[#allocation61_spill] sm:$0xff] %v5907_v23 }
 0x153   :  { %v257_v12 = vpop.f32.mrb[12].mxu0  ;;  %v330_v43 = vpop.f32.mrb[12].mxu1 }
 0x154   :  { %v5910_v0 = vadd.f32 %v257_v12, %v5840_v39  ;;  %v259_v10 = vpop.f32.mrb[13].mxu0  ;;  %v5918_v35 = vadd.f32 %v330_v43, %v5846_v15  ;;  %v332_v56 = vpop.f32.mrb[13].mxu1  ;;  %v230_v43 = vadd.f32 %v5842_v47, %v136_v37 }
 0x155   :  { %v5912_v19 = vadd.f32 %v259_v10, %v136_v37  ;;  %v261_v21 = vpop.f32.mrb[14].mxu0  ;;  %v5923_v14 = vadd.f32 %v332_v56, %v5852_v31  ;;  %v334_v12 = vpop.f32.mrb[14].mxu1  ;;  %v303_v56 = vadd.f32 %v302_v27, %v5852_v31 }
 0x156   :  { %7601 = vst [vmem:[#allocation62_spill] sm:$0xff] %v5910_v0  ;;  %v5915_v17 = vadd.f32 %v261_v21, %v5840_v39  ;;  %v263_v45 = vpop.f32.mrb[15].mxu0  ;;  %7604 = vst [vmem:[#allocation65_spill] sm:$0xff] %v5918_v35  ;;  %v5926_v0 = vadd.f32 %v334_v12, %v5846_v15  ;;  %v336_v10 = vpop.f32.mrb[15].mxu1  ;;  %v228_v21 = vadd.f32 %v5836_v49, %v5840_v39 }
 0x157   :  { %7602 = vst [vmem:[#allocation63_spill] sm:$0xff] %v5912_v19  ;;  %v5920_v41 = vadd.f32 %v263_v45, %v136_v37  ;;  %7606 = vst [vmem:[#allocation67_spill] sm:$0xff] %v5923_v14  ;;  %v5929_v19 = vadd.f32 %v336_v10, %v5852_v31  ;;  %v301_v45 = vadd.f32 %v300_v33, %v5846_v15 }
 0x158   :  { %7603 = vst [vmem:[#allocation64_spill] sm:$0xff] %v5915_v17  ;;  %7607 = vst [vmem:[#allocation68_spill] sm:$0xff] %v5926_v0 }
 0x159   :  { %7605 = vst [vmem:[#allocation66_spill] sm:$0xff] %v5920_v41  ;;  %7608 = vst [vmem:[#allocation69_spill] sm:$0xff] %v5929_v19 }
 0x15b   :  { %v630_v17 = vpop.f32.mrb[16].mxu0 }
 0x15c   :  { %v678_v41 = vadd.f32 %v630_v17, %v228_v21  ;;  %v632_v35 = vpop.f32.mrb[17].mxu0  ;;  %v671_v12 = vpop.f32.mrb[16].mxu1  ;;  %v7609_v21 = vmov 0  }
 0x15d   :  { %v679_v14 = vadd.f32 %v632_v35, %v230_v43  ;;  %v634_v23 = vpop.f32.mrb[18].mxu0  ;;  %v680_v8 = vadd.f32 %v671_v12, %v301_v45  ;;  %v673_v10 = vpop.f32.mrb[17].mxu1  ;;  %v5947_v43 = vld [vmem:[#allocation3 + $0x24] ss:$16 sps:$4 sm:$0xff]   ;;  %v5950_v45 = vld [vmem:[#allocation3 + $0x20] ss:$16 sps:$4 sm:$0xff]  }
 0x15e   :  { %v4010_v0 = vmul.f32 -1.442695, %v678_v41  ;;  %v635_v6 = vpop.f32.mrb[19].mxu0  ;;  %v681_v2 = vadd.f32 %v673_v10, %v303_v56  ;;  %v675_v63 = vpop.f32.mrb[18].mxu1  ;;  %v5953_v56 = vld [vmem:[#allocation3 + $0x44] ss:$16 sps:$4 sm:$0xff]  }
 0x15f   :  { %v4011_v19 = vmul.f32 -1.442695, %v679_v14  ;;  %v676_v39 = vpop.f32.mrb[19].mxu1  ;;  %v5956_v12 = vld [vmem:[#allocation3 + $0x40] ss:$16 sps:$4 sm:$0xff]  }
 0x160   :  { %4807 = vpow2.f32 %v4010_v0  ;;  %v4012_v37 = vmul.f32 -1.442695, %v681_v2  ;;  %v5959_v10 = vld [vmem:[#allocation3 + $0x64] ss:$16 sps:$4 sm:$0xff]   ;;  %v5962_v39 = vld [vmem:[#allocation3 + $0x60] ss:$16 sps:$4 sm:$0xff]  }
 0x161   :  { %4809 = vpow2.f32 %v4011_v19 }
 0x162   :  { %4811 = vpow2.f32 %v4012_v37  ;;  %v5965_v37 = vld [vmem:[#allocation3 + $0x84] ss:$16 sps:$4 sm:$0xff]  }
 0x163   :  { %4813 = vtanh.f32 %v680_v8  ;;  %v5943_v8 = vld [vmem:[#allocation3] ss:$16 sps:$4 sm:$0xff]  }
 0x16a   :  { %v4808_v47 = vpop.eup %4807 }
 0x16b   :  { %v4810_v33 = vpop.eup %4809  ;;  %v685_v49 = vadd.f32 1.0, %v4808_v47  ;;  %v5968_v47 = vld [vmem:[#allocation3 + $0x80] ss:$16 sps:$4 sm:$0xff]  }
 0x16c   :  { %v691_v15 = vadd.f32 1.0, %v4810_v33  ;;  %v4812_v27 = vpop.eup %4811  ;;  %v5971_v33 = vld [vmem:[#allocation3 + $0xa4] ss:$16 sps:$4 sm:$0xff]  }
 0x16d   :  { %4815 = vrcp.f32 %v685_v49  ;;  %v4814_v31 = vpop.eup %4813  ;;  %v698_v17 = vadd.f32 1.0, %v4812_v27  ;;  %v5974_v49 = vld [vmem:[#allocation3 + $0xa0] ss:$16 sps:$4 sm:$0xff]  }
 0x16e   :  { %4817 = vrcp.f32 %v691_v15  ;;  %v5977_v15 = vld [vmem:[#allocation3 + $0xc4] ss:$16 sps:$4 sm:$0xff]   ;;  %v5980_v27 = vld [vmem:[#allocation3 + $0xc0] ss:$16 sps:$4 sm:$0xff]  }
 0x16f   :  { %4819 = vrcp.f32 %v698_v17 }
 0x177   :  { %v4816_v41 = vpop.eup %4815 }
 0x178   :  { %v4818_v6 = vpop.eup %4817  ;;  %v702_v23 = vmul.f32 %v4816_v41, %v4814_v31 }
 0x179   :  { %v701_v35 = vmul.f32 0.0, %v4818_v6  ;;  %v4820_v2 = vpop.eup %4819 }
 0x17b   :  { %v5936_v63 = vadd.f32 %v702_v23, %v701_v35 }
 0x17d   :  { %4821 = vtanh.f32 %v5936_v63 }
 0x187   :  { %v4822_v0 = vpop.eup %4821 }
 0x188   :  { %v705_v19 = vmul.f32 %v4822_v0, %v4820_v2 }
 0x18a   :  { %v5939_v14 = vpack.c.bf16 %v705_v19, %v705_v19 }
 0x18c   :  { %1124 = vmatmul.mubr.bf16.vlgmr.msra.gmra.mrb[20].mxu0 %v5939_v14  ;;  %1165 = vmatmul.mubr.bf16.vlgmr.msra.gmra.mrb[20].mxu1 %v5939_v14 }
 0x18d   :  { %1308 = vmatpush1.bf16.msra.mxu1 %v5943_v8  ;;  %1339 = vmatprep.mubr.bf16.mxu1 %v7609_v21 }
 0x18e   :  { %1309 = vmatprep.subr.bf16.mxu1 %v5947_v43 }
 0x191   :  { %1310 = vmatpush1.bf16.msra.mxu1 %v5950_v45 }
 0x192   :  { %1311 = vmatprep.subr.bf16.mxu1 %v5953_v56 }
 0x195   :  { %1312 = vmatpush1.bf16.msra.mxu1 %v5956_v12 }
 0x196   :  { %1313 = vmatprep.subr.bf16.mxu1 %v5959_v10 }
 0x199   :  { %1314 = vmatpush1.bf16.msra.mxu1 %v5962_v39 }
 0x19a   :  { %1315 = vmatprep.subr.bf16.mxu1 %v5965_v37 }
 0x19d   :  { %1316 = vmatpush1.bf16.msra.mxu1 %v5968_v47 }
 0x19e   :  { %1317 = vmatprep.subr.bf16.mxu1 %v5971_v33 }
 0x1a1   :  { %1318 = vmatpush1.bf16.msra.mxu1 %v5974_v49 }
 0x1a2   :  { %1319 = vmatprep.subr.bf16.mxu1 %v5977_v15 }
 0x1a5   :  { %1320 = vmatpush1.bf16.msra.mxu1 %v5980_v27 }
 0x1a6   :  { %1321 = vmatprep.subr.bf16.mxu1 %v5625_v54  ;;  %v6018_v54 = vld [vmem:[#allocation3 + $0x4] ss:$16 sps:$4 sm:$0xff]  }
 0x1a7   :  { %7610 = vst [vmem:[#allocation70_spill] sm:$0xff] %v6018_v54 }
 0x1a9   :  { %1322 = vmatpush1.bf16.msra.mxu1 %v5627_v57  ;;  %v4719_v57 = vld [vmem:[#allocation8] sm:$0xff]  }
 0x1aa   :  { %1418 = vmatprep.subr.bf16.mxu1 %v5641_v60  ;;  %v7408_v60 = vmov 0.0  }
 0x1ab   :  { %4312 = vmatprep.subr.bf16.mxu0 %v7408_v60  ;;  %4328 = vmatprep.mubr.msk.bf16.mxu0 %vm5424_vm2, %v7408_v60 }
 0x1ac   :  { %1340 = vmatmul.mubr.bf16.vlgmr.msra.gmra.mrb[24].mxu1 %v5939_v14  ;;  %4313 = vmatpush3.bf16.msra.mxu0 %v4719_v57 }
 0x1ad   :  { %1419 = vmatpush1.bf16.msra.mxu1 %v5646_v62  ;;  %4314 = vmatprep.subr.bf16.mxu0 %v7408_v60  ;;  %v4720_v62 = vld [vmem:[#allocation8 + $0x8] sm:$0xff]  }
 0x1ae   :  { %1420 = vmatprep.subr.bf16.mxu1 %v5653_v1  ;;  %v4722_v1 = vld [vmem:[#allocation8 + $0x18] sm:$0xff]  }
 0x1b0   :  { %4315 = vmatpush3.bf16.msra.mxu0 %v4720_v62 }
 0x1b1   :  { %1421 = vmatpush1.bf16.msra.mxu1 %v5658_v5  ;;  %4316 = vmatprep.subr.bf16.mxu0 %v7408_v60  ;;  %v4723_v5 = vld [vmem:[#allocation8 + $0x20] sm:$0xff]  }
 0x1b2   :  { %1422 = vmatprep.subr.bf16.mxu1 %v5665_v7  ;;  %v4724_v7 = vld [vmem:[#allocation8 + $0x28] sm:$0xff]  }
 0x1b5   :  { %1423 = vmatpush1.bf16.msra.mxu1 %v5670_v9  ;;  %v4725_v9 = vld [vmem:[#allocation8 + $0x30] sm:$0xff]  }
 0x1b6   :  { %1424 = vmatprep.subr.bf16.mxu1 %v5677_v11  ;;  %v4726_v11 = vld [vmem:[#allocation8 + $0x38] sm:$0xff]  }
 0x1b9   :  { %1425 = vmatpush1.bf16.msra.mxu1 %v5682_v13  ;;  %v6029_v13 = vld [vmem:[#allocation3 + $0xc] ss:$16 sps:$4 sm:$0xff]  }
 0x1ba   :  { %1426 = vmatprep.subr.bf16.mxu1 %v5689_v16  ;;  %v371_v16 = vld [vmem:[%s7331_s5] sm:$0xf] }
 0x1bd   :  { %1427 = vmatpush1.bf16.msra.mxu1 %v5696_v18  ;;  %v7611_v18 = vsub.s32 0, %v5576_v4 }
 0x1be   :  { %1428 = vmatprep.subr.bf16.mxu1 %v5701_v20 }
 0x1bf   :  { %v6039_v20 = vrot.slane %v371_v16, %v7611_v18 }
 0x1c1   :  { %1429 = vmatpush1.bf16.msra.mxu1 %v5706_v22  ;;  %7612 = vst [vmem:[#allocation71_spill] sm:$0xff] %v6039_v20  ;;  %v7613_v22 = vsub.s32 1, %v5576_v4 }
 0x1c2   :  { %1430 = vmatprep.subr.bf16.mxu1 %v5713_v24 }
 0x1c3   :  { %v6043_v24 = vrot.slane %v371_v16, %v7613_v22 }
 0x1c5   :  { %1431 = vmatpush1.bf16.msra.mxu1 %v5718_v26  ;;  %7614 = vst [vmem:[#allocation72_spill] sm:$0xff] %v6043_v24 }
 0x1c6   :  { %1432 = vmatprep.subr.bf16.mxu1 %v5725_v28 }
 0x1c9   :  { %1433 = vmatpush1.bf16.msra.mxu1 %v5730_v30 }
 0x1ca   :  { %1434 = vmatprep.subr.bf16.mxu1 %v5737_v32 }
 0x1cd   :  { %1435 = vmatpush1.bf16.msra.mxu1 %v5742_v34 }
 0x1ce   :  { %1436 = vmatprep.subr.bf16.mxu1 %v5749_v36 }
 0x1d1   :  { %1437 = vmatpush1.bf16.msra.mxu1 %v5754_v38 }
 0x1d2   :  { %1438 = vmatprep.subr.bf16.mxu1 %v5761_v40 }
 0x1d5   :  { %1439 = vmatpush1.bf16.msra.mxu1 %v5766_v42 }
 0x1d6   :  { %1440 = vmatprep.subr.bf16.mxu1 %v5773_v44 }
 0x1d9   :  { %1441 = vmatpush1.bf16.msra.mxu1 %v5778_v46 }
 0x1da   :  { %1442 = vmatprep.subr.bf16.mxu1 %v5785_v48 }
 0x1dd   :  { %1443 = vmatpush1.bf16.msra.mxu1 %v5790_v50  ;;  %v7615_v50 = vsub.s32 3, %v5576_v4 }
 0x1de   :  { %1444 = vmatprep.subr.bf16.mxu1 %v5794_v52 }
 0x1e1   :  { %1445 = vmatpush1.bf16.msra.mxu1 %v5802_v55 }
 0x1e2   :  { %1446 = vmatprep.subr.bf16.mxu1 %v5807_v58 }
 0x1e5   :  { %1447 = vmatpush1.bf16.msra.mxu1 %v5814_v3  ;;  %v4721_v3 = vld [vmem:[#allocation8 + $0x10] sm:$0xff]  }
 0x1e6   :  { %1448 = vmatprep.subr.bf16.mxu1 %v5819_v51  ;;  %4317 = vmatpush3.bf16.msra.mxu0 %v4721_v3  ;;  %v6049_v51 = vrot.slane %v371_v16, %v7615_v50  ;;  %v6103_v50 = vld [vmem:[#allocation3 + $0xc8] ss:$16 sps:$4 sm:$0xff]  }
 0x1e7   :  { %4318 = vmatprep.subr.bf16.mxu0 %v7408_v60  ;;  %7623 = vst [vmem:[#allocation79_spill] sm:$0xff] %v6103_v50 }
 0x1e8   :  { %7616 = vst [vmem:[#allocation73_spill] sm:$0xff] %v6049_v51 }
 0x1e9   :  { %1449 = vmatpush1.bf16.msra.mxu1 %v5826_v53  ;;  %v7617_v53 = vsub.s32 2, %v5576_v4 }
 0x1ea   :  { %1635 = vmatprep.subr.bf16.mxu1 %v6018_v54  ;;  %4319 = vmatpush3.bf16.msra.mxu0 %v4722_v1  ;;  %v7654_v54 = vld [vmem:[#allocation42_spill] sm:$0xff] }
 0x1eb   :  { %4320 = vmatprep.subr.bf16.mxu0 %v7408_v60  ;;  %v6054_v55 = vrot.slane %v371_v16, %v7617_v53  ;;  %v6109_v53 = vld [vmem:[#allocation3 + $0xe8] ss:$16 sps:$4 sm:$0xff]  }
 0x1ec   :  { %7625 = vst [vmem:[#allocation81_spill] sm:$0xff] %v6109_v53 }
 0x1ed   :  { %7618 = vst [vmem:[#allocation74_spill] sm:$0xff] %v6054_v55 }
 0x1ee   :  { %4321 = vmatpush3.bf16.msra.mxu0 %v4723_v5 }
 0x1ef   :  { %4322 = vmatprep.subr.bf16.mxu0 %v7408_v60 }
 0x1f2   :  { %4323 = vmatpush3.bf16.msra.mxu0 %v4724_v7 }
 0x1f3   :  { %4324 = vmatprep.subr.bf16.mxu0 %v7408_v60 }
 0x1f6   :  { %4325 = vmatpush3.bf16.msra.mxu0 %v4725_v9 }
 0x1f7   :  { %4326 = vmatprep.subr.bf16.mxu0 %v7408_v60  ;;  %v7648_v60 = vld [vmem:[#allocation36_spill] sm:$0xff] }
 0x1fa   :  { %4327 = vmatpush3.bf16.msra.mxu0 %v4726_v11 }
 0x1fb   :  { %1348 = vmatprep.subr.bf16.mxu0 %v6029_v13 }
 0x25f   :  { %v1125_v26 = vpop.f32.mrb[20].mxu0  ;;  %v1166_v28 = vpop.f32.mrb[20].mxu1 }
 0x260   :  { %v1126_v30 = vadd.f32 %v1125_v26, %v6039_v20  ;;  %v1127_v32 = vpop.f32.mrb[21].mxu0  ;;  %v1168_v34 = vpop.f32.mrb[21].mxu1  ;;  %v1167_v31 = vadd.f32 %v1166_v28, %v6054_v55  ;;  %v7650_v55 = vld [vmem:[#allocation38_spill] sm:$0xff]  ;;  %v7653_v20 = vld [vmem:[#allocation41_spill] sm:$0xff] }
 0x261   :  { %v1128_v36 = vadd.f32 %v1127_v32, %v6043_v24  ;;  %v1129_v38 = vpop.f32.mrb[22].mxu0  ;;  %v1170_v40 = vpop.f32.mrb[22].mxu1  ;;  %v1169_v52 = vadd.f32 %v1168_v34, %v6049_v51  ;;  %v6076_v32 = vld [vmem:[#allocation3 + $0x4c] ss:$16 sps:$4 sm:$0xff]   ;;  %v6079_v34 = vld [vmem:[#allocation3 + $0x48] ss:$16 sps:$4 sm:$0xff]  }
 0x262   :  { %v4077_v42 = vmul.f32 -1.442695, %v1126_v30  ;;  %v1130_v44 = vpop.f32.mrb[23].mxu0  ;;  %v1171_v46 = vpop.f32.mrb[23].mxu1  ;;  %v6066_v30 = vld [vmem:[#allocation3 + $0x8] ss:$16 sps:$4 sm:$0xff]  }
 0x263   :  { %v4078_v48 = vmul.f32 -1.442695, %v1128_v36  ;;  %v4079_v58 = vmul.f32 -1.442695, %v1169_v52  ;;  %v6082_v36 = vld [vmem:[#allocation3 + $0x6c] ss:$16 sps:$4 sm:$0xff]  }
 0x264   :  { %4823 = vpow2.f32 %v4077_v42  ;;  %v6085_v38 = vld [vmem:[#allocation3 + $0x68] ss:$16 sps:$4 sm:$0xff]   ;;  %v6088_v40 = vld [vmem:[#allocation3 + $0x8c] ss:$16 sps:$4 sm:$0xff]  }
 0x265   :  { %4825 = vpow2.f32 %v4078_v48  ;;  %v6091_v42 = vld [vmem:[#allocation3 + $0x88] ss:$16 sps:$4 sm:$0xff]   ;;  %v6094_v44 = vld [vmem:[#allocation3 + $0xac] ss:$16 sps:$4 sm:$0xff]  }
 0x266   :  { %4827 = vpow2.f32 %v4079_v58  ;;  %7620 = vst [vmem:[#allocation76_spill] sm:$0xff] %v6094_v44  ;;  %v6097_v46 = vld [vmem:[#allocation3 + $0xa8] ss:$16 sps:$4 sm:$0xff]   ;;  %v6100_v48 = vld [vmem:[#allocation3 + $0xcc] ss:$16 sps:$4 sm:$0xff]  }
 0x267   :  { %4829 = vtanh.f32 %v1167_v31  ;;  %7621 = vst [vmem:[#allocation77_spill] sm:$0xff] %v6097_v46  ;;  %7622 = vst [vmem:[#allocation78_spill] sm:$0xff] %v6100_v48  ;;  %v6106_v52 = vld [vmem:[#allocation3 + $0xec] ss:$16 sps:$4 sm:$0xff]   ;;  %v7626_v58 = vld [vmem:[#allocation14_spill] sm:$0xff] }
 0x268   :  { %7624 = vst [vmem:[#allocation80_spill] sm:$0xff] %v6106_v52  ;;  %v7627_v31 = vld [vmem:[#allocation15_spill] sm:$0xff]  ;;  %v7652_v24 = vld [vmem:[#allocation40_spill] sm:$0xff] }
 0x269   :  { %v7651_v51 = vld [vmem:[#allocation39_spill] sm:$0xff] }
 0x26e   :  { %v4824_v41 = vpop.eup %4823 }
 0x26f   :  { %v4826_v6 = vpop.eup %4825  ;;  %v1176_v23 = vadd.f32 1.0, %v4824_v41  ;;  %v7628_v41 = vld [vmem:[#allocation16_spill] sm:$0xff] }
 0x270   :  { %v1182_v17 = vadd.f32 1.0, %v4826_v6  ;;  %v4828_v35 = vpop.eup %4827  ;;  %v7629_v6 = vld [vmem:[#allocation17_spill] sm:$0xff] }
 0x271   :  { %4831 = vrcp.f32 %v1176_v23  ;;  %v4830_v2 = vpop.eup %4829  ;;  %v1189_v62 = vadd.f32 1.0, %v4828_v35  ;;  %v7630_v23 = vld [vmem:[#allocation18_spill] sm:$0xff]  ;;  %v7632_v35 = vld [vmem:[#allocation20_spill] sm:$0xff] }
 0x272   :  { %4833 = vrcp.f32 %v1182_v17  ;;  %v7631_v17 = vld [vmem:[#allocation19_spill] sm:$0xff] }
 0x273   :  { %4835 = vrcp.f32 %v1189_v62  ;;  %v7638_v62 = vld [vmem:[#allocation26_spill] sm:$0xff] }
 0x27b   :  { %v4832_v0 = vpop.eup %4831 }
 0x27c   :  { %v4834_v19 = vpop.eup %4833  ;;  %v1193_v57 = vmul.f32 %v4832_v0, %v4830_v2  ;;  %v7633_v2 = vld [vmem:[#allocation21_spill] sm:$0xff]  ;;  %v7635_v0 = vld [vmem:[#allocation23_spill] sm:$0xff] }
 0x27d   :  { %v1192_v4 = vmul.f32 0.0, %v4834_v19  ;;  %v4836_v18 = vpop.eup %4835  ;;  %v7636_v19 = vld [vmem:[#allocation24_spill] sm:$0xff] }
 0x27f   :  { %v6057_v3 = vadd.f32 %v1193_v57, %v1192_v4  ;;  %v1341_v1 = vpop.f32.mrb[24].mxu1  ;;  %v7637_v57 = vld [vmem:[#allocation25_spill] sm:$0xff]  ;;  %v7639_v4 = vld [vmem:[#allocation27_spill] sm:$0xff] }
 0x280   :  { %v6060_v5 = vadd.f32 %v1341_v1, %v5855_v29  ;;  %v1343_v7 = vpop.f32.mrb[25].mxu1  ;;  %v6070_v29 = vld [vmem:[#allocation3 + $0x2c] ss:$16 sps:$4 sm:$0xff]   ;;  %v7640_v1 = vld [vmem:[#allocation28_spill] sm:$0xff] }
 0x281   :  { %7619 = vst [vmem:[#allocation75_spill] sm:$0xff] %v6057_v3  ;;  %4837 = vtanh.f32 %v6057_v3  ;;  %v6064_v9 = vadd.f32 %v1343_v7, %v5857_v25  ;;  %v1345_v11 = vpop.f32.mrb[26].mxu1  ;;  %v6073_v25 = vld [vmem:[#allocation3 + $0x28] ss:$16 sps:$4 sm:$0xff]   ;;  %v7641_v7 = vld [vmem:[#allocation29_spill] sm:$0xff] }
 0x282   :  { %v1346_v16 = vpop.f32.mrb[27].mxu1  ;;  %v7642_v11 = vld [vmem:[#allocation30_spill] sm:$0xff]  ;;  %v7649_v3 = vld [vmem:[#allocation37_spill] sm:$0xff] }
 0x283   :  { %v7643_v16 = vld [vmem:[#allocation31_spill] sm:$0xff] }
 0x28b   :  { %v4838_v22 = vpop.eup %4837 }
 0x28c   :  { %v1196_v26 = vmul.f32 %v4838_v22, %v4836_v18  ;;  %v7644_v18 = vld [vmem:[#allocation32_spill] sm:$0xff]  ;;  %v7645_v22 = vld [vmem:[#allocation33_spill] sm:$0xff] }
 0x28e   :  { %v1197_v28 = vpack.c.bf16 %v1196_v26, %v1196_v26  ;;  %v7646_v26 = vld [vmem:[#allocation34_spill] sm:$0xff] }
 0x290   :  { %4329 = vmatmul.mubr.bf16.vlgmr.msra.gmra.mrb[24].mxu0 %v1197_v28  ;;  %1450 = vmatprep.mubr.bf16.mxu1 %v1197_v28 }
 0x291   :  { %1349 = vmatpush1.bf16.msra.mxu0 %v6066_v30  ;;  %1380 = vmatprep.mubr.bf16.mxu0 %v7609_v21 }
 0x292   :  { %1350 = vmatprep.subr.bf16.mxu0 %v6070_v29 }
 0x295   :  { %1351 = vmatpush1.bf16.msra.mxu0 %v6073_v25 }
 0x296   :  { %1352 = vmatprep.subr.bf16.mxu0 %v6076_v32 }
 0x299   :  { %1353 = vmatpush1.bf16.msra.mxu0 %v6079_v34 }
 0x29a   :  { %1354 = vmatprep.subr.bf16.mxu0 %v6082_v36 }
 0x29d   :  { %1355 = vmatpush1.bf16.msra.mxu0 %v6085_v38 }
 0x29e   :  { %1356 = vmatprep.subr.bf16.mxu0 %v6088_v40 }
 0x2a1   :  { %1357 = vmatpush1.bf16.msra.mxu0 %v6091_v42 }
 0x2a2   :  { %1358 = vmatprep.subr.bf16.mxu0 %v6094_v44 }
 0x2a5   :  { %1359 = vmatpush1.bf16.msra.mxu0 %v6097_v46 }
 0x2a6   :  { %1360 = vmatprep.subr.bf16.mxu0 %v6100_v48 }
 0x2a9   :  { %1361 = vmatpush1.bf16.msra.mxu0 %v6103_v50 }
 0x2aa   :  { %1362 = vmatprep.subr.bf16.mxu0 %v6106_v52 }
 0x2ad   :  { %1363 = vmatpush1.bf16.msra.mxu0 %v6109_v53 }
 0x2ae   :  { %1459 = vmatprep.subr.bf16.mxu0 %v5639_v59 }
 0x2b0   :  { %1381 = vmatmul.mubr.bf16.vlgmr.msra.gmra.mrb[28].mxu0 %v5939_v14  ;;  %v7634_v14 = vld [vmem:[#allocation22_spill] sm:$0xff] }
 0x2b1   :  { %1491 = vmatprep.mubr.bf16.mxu0 %v1197_v28  ;;  %1460 = vmatpush1.bf16.msra.mxu0 %v5643_v61  ;;  %v7647_v28 = vld [vmem:[#allocation35_spill] sm:$0xff] }
 0x2b2   :  { %1461 = vmatprep.subr.bf16.mxu0 %v7626_v58 }
 0x2b5   :  { %1462 = vmatpush1.bf16.msra.mxu0 %v7627_v31 }
 0x2b6   :  { %1463 = vmatprep.subr.bf16.mxu0 %v7628_v41 }
 0x2b9   :  { %1464 = vmatpush1.bf16.msra.mxu0 %v7629_v6 }
 0x2ba   :  { %1465 = vmatprep.subr.bf16.mxu0 %v7630_v23 }
 0x2bd   :  { %1466 = vmatpush1.bf16.msra.mxu0 %v7631_v17 }
 0x2be   :  { %1467 = vmatprep.subr.bf16.mxu0 %v7632_v35 }
 0x2c1   :  { %1468 = vmatpush1.bf16.msra.mxu0 %v7633_v2 }
 0x2c2   :  { %1469 = vmatprep.subr.bf16.mxu0 %v7634_v14 }
 0x2c5   :  { %1470 = vmatpush1.bf16.msra.mxu0 %v7635_v0 }
 0x2c6   :  { %1471 = vmatprep.subr.bf16.mxu0 %v7636_v19 }
 0x2c9   :  { %1472 = vmatpush1.bf16.msra.mxu0 %v7637_v57 }
 0x2ca   :  { %1473 = vmatprep.subr.bf16.mxu0 %v7638_v62 }
 0x2cd   :  { %1474 = vmatpush1.bf16.msra.mxu0 %v7639_v4 }
 0x2ce   :  { %1475 = vmatprep.subr.bf16.mxu0 %v7640_v1 }
 0x2d1   :  { %1476 = vmatpush1.bf16.msra.mxu0 %v7641_v7 }
 0x2d2   :  { %1477 = vmatprep.subr.bf16.mxu0 %v7642_v11 }
 0x2d5   :  { %1478 = vmatpush1.bf16.msra.mxu0 %v7643_v16 }
 0x2d6   :  { %1479 = vmatprep.subr.bf16.mxu0 %v7644_v18  ;;  %v7655_v18 = vld [vmem:[#allocation43_spill] sm:$0xff] }
 0x2d9   :  { %1480 = vmatpush1.bf16.msra.mxu0 %v7645_v22  ;;  %v7656_v22 = vmov 0.0  }
 0x2da   :  { %1481 = vmatprep.subr.bf16.mxu0 %v7646_v26 }
 0x2dd   :  { %1482 = vmatpush1.bf16.msra.mxu0 %v7647_v28  ;;  %v4089_v28 = vmul.f32 -1.442695, %v6064_v9 }
 0x2de   :  { %1483 = vmatprep.subr.bf16.mxu0 %v7648_v60  ;;  %v4088_v60 = vmul.f32 -1.442695, %v6060_v5 }
 0x2df   :  { %4839 = vpow2.f32 %v4089_v28 }
 0x2e0   :  { %4841 = vpow2.f32 %v4088_v60 }
 0x2e1   :  { %1484 = vmatpush1.bf16.msra.mxu0 %v7649_v3 }
 0x2e2   :  { %1485 = vmatprep.subr.bf16.mxu0 %v7650_v55 }
 0x2e5   :  { %1486 = vmatpush1.bf16.msra.mxu0 %v7651_v51 }
 0x2e6   :  { %1487 = vmatprep.subr.bf16.mxu0 %v7652_v24  ;;  %v7657_v24 = vld [vmem:[#allocation44_spill] sm:$0xff] }
 0x2e9   :  { %1488 = vmatpush1.bf16.msra.mxu0 %v7653_v20  ;;  %v4840_v3 = vpop.eup %4839 }
 0x2ea   :  { %1489 = vmatprep.subr.bf16.mxu0 %v7654_v54  ;;  %v4842_v55 = vpop.eup %4841  ;;  %v1402_v26 = vadd.f32 1.0, %v4840_v3  ;;  %v7658_v54 = vld [vmem:[#allocation45_spill] sm:$0xff] }
 0x2eb   :  { %v1396_v51 = vadd.f32 1.0, %v4842_v55 }
 0x2ec   :  { %4843 = vrcp.f32 %v1402_v26 }
 0x2ed   :  { %1490 = vmatpush1.bf16.msra.mxu0 %v7655_v18  ;;  %4845 = vrcp.f32 %v1396_v51 }
 0x2ee   :  { %4332 = vmatprep.subr.bf16.mxu0 %v7656_v22 }
 0x2f6   :  { %v4844_v5 = vpop.eup %4843 }
 0x2f7   :  { %v4846_v28 = vpop.eup %4845  ;;  %v1412_v4 = vmul.f32 %v4844_v5, %v5936_v63  ;;  %v6170_v63 = vld [vmem:[#allocation3 + $0xe4] ss:$16 sps:$4 sm:$0xff]   ;;  %v4732_v5 = vld [vmem:[#allocation8 + $0x68] sm:$0xff]  }
 0x383   :  { %v1382_v16 = vpop.f32.mrb[28].mxu0 }
 0x384   :  { %v1391_v20 = vadd.f32 %v1382_v16, %v7657_v24  ;;  %v1384_v11 = vpop.f32.mrb[29].mxu0  ;;  %v4731_v16 = vld [vmem:[#allocation8 + $0x60] sm:$0xff]  }
 0x385   :  { %v1392_v18 = vadd.f32 %v1384_v11, %v7658_v54  ;;  %v1386_v7 = vpop.f32.mrb[30].mxu0  ;;  %v7671_v11 = vld [vmem:[#allocation38_spill] sm:$0xff] }
 0x386   :  { %4847 = vtanh.f32 %v1391_v20  ;;  %v1387_v1 = vpop.f32.mrb[31].mxu0  ;;  %v7670_v7 = vld [vmem:[#allocation37_spill] sm:$0xff] }
 0x387   :  { %v4090_v9 = vmul.f32 -1.442695, %v1392_v18  ;;  %v4730_v1 = vld [vmem:[#allocation8 + $0x58] sm:$0xff]   ;;  %v7672_v18 = vld [vmem:[#allocation39_spill] sm:$0xff] }
 0x389   :  { %4849 = vpow2.f32 %v4090_v9  ;;  %v7673_v9 = vld [vmem:[#allocation40_spill] sm:$0xff] }
 0x390   :  { %v4848_v60 = vpop.eup %4847 }
 0x391   :  { %v1413_v3 = vmul.f32 %v4848_v60, %v4846_v28  ;;  %v7674_v28 = vld [vmem:[#allocation41_spill] sm:$0xff]  ;;  %v7675_v60 = vld [vmem:[#allocation42_spill] sm:$0xff] }
 0x393   :  { %v4850_v55 = vpop.eup %4849  ;;  %v6151_v62 = vadd.f32 %v1413_v3, %v1412_v4  ;;  %v6173_v4 = vld [vmem:[#allocation3 + $0xe0] ss:$16 sps:$4 sm:$0xff]   ;;  %v4733_v3 = vld [vmem:[#allocation8 + $0x70] sm:$0xff]  }
 0x394   :  { %v1409_v26 = vadd.f32 1.0, %v4850_v55  ;;  %v7676_v55 = vld [vmem:[#allocation43_spill] sm:$0xff] }
 0x395   :  { %4851 = vtanh.f32 %v6151_v62 }
 0x396   :  { %4853 = vrcp.f32 %v1409_v26  ;;  %v7677_v26 = vld [vmem:[#allocation70_spill] sm:$0xff] }
 0x39f   :  { %v4852_v24 = vpop.eup %4851 }
 0x3a0   :  { %v4854_v54 = vpop.eup %4853 }
 0x3a1   :  { %v1416_v51 = vmul.f32 %v4854_v54, %v4852_v24  ;;  %v4734_v24 = vld [vmem:[#allocation8 + $0x78] sm:$0xff]   ;;  %v6233_v54 = vld [vmem:[#allocation7 + $0x4] ss:$16 sps:$4 sm:$0xff]  }
 0x3a3   :  { %v1417_v20 = vpack.c.bf16 %v1416_v51, %v1416_v51 }
 0x3a5   :  { %1451 = vmatmul.mubr.bf16.vlgmr.msra.gmra.mrb[28].mxu1 %v1417_v20  ;;  %1492 = vmatmul.mubr.bf16.vlgmr.msra.gmra.mrb[32].mxu0 %v1417_v20 }
 0x3a6   :  { %1636 = vmatpush1.bf16.msra.mxu1 %v5943_v8  ;;  %1667 = vmatprep.mubr.bf16.mxu1 %v7609_v21 }
 0x3a7   :  { %1637 = vmatprep.subr.bf16.mxu1 %v5947_v43  ;;  %4348 = vmatprep.mubr.msk.bf16.mxu0 %vm5424_vm2, %v7656_v22 }
 0x3aa   :  { %1638 = vmatpush1.bf16.msra.mxu1 %v5950_v45 }
 0x3ab   :  { %1639 = vmatprep.subr.bf16.mxu1 %v5953_v56 }
 0x3ae   :  { %1640 = vmatpush1.bf16.msra.mxu1 %v5956_v12 }
 0x3af   :  { %1641 = vmatprep.subr.bf16.mxu1 %v5959_v10 }
 0x3b2   :  { %1642 = vmatpush1.bf16.msra.mxu1 %v5962_v39 }
 0x3b3   :  { %1643 = vmatprep.subr.bf16.mxu1 %v5965_v37 }
 0x3b6   :  { %1644 = vmatpush1.bf16.msra.mxu1 %v5968_v47 }
 0x3b7   :  { %1645 = vmatprep.subr.bf16.mxu1 %v5971_v33 }
 0x3ba   :  { %1646 = vmatpush1.bf16.msra.mxu1 %v5974_v49 }
 0x3bb   :  { %1647 = vmatprep.subr.bf16.mxu1 %v5977_v15 }
 0x3be   :  { %1648 = vmatpush1.bf16.msra.mxu1 %v5980_v27 }
 0x3bf   :  { %1649 = vmatprep.subr.bf16.mxu1 %v6170_v63 }
 0x3c2   :  { %1650 = vmatpush1.bf16.msra.mxu1 %v6173_v4 }
 0x3c3   :  { %1676 = vmatprep.subr.bf16.mxu1 %v6029_v13 }
 0x3c5   :  { %1668 = vmatmul.mubr.bf16.vlgmr.msra.gmra.mrb[32].mxu1 %v1417_v20 }
 0x3c6   :  { %1677 = vmatpush1.bf16.msra.mxu1 %v6066_v30  ;;  %1708 = vmatprep.mubr.bf16.mxu1 %v7609_v21 }
 0x3c7   :  { %1678 = vmatprep.subr.bf16.mxu1 %v6070_v29 }
 0x3ca   :  { %1679 = vmatpush1.bf16.msra.mxu1 %v6073_v25 }
 0x3cb   :  { %1680 = vmatprep.subr.bf16.mxu1 %v6076_v32 }
 0x3ce   :  { %1681 = vmatpush1.bf16.msra.mxu1 %v6079_v34 }
 0x3cf   :  { %1682 = vmatprep.subr.bf16.mxu1 %v6082_v36 }
 0x3d2   :  { %1683 = vmatpush1.bf16.msra.mxu1 %v6085_v38 }
 0x3d3   :  { %1684 = vmatprep.subr.bf16.mxu1 %v6088_v40 }
 0x3d6   :  { %1685 = vmatpush1.bf16.msra.mxu1 %v6091_v42 }
 0x3d7   :  { %1686 = vmatprep.subr.bf16.mxu1 %v6094_v44  ;;  %v6331_v44 = vld [vmem:[#allocation7 + $0x1a4] ss:$16 sps:$4 sm:$0xff]  }
 0x3da   :  { %1687 = vmatpush1.bf16.msra.mxu1 %v6097_v46  ;;  %v6326_v46 = vld [vmem:[#allocation7 + $0x180] ss:$16 sps:$4 sm:$0xff]  }
 0x3db   :  { %1688 = vmatprep.subr.bf16.mxu1 %v6100_v48 }
 0x3de   :  { %1689 = vmatpush1.bf16.msra.mxu1 %v6103_v50  ;;  %v6321_v50 = vld [vmem:[#allocation7 + $0x184] ss:$16 sps:$4 sm:$0xff]  }
 0x3df   :  { %1690 = vmatprep.subr.bf16.mxu1 %v6106_v52  ;;  %v6300_v52 = vld [vmem:[#allocation7 + $0x100] ss:$16 sps:$4 sm:$0xff]  }
 0x3e2   :  { %1691 = vmatpush1.bf16.msra.mxu1 %v6109_v53 }
 0x3e3   :  { %1787 = vmatprep.subr.bf16.mxu1 %v5639_v59  ;;  %v7659_v59 = vld [vmem:[#allocation26_spill] sm:$0xff] }
 0x3e4   :  { %7701 = vst [vmem:[#allocation26_spill] sm:$0xff] %v6300_v52 }
 0x3e5   :  { %1709 = vmatmul.mubr.bf16.vlgmr.msra.gmra.mrb[36].mxu1 %v1417_v20 }
 0x3e6   :  { %1788 = vmatpush1.bf16.msra.mxu1 %v5643_v61  ;;  %v7660_v61 = vld [vmem:[#allocation27_spill] sm:$0xff] }
 0x3e7   :  { %1789 = vmatprep.subr.bf16.mxu1 %v7626_v58  ;;  %v7661_v58 = vld [vmem:[#allocation28_spill] sm:$0xff] }
 0x3ea   :  { %1790 = vmatpush1.bf16.msra.mxu1 %v7627_v31  ;;  %v7662_v31 = vld [vmem:[#allocation29_spill] sm:$0xff] }
 0x3eb   :  { %1791 = vmatprep.subr.bf16.mxu1 %v7628_v41  ;;  %v7663_v41 = vld [vmem:[#allocation30_spill] sm:$0xff] }
 0x3ee   :  { %1792 = vmatpush1.bf16.msra.mxu1 %v7629_v6  ;;  %v4727_v6 = vld [vmem:[#allocation8 + $0x40] sm:$0xff]  }
 0x3ef   :  { %1793 = vmatprep.subr.bf16.mxu1 %v7630_v23  ;;  %4333 = vmatpush3.bf16.msra.mxu0 %v4727_v6  ;;  %v7664_v23 = vld [vmem:[#allocation31_spill] sm:$0xff] }
 0x3f0   :  { %4334 = vmatprep.subr.bf16.mxu0 %v7656_v22 }
 0x3f2   :  { %1794 = vmatpush1.bf16.msra.mxu1 %v7631_v17  ;;  %v7665_v17 = vld [vmem:[#allocation32_spill] sm:$0xff] }
 0x3f3   :  { %1795 = vmatprep.subr.bf16.mxu1 %v7632_v35  ;;  %v4728_v35 = vld [vmem:[#allocation8 + $0x48] sm:$0xff]  }
 0x3f4   :  { %4335 = vmatpush3.bf16.msra.mxu0 %v4728_v35 }
 0x3f5   :  { %4336 = vmatprep.subr.bf16.mxu0 %v7656_v22 }
 0x3f6   :  { %1796 = vmatpush1.bf16.msra.mxu1 %v7633_v2  ;;  %v7666_v2 = vld [vmem:[#allocation33_spill] sm:$0xff] }
 0x3f7   :  { %1797 = vmatprep.subr.bf16.mxu1 %v7634_v14  ;;  %v7667_v14 = vld [vmem:[#allocation34_spill] sm:$0xff]  ;;  %7708 = vst [vmem:[#allocation33_spill] sm:$0xff] %v6321_v50 }
 0x3f8   :  { %7709 = vst [vmem:[#allocation34_spill] sm:$0xff] %v6326_v46 }
 0x3fa   :  { %1798 = vmatpush1.bf16.msra.mxu1 %v7635_v0  ;;  %v4729_v0 = vld [vmem:[#allocation8 + $0x50] sm:$0xff]  }
 0x3fb   :  { %1799 = vmatprep.subr.bf16.mxu1 %v7636_v19  ;;  %4337 = vmatpush3.bf16.msra.mxu0 %v4729_v0  ;;  %v7668_v19 = vld [vmem:[#allocation35_spill] sm:$0xff] }
 0x3fc   :  { %4338 = vmatprep.subr.bf16.mxu0 %v7656_v22  ;;  %7710 = vst [vmem:[#allocation35_spill] sm:$0xff] %v6331_v44 }
 0x3fe   :  { %1800 = vmatpush1.bf16.msra.mxu1 %v7637_v57  ;;  %v7669_v57 = vld [vmem:[#allocation36_spill] sm:$0xff] }
 0x3ff   :  { %1801 = vmatprep.subr.bf16.mxu1 %v7659_v59  ;;  %4339 = vmatpush3.bf16.msra.mxu0 %v4730_v1  ;;  %v7678_v59 = vld [vmem:[#allocation71_spill] sm:$0xff] }
 0x400   :  { %4340 = vmatprep.subr.bf16.mxu0 %v7656_v22 }
 0x402   :  { %1802 = vmatpush1.bf16.msra.mxu1 %v7660_v61 }
 0x403   :  { %1803 = vmatprep.subr.bf16.mxu1 %v7661_v58  ;;  %4341 = vmatpush3.bf16.msra.mxu0 %v4731_v16 }
 0x404   :  { %4342 = vmatprep.subr.bf16.mxu0 %v7656_v22 }
 0x406   :  { %1804 = vmatpush1.bf16.msra.mxu1 %v7662_v31 }
 0x407   :  { %1805 = vmatprep.subr.bf16.mxu1 %v7663_v41  ;;  %4343 = vmatpush3.bf16.msra.mxu0 %v4732_v5  ;;  %v7679_v41 = vld [vmem:[#allocation72_spill] sm:$0xff] }
 0x408   :  { %4344 = vmatprep.subr.bf16.mxu0 %v7656_v22 }
 0x40a   :  { %1806 = vmatpush1.bf16.msra.mxu1 %v7664_v23 }
 0x40b   :  { %1807 = vmatprep.subr.bf16.mxu1 %v7665_v17  ;;  %4345 = vmatpush3.bf16.msra.mxu0 %v4733_v3 }
 0x40c   :  { %4346 = vmatprep.subr.bf16.mxu0 %v7656_v22 }
 0x40e   :  { %1808 = vmatpush1.bf16.msra.mxu1 %v7666_v2 }
 0x40f   :  { %1809 = vmatprep.subr.bf16.mxu1 %v7667_v14  ;;  %4347 = vmatpush3.bf16.msra.mxu0 %v4734_v24 }
 0x410   :  { %1746 = vmatprep.subr.bf16.mxu0 %v6233_v54 }
 0x412   :  { %1810 = vmatpush1.bf16.msra.mxu1 %v7668_v19  ;;  %v7680_v19 = vld [vmem:[#allocation73_spill] sm:$0xff] }
 0x413   :  { %1811 = vmatprep.subr.bf16.mxu1 %v7669_v57 }
 0x416   :  { %1812 = vmatpush1.bf16.msra.mxu1 %v7670_v7  ;;  %v7681_v7 = vld [vmem:[#allocation74_spill] sm:$0xff] }
 0x417   :  { %1813 = vmatprep.subr.bf16.mxu1 %v7671_v11 }
 0x41a   :  { %1814 = vmatpush1.bf16.msra.mxu1 %v7672_v18 }
 0x41b   :  { %1815 = vmatprep.subr.bf16.mxu1 %v7673_v9 }
 0x41e   :  { %1816 = vmatpush1.bf16.msra.mxu1 %v7674_v28 }
 0x41f   :  { %1817 = vmatprep.subr.bf16.mxu1 %v7675_v60 }
 0x422   :  { %1818 = vmatpush1.bf16.msra.mxu1 %v7676_v55 }
 0x423   :  { %1963 = vmatprep.subr.bf16.mxu1 %v7677_v26 }
 0x478   :  { %v1452_v51 = vpop.f32.mrb[28].mxu1  ;;  %v1493_v20 = vpop.f32.mrb[32].mxu0 }
 0x479   :  { %v1453_v61 = vadd.f32 %v1452_v51, %v7678_v59  ;;  %v1454_v58 = vpop.f32.mrb[29].mxu1  ;;  %v1495_v31 = vpop.f32.mrb[33].mxu0  ;;  %v1494_v11 = vadd.f32 %v1493_v20, %v7681_v7  ;;  %v7683_v20 = vld [vmem:[#allocation46_spill] sm:$0xff] }
 0x47a   :  { %v1455_v6 = vadd.f32 %v1454_v58, %v7679_v41  ;;  %v1456_v23 = vpop.f32.mrb[30].mxu1  ;;  %v1497_v17 = vpop.f32.mrb[34].mxu0  ;;  %v1496_v57 = vadd.f32 %v1495_v31, %v7680_v19 }
 0x47b   :  { %v4091_v35 = vmul.f32 -1.442695, %v1453_v61  ;;  %v1457_v2 = vpop.f32.mrb[31].mxu1  ;;  %v1498_v14 = vpop.f32.mrb[35].mxu0  ;;  %v7682_v61 = vld [vmem:[#allocation75_spill] sm:$0xff] }
 0x47c   :  { %v4092_v0 = vmul.f32 -1.442695, %v1455_v6  ;;  %v4093_v1 = vmul.f32 -1.442695, %v1496_v57 }
 0x47d   :  { %4855 = vpow2.f32 %v4091_v35  ;;  %v7684_v35 = vld [vmem:[#allocation47_spill] sm:$0xff] }
 0x47e   :  { %4857 = vpow2.f32 %v4092_v0 }
 0x47f   :  { %4859 = vpow2.f32 %v4093_v1 }
 0x480   :  { %4861 = vtanh.f32 %v1494_v11 }
 0x487   :  { %v4856_v16 = vpop.eup %4855 }
 0x488   :  { %v4858_v18 = vpop.eup %4857  ;;  %v1503_v9 = vadd.f32 1.0, %v4856_v16 }
 0x489   :  { %v1509_v5 = vadd.f32 1.0, %v4858_v18  ;;  %v4860_v28 = vpop.eup %4859 }
 0x48a   :  { %4863 = vrcp.f32 %v1503_v9  ;;  %v4862_v60 = vpop.eup %4861  ;;  %v1516_v51 = vadd.f32 1.0, %v4860_v28  ;;  %v6249_v28 = vld [vmem:[#allocation7 + $0x24] ss:$16 sps:$4 sm:$0xff]  }
 0x48b   :  { %4865 = vrcp.f32 %v1509_v5  ;;  %v6246_v5 = vld [vmem:[#allocation7] ss:$16 sps:$4 sm:$0xff]  }
 0x48c   :  { %4867 = vrcp.f32 %v1516_v51 }
 0x494   :  { %v4864_v3 = vpop.eup %4863 }
 0x495   :  { %v4866_v55 = vpop.eup %4865  ;;  %v1520_v24 = vmul.f32 %v4864_v3, %v4862_v60  ;;  %v6252_v60 = vld [vmem:[#allocation7 + $0x20] ss:$16 sps:$4 sm:$0xff]   ;;  %v6255_v3 = vld [vmem:[#allocation7 + $0x44] ss:$16 sps:$4 sm:$0xff]  }
 0x496   :  { %v1519_v58 = vmul.f32 %v4866_v55, %v7682_v61  ;;  %v4868_v57 = vpop.eup %4867  ;;  %7685 = vst [vmem:[#allocation14_spill] sm:$0xff] %v6255_v3  ;;  %v6261_v61 = vld [vmem:[#allocation7 + $0x64] ss:$16 sps:$4 sm:$0xff]  }
 0x497   :  { %7687 = vst [vmem:[#allocation16_spill] sm:$0xff] %v6261_v61 }
 0x498   :  { %v6241_v31 = vadd.f32 %v1520_v24, %v1519_v58  ;;  %v1669_v6 = vpop.f32.mrb[32].mxu1  ;;  %v6258_v24 = vld [vmem:[#allocation7 + $0x40] ss:$16 sps:$4 sm:$0xff]  }
 0x499   :  { %v1717_v23 = vadd.f32 %v1669_v6, %v7683_v20  ;;  %v1671_v17 = vpop.f32.mrb[33].mxu1  ;;  %7686 = vst [vmem:[#allocation15_spill] sm:$0xff] %v6258_v24  ;;  %v6264_v20 = vld [vmem:[#allocation7 + $0x60] ss:$16 sps:$4 sm:$0xff]  }
 0x49a   :  { %v1718_v2 = vadd.f32 %v1671_v17, %v7684_v35  ;;  %v1673_v14 = vpop.f32.mrb[34].mxu1  ;;  %4869 = vtanh.f32 %v6241_v31  ;;  %7688 = vst [vmem:[#allocation17_spill] sm:$0xff] %v6264_v20  ;;  %v7690_v35 = vld [vmem:[#allocation49_spill] sm:$0xff] }
 0x49b   :  { %v1674_v0 = vpop.f32.mrb[35].mxu1  ;;  %v4102_v16 = vmul.f32 -1.442695, %v1717_v23  ;;  %v6267_v23 = vld [vmem:[#allocation7 + $0x84] ss:$16 sps:$4 sm:$0xff]  }
 0x49c   :  { %v4103_v11 = vmul.f32 -1.442695, %v1718_v2  ;;  %7689 = vst [vmem:[#allocation18_spill] sm:$0xff] %v6267_v23  ;;  %v7691_v0 = vld [vmem:[#allocation51_spill] sm:$0xff] }
 0x49e   :  { %4871 = vpow2.f32 %v4103_v11  ;;  %v6272_v11 = vld [vmem:[#allocation7 + $0x80] ss:$16 sps:$4 sm:$0xff]  }
 0x49f   :  { %4873 = vpow2.f32 %v4102_v16  ;;  %7692 = vst [vmem:[#allocation19_spill] sm:$0xff] %v6272_v11 }
 0x4a4   :  { %v4870_v1 = vpop.eup %4869 }
 0x4a5   :  { %v1523_v18 = vmul.f32 %v4870_v1, %v4868_v57 }
 0x4a7   :  { %v1524_v9 = vpack.c.bf16 %v1523_v18, %v1523_v18  ;;  %v6275_v18 = vld [vmem:[#allocation7 + $0xa4] ss:$16 sps:$4 sm:$0xff]  }
 0x4a8   :  { %v4872_v55 = vpop.eup %4871  ;;  %7693 = vst [vmem:[#allocation20_spill] sm:$0xff] %v6275_v18 }
 0x4a9   :  { %4349 = vmatmul.mubr.bf16.vlgmr.msra.gmra.mrb[24].mxu0 %v1524_v9  ;;  %1819 = vmatprep.mubr.bf16.mxu1 %v1524_v9  ;;  %v4874_v51 = vpop.eup %4873  ;;  %v1730_v58 = vadd.f32 1.0, %v4872_v55  ;;  %v6278_v55 = vld [vmem:[#allocation7 + $0xa0] ss:$16 sps:$4 sm:$0xff]  }
 0x4aa   :  { %1747 = vmatpush1.bf16.msra.mxu0 %v6246_v5  ;;  %1778 = vmatprep.mubr.bf16.mxu0 %v1524_v9  ;;  %v1724_v6 = vadd.f32 1.0, %v4874_v51  ;;  %7694 = vst [vmem:[#allocation21_spill] sm:$0xff] %v6278_v55  ;;  %v6281_v51 = vld [vmem:[#allocation7 + $0xc4] ss:$16 sps:$4 sm:$0xff]  }
 0x4ab   :  { %1748 = vmatprep.subr.bf16.mxu0 %v6249_v28  ;;  %4875 = vrcp.f32 %v1730_v58  ;;  %7695 = vst [vmem:[#allocation22_spill] sm:$0xff] %v6281_v51  ;;  %v6284_v58 = vld [vmem:[#allocation7 + $0xc0] ss:$16 sps:$4 sm:$0xff]  }
 0x4ac   :  { %4877 = vrcp.f32 %v1724_v6  ;;  %7696 = vst [vmem:[#allocation23_spill] sm:$0xff] %v6284_v58 }
 0x4ae   :  { %1749 = vmatpush1.bf16.msra.mxu0 %v6252_v60 }
 0x4af   :  { %1750 = vmatprep.subr.bf16.mxu0 %v6255_v3 }
 0x4b2   :  { %1751 = vmatpush1.bf16.msra.mxu0 %v6258_v24 }
 0x4b3   :  { %1752 = vmatprep.subr.bf16.mxu0 %v6261_v61 }
 0x4b5   :  { %v4876_v6 = vpop.eup %4875 }
 0x4b6   :  { %1753 = vmatpush1.bf16.msra.mxu0 %v6264_v20 }
 0x4b7   :  { %1754 = vmatprep.subr.bf16.mxu0 %v6267_v23 }
 0x4b8   :  { %v1710_v17 = vpop.f32.mrb[36].mxu1 }
 0x4b9   :  { %v1719_v2 = vadd.f32 %v1710_v17, %v7690_v35  ;;  %v1712_v14 = vpop.f32.mrb[37].mxu1  ;;  %v6287_v17 = vld [vmem:[#allocation7 + $0xe4] ss:$16 sps:$4 sm:$0xff]   ;;  %v4878_v35 = vpop.eup %4877 }
 0x4ba   :  { %v1720_v57 = vadd.f32 %v1712_v14, %v7691_v0  ;;  %v1714_v1 = vpop.f32.mrb[38].mxu1  ;;  %1755 = vmatpush1.bf16.msra.mxu0 %v6272_v11  ;;  %7697 = vst [vmem:[#allocation24_spill] sm:$0xff] %v6287_v17  ;;  %v1740_v14 = vmul.f32 %v4876_v6, %v6151_v62  ;;  %v6303_v62 = vld [vmem:[#allocation7 + $0x124] ss:$16 sps:$4 sm:$0xff]   ;;  %v6306_v6 = vld [vmem:[#allocation7 + $0x120] ss:$16 sps:$4 sm:$0xff]  }
 0x4bb   :  { %4879 = vtanh.f32 %v1719_v2  ;;  %v1715_v16 = vpop.f32.mrb[39].mxu1  ;;  %1756 = vmatprep.subr.bf16.mxu0 %v6275_v18  ;;  %v6294_v1 = vld [vmem:[#allocation7 + $0x104] ss:$16 sps:$4 sm:$0xff]   ;;  %7702 = vst [vmem:[#allocation27_spill] sm:$0xff] %v6303_v62  ;;  %7703 = vst [vmem:[#allocation28_spill] sm:$0xff] %v6306_v6 }
 0x4bc   :  { %v4104_v9 = vmul.f32 -1.442695, %v1720_v57  ;;  %v6291_v57 = vld [vmem:[#allocation7 + $0xe0] ss:$16 sps:$4 sm:$0xff]   ;;  %7699 = vst [vmem:[#allocation44_spill] sm:$0xff] %v6294_v1 }
 0x4bd   :  { %7698 = vst [vmem:[#allocation25_spill] sm:$0xff] %v6291_v57 }
 0x4be   :  { %4881 = vpow2.f32 %v4104_v9  ;;  %1757 = vmatpush1.bf16.msra.mxu0 %v6278_v55 }
 0x4bf   :  { %1758 = vmatprep.subr.bf16.mxu0 %v6281_v51 }
 0x4c2   :  { %1759 = vmatpush1.bf16.msra.mxu0 %v6284_v58 }
 0x4c3   :  { %1760 = vmatprep.subr.bf16.mxu0 %v6287_v17 }
 0x4c5   :  { %v4880_v2 = vpop.eup %4879 }
 0x4c6   :  { %v1741_v0 = vmul.f32 %v4880_v2, %v4878_v35  ;;  %1761 = vmatpush1.bf16.msra.mxu0 %v6291_v57  ;;  %v6309_v35 = vld [vmem:[#allocation7 + $0x144] ss:$16 sps:$4 sm:$0xff]   ;;  %v6312_v2 = vld [vmem:[#allocation7 + $0x140] ss:$16 sps:$4 sm:$0xff]  }
 0x4c7   :  { %1762 = vmatprep.subr.bf16.mxu0 %v6294_v1  ;;  %7704 = vst [vmem:[#allocation29_spill] sm:$0xff] %v6309_v35  ;;  %7705 = vst [vmem:[#allocation30_spill] sm:$0xff] %v6312_v2 }
 0x4c8   :  { %v4882_v16 = vpop.eup %4881  ;;  %v6297_v9 = vadd.f32 %v1741_v0, %v1740_v14  ;;  %v6315_v14 = vld [vmem:[#allocation7 + $0x164] ss:$16 sps:$4 sm:$0xff]  }
 0x4c9   :  { %v1737_v53 = vadd.f32 1.0, %v4882_v16  ;;  %7706 = vst [vmem:[#allocation31_spill] sm:$0xff] %v6315_v14  ;;  %v6318_v16 = vld [vmem:[#allocation7 + $0x160] ss:$16 sps:$4 sm:$0xff]  }
 0x4ca   :  { %7700 = vst [vmem:[#allocation45_spill] sm:$0xff] %v6297_v9  ;;  %4883 = vtanh.f32 %v6297_v9  ;;  %1763 = vmatpush1.bf16.msra.mxu0 %v6300_v52  ;;  %7707 = vst [vmem:[#allocation32_spill] sm:$0xff] %v6318_v16 }
 0x4cb   :  { %4885 = vrcp.f32 %v1737_v53  ;;  %1764 = vmatprep.subr.bf16.mxu0 %v6303_v62 }
 0x4ce   :  { %1765 = vmatpush1.bf16.msra.mxu0 %v6306_v6 }
 0x4cf   :  { %1766 = vmatprep.subr.bf16.mxu0 %v6309_v35 }
 0x4d2   :  { %1767 = vmatpush1.bf16.msra.mxu0 %v6312_v2 }
 0x4d3   :  { %1768 = vmatprep.subr.bf16.mxu0 %v6315_v14 }
 0x4d4   :  { %v4884_v53 = vpop.eup %4883 }
 0x4d5   :  { %v4886_v0 = vpop.eup %4885 }
 0x4d6   :  { %1769 = vmatpush1.bf16.msra.mxu0 %v6318_v16  ;;  %v1744_v9 = vmul.f32 %v4886_v0, %v4884_v53  ;;  %v6336_v53 = vld [vmem:[#allocation7 + $0x1a0] ss:$16 sps:$4 sm:$0xff]  }
 0x4d7   :  { %1770 = vmatprep.subr.bf16.mxu0 %v6321_v50  ;;  %7711 = vst [vmem:[#allocation36_spill] sm:$0xff] %v6336_v53  ;;  %v6352_v0 = vld [vmem:[#allocation7 + $0x1e0] ss:$16 sps:$4 sm:$0xff]  }
 0x4d8   :  { %v6324_v48 = vpack.c.bf16 %v1744_v9, %v1744_v9  ;;  %v6340_v9 = vld [vmem:[#allocation7 + $0x1c4] ss:$16 sps:$4 sm:$0xff]   ;;  %7715 = vst [vmem:[#allocation40_spill] sm:$0xff] %v6352_v0 }
 0x4d9   :  { %7712 = vst [vmem:[#allocation37_spill] sm:$0xff] %v6340_v9 }
 0x4da   :  { %1771 = vmatpush1.bf16.msra.mxu0 %v6326_v46  ;;  %1820 = vmatmul.mubr.bf16.vlgmr.msra.gmra.mrb[40].mxu1 %v6324_v48 }
 0x4db   :  { %1964 = vmatpush1.bf16.msra.mxu1 %v5943_v8  ;;  %1772 = vmatprep.subr.bf16.mxu0 %v6331_v44  ;;  %v6344_v8 = vld [vmem:[#allocation7 + $0x1c0] ss:$16 sps:$4 sm:$0xff]  }
 0x4dc   :  { %1965 = vmatprep.subr.bf16.mxu1 %v5947_v43  ;;  %1995 = vmatprep.mubr.bf16.mxu1 %v7609_v21  ;;  %7713 = vst [vmem:[#allocation38_spill] sm:$0xff] %v6344_v8  ;;  %v6348_v43 = vld [vmem:[#allocation7 + $0x1e4] ss:$16 sps:$4 sm:$0xff]  }
 0x4dd   :  { %7714 = vst [vmem:[#allocation39_spill] sm:$0xff] %v6348_v43 }
 0x4de   :  { %1773 = vmatpush1.bf16.msra.mxu0 %v6336_v53 }
 0x4df   :  { %1966 = vmatpush1.bf16.msra.mxu1 %v5950_v45  ;;  %1774 = vmatprep.subr.bf16.mxu0 %v6340_v9  ;;  %v4735_v45 = vld [vmem:[#allocation8 + $0x80] sm:$0xff]  }
 0x4e0   :  { %1967 = vmatprep.subr.bf16.mxu1 %v5953_v56  ;;  %v4736_v56 = vld [vmem:[#allocation8 + $0x88] sm:$0xff]  }
 0x4e2   :  { %1775 = vmatpush1.bf16.msra.mxu0 %v6344_v8 }
 0x4e3   :  { %1968 = vmatpush1.bf16.msra.mxu1 %v5956_v12  ;;  %1776 = vmatprep.subr.bf16.mxu0 %v6348_v43  ;;  %v4737_v12 = vld [vmem:[#allocation8 + $0x90] sm:$0xff]  }
 0x4e4   :  { %1969 = vmatprep.subr.bf16.mxu1 %v5959_v10  ;;  %v4738_v10 = vld [vmem:[#allocation8 + $0x98] sm:$0xff]  }
 0x4e6   :  { %1777 = vmatpush1.bf16.msra.mxu0 %v6352_v0 }
 0x4e7   :  { %1970 = vmatpush1.bf16.msra.mxu1 %v5962_v39  ;;  %4352 = vmatprep.subr.bf16.mxu0 %v7656_v22  ;;  %v4739_v39 = vld [vmem:[#allocation8 + $0xa0] sm:$0xff]  }
 0x4e8   :  { %1971 = vmatprep.subr.bf16.mxu1 %v5965_v37  ;;  %v4740_v37 = vld [vmem:[#allocation8 + $0xa8] sm:$0xff]  }
 0x4e9   :  { %1779 = vmatmul.mubr.bf16.vlgmr.msra.gmra.mrb[36].mxu0 %v6324_v48 }
 0x4ea   :  { %4368 = vmatprep.mubr.msk.bf16.mxu0 %vm5424_vm2, %v7656_v22  ;;  %4353 = vmatpush3.bf16.msra.mxu0 %v4735_v45 }
 0x4eb   :  { %1972 = vmatpush1.bf16.msra.mxu1 %v5968_v47  ;;  %4354 = vmatprep.subr.bf16.mxu0 %v7656_v22  ;;  %v4741_v47 = vld [vmem:[#allocation8 + $0xb0] sm:$0xff]  }
 0x4ec   :  { %1973 = vmatprep.subr.bf16.mxu1 %v5971_v33  ;;  %v4742_v33 = vld [vmem:[#allocation8 + $0xb8] sm:$0xff]  }
 0x4ee   :  { %4355 = vmatpush3.bf16.msra.mxu0 %v4736_v56 }
 0x4ef   :  { %1974 = vmatpush1.bf16.msra.mxu1 %v5974_v49  ;;  %4356 = vmatprep.subr.bf16.mxu0 %v7656_v22 }
 0x4f0   :  { %1975 = vmatprep.subr.bf16.mxu1 %v5977_v15 }
 0x4f2   :  { %4357 = vmatpush3.bf16.msra.mxu0 %v4737_v12 }
 0x4f3   :  { %1976 = vmatpush1.bf16.msra.mxu1 %v5980_v27  ;;  %4358 = vmatprep.subr.bf16.mxu0 %v7656_v22 }
 0x4f4   :  { %1977 = vmatprep.subr.bf16.mxu1 %v6170_v63 }
 0x4f6   :  { %4359 = vmatpush3.bf16.msra.mxu0 %v4738_v10 }
 0x4f7   :  { %1978 = vmatpush1.bf16.msra.mxu1 %v6173_v4  ;;  %4360 = vmatprep.subr.bf16.mxu0 %v7656_v22 }
 0x4f8   :  { %2074 = vmatprep.subr.bf16.mxu1 %v6233_v54 }
 0x4fa   :  { %1996 = vmatmul.mubr.bf16.vlgmr.msra.gmra.mrb[44].mxu1 %v6324_v48  ;;  %4361 = vmatpush3.bf16.msra.mxu0 %v4739_v39 }
 0x4fb   :  { %2075 = vmatpush1.bf16.msra.mxu1 %v6246_v5  ;;  %4362 = vmatprep.subr.bf16.mxu0 %v7656_v22 }
 0x4fc   :  { %2076 = vmatprep.subr.bf16.mxu1 %v6249_v28 }
 0x4fe   :  { %4363 = vmatpush3.bf16.msra.mxu0 %v4740_v37 }
 0x4ff   :  { %2077 = vmatpush1.bf16.msra.mxu1 %v6252_v60  ;;  %4364 = vmatprep.subr.bf16.mxu0 %v7656_v22 }
 0x500   :  { %2078 = vmatprep.subr.bf16.mxu1 %v6255_v3 }
 0x502   :  { %4365 = vmatpush3.bf16.msra.mxu0 %v4741_v47 }
 0x503   :  { %2079 = vmatpush1.bf16.msra.mxu1 %v6258_v24  ;;  %4366 = vmatprep.subr.bf16.mxu0 %v7656_v22 }
 0x504   :  { %2080 = vmatprep.subr.bf16.mxu1 %v6261_v61  ;;  %v7752_v61 = vld [vmem:[#allocation45_spill] sm:$0xff] }
 0x506   :  { %4367 = vmatpush3.bf16.msra.mxu0 %v4742_v33 }
 0x507   :  { %2081 = vmatpush1.bf16.msra.mxu1 %v6264_v20  ;;  %2004 = vmatprep.subr.bf16.mxu0 %v6029_v13 }
 0x508   :  { %2082 = vmatprep.subr.bf16.mxu1 %v6267_v23 }
 0x50b   :  { %2083 = vmatpush1.bf16.msra.mxu1 %v6272_v11 }
 0x50c   :  { %2084 = vmatprep.subr.bf16.mxu1 %v6275_v18  ;;  %v7751_v18 = vld [vmem:[#allocation53_spill] sm:$0xff] }
 0x50f   :  { %2085 = vmatpush1.bf16.msra.mxu1 %v6278_v55 }
 0x510   :  { %2086 = vmatprep.subr.bf16.mxu1 %v6281_v51 }
 0x513   :  { %2087 = vmatpush1.bf16.msra.mxu1 %v6284_v58  ;;  %v7750_v58 = vld [vmem:[#allocation52_spill] sm:$0xff] }
 0x514   :  { %2088 = vmatprep.subr.bf16.mxu1 %v6287_v17 }
 0x517   :  { %2089 = vmatpush1.bf16.msra.mxu1 %v6291_v57 }
 0x518   :  { %2090 = vmatprep.subr.bf16.mxu1 %v6294_v1 }
 0x51b   :  { %2091 = vmatpush1.bf16.msra.mxu1 %v6300_v52 }
 0x51c   :  { %2092 = vmatprep.subr.bf16.mxu1 %v6303_v62 }
 0x51f   :  { %2093 = vmatpush1.bf16.msra.mxu1 %v6306_v6 }
 0x520   :  { %2094 = vmatprep.subr.bf16.mxu1 %v6309_v35 }
 0x523   :  { %2095 = vmatpush1.bf16.msra.mxu1 %v6312_v2  ;;  %v6534_v2 = vld [vmem:[#allocation7 + $0x1e8] ss:$16 sps:$4 sm:$0xff]  }
 0x524   :  { %2096 = vmatprep.subr.bf16.mxu1 %v6315_v14  ;;  %v6531_v14 = vld [vmem:[#allocation7 + $0x1ec] ss:$16 sps:$4 sm:$0xff]   ;;  %7749 = vst [vmem:[#allocation86_spill] sm:$0xff] %v6534_v2 }
 0x525   :  { %7748 = vst [vmem:[#allocation85_spill] sm:$0xff] %v6531_v14 }
 0x527   :  { %2097 = vmatpush1.bf16.msra.mxu1 %v6318_v16  ;;  %v6528_v16 = vld [vmem:[#allocation7 + $0x1c8] ss:$16 sps:$4 sm:$0xff]  }
 0x528   :  { %2098 = vmatprep.subr.bf16.mxu1 %v6321_v50  ;;  %v6525_v50 = vld [vmem:[#allocation7 + $0x1cc] ss:$16 sps:$4 sm:$0xff]   ;;  %7747 = vst [vmem:[#allocation84_spill] sm:$0xff] %v6528_v16 }
 0x529   :  { %7746 = vst [vmem:[#allocation83_spill] sm:$0xff] %v6525_v50 }
 0x52b   :  { %2099 = vmatpush1.bf16.msra.mxu1 %v6326_v46  ;;  %v6522_v46 = vld [vmem:[#allocation7 + $0x1a8] ss:$16 sps:$4 sm:$0xff]  }
 0x52c   :  { %2100 = vmatprep.subr.bf16.mxu1 %v6331_v44  ;;  %v6519_v44 = vld [vmem:[#allocation7 + $0x1ac] ss:$16 sps:$4 sm:$0xff]   ;;  %7745 = vst [vmem:[#allocation82_spill] sm:$0xff] %v6522_v46 }
 0x52f   :  { %2101 = vmatpush1.bf16.msra.mxu1 %v6336_v53 }
 0x530   :  { %2102 = vmatprep.subr.bf16.mxu1 %v6340_v9 }
 0x533   :  { %2103 = vmatpush1.bf16.msra.mxu1 %v6344_v8 }
 0x534   :  { %2104 = vmatprep.subr.bf16.mxu1 %v6348_v43 }
 0x537   :  { %2105 = vmatpush1.bf16.msra.mxu1 %v6352_v0 }
 0x538   :  { %2291 = vmatprep.subr.bf16.mxu1 %v7677_v26 }
 0x5ad   :  { %v1821_v49 = vpop.f32.mrb[40].mxu1 }
 0x5ae   :  { %v1823_v15 = vpop.f32.mrb[41].mxu1  ;;  %v1822_v13 = vadd.f32 %v1821_v49, %v7681_v7 }
 0x5af   :  { %v1825_v27 = vpop.f32.mrb[42].mxu1  ;;  %v1824_v33 = vadd.f32 %v1823_v15, %v7680_v19 }
 0x5b0   :  { %v1826_v26 = vpop.f32.mrb[43].mxu1 }
 0x5b1   :  { %v4107_v43 = vmul.f32 -1.442695, %v1824_v33 }
 0x5bc   :  { %v1780_v45 = vpop.f32.mrb[36].mxu0 }
 0x5bd   :  { %v1781_v56 = vadd.f32 %v1780_v45, %v7678_v59  ;;  %v1782_v12 = vpop.f32.mrb[37].mxu0 }
 0x5be   :  { %v1783_v10 = vadd.f32 %v1782_v12, %v7679_v41  ;;  %v1784_v39 = vpop.f32.mrb[38].mxu0  ;;  %v7716_v12 = vld [vmem:[#allocation48_spill] sm:$0xff] }
 0x5bf   :  { %v4105_v37 = vmul.f32 -1.442695, %v1781_v56  ;;  %v1785_v0 = vpop.f32.mrb[39].mxu0  ;;  %v7717_v56 = vld [vmem:[#allocation50_spill] sm:$0xff] }
 0x5c0   :  { %v4106_v47 = vmul.f32 -1.442695, %v1783_v10 }
 0x5c1   :  { %4887 = vpow2.f32 %v4105_v37 }
 0x5c2   :  { %4889 = vpow2.f32 %v4106_v47 }
 0x5c3   :  { %4891 = vpow2.f32 %v4107_v43 }
 0x5c4   :  { %4893 = vtanh.f32 %v1822_v13 }
 0x5cb   :  { %v4888_v8 = vpop.eup %4887 }
 0x5cc   :  { %v4890_v27 = vpop.eup %4889  ;;  %v1831_v26 = vadd.f32 1.0, %v4888_v8 }
 0x5cd   :  { %v1837_v45 = vadd.f32 1.0, %v4890_v27  ;;  %v1997_v9 = vpop.f32.mrb[44].mxu1  ;;  %v4892_v47 = vpop.eup %4891 }
 0x5ce   :  { %4895 = vrcp.f32 %v1831_v26  ;;  %v6415_v39 = vadd.f32 %v1997_v9, %v7716_v12  ;;  %v1999_v0 = vpop.f32.mrb[45].mxu1  ;;  %v4894_v49 = vpop.eup %4893  ;;  %v1844_v43 = vadd.f32 1.0, %v4892_v47  ;;  %v6471_v47 = vld [vmem:[#allocation7 + $0xac] ss:$16 sps:$4 sm:$0xff]  }
 0x5cf   :  { %4897 = vrcp.f32 %v1837_v45  ;;  %v6418_v10 = vadd.f32 %v1999_v0, %v7717_v56  ;;  %v2001_v15 = vpop.f32.mrb[46].mxu1  ;;  %v6456_v0 = vld [vmem:[#allocation7 + $0x48] ss:$16 sps:$4 sm:$0xff]   ;;  %7728 = vst [vmem:[#allocation71_spill] sm:$0xff] %v6471_v47 }
 0x5d0   :  { %v2002_v37 = vpop.f32.mrb[47].mxu1  ;;  %4899 = vrcp.f32 %v1844_v43  ;;  %v6462_v56 = vld [vmem:[#allocation7 + $0x68] ss:$16 sps:$4 sm:$0xff]   ;;  %v6465_v15 = vld [vmem:[#allocation7 + $0x8c] ss:$16 sps:$4 sm:$0xff]  }
 0x5d1   :  { %7725 = vst [vmem:[#allocation42_spill] sm:$0xff] %v6462_v56  ;;  %7726 = vst [vmem:[#allocation43_spill] sm:$0xff] %v6465_v15  ;;  %v6468_v37 = vld [vmem:[#allocation7 + $0x88] ss:$16 sps:$4 sm:$0xff]   ;;  %v4117_v35 = vmul.f32 -1.442695, %v6418_v10 }
 0x5d2   :  { %7727 = vst [vmem:[#allocation70_spill] sm:$0xff] %v6468_v37  ;;  %v6480_v43 = vld [vmem:[#allocation7 + $0xc8] ss:$16 sps:$4 sm:$0xff]   ;;  %v4116_v6 = vmul.f32 -1.442695, %v6415_v39 }
 0x5d3   :  { %7731 = vst [vmem:[#allocation74_spill] sm:$0xff] %v6480_v43 }
 0x5d8   :  { %v4896_v33 = vpop.eup %4895 }
 0x5d9   :  { %v4898_v53 = vpop.eup %4897  ;;  %v1848_v8 = vmul.f32 %v4896_v33, %v4894_v49  ;;  %v6474_v49 = vld [vmem:[#allocation7 + $0xa8] ss:$16 sps:$4 sm:$0xff]   ;;  %v6477_v33 = vld [vmem:[#allocation7 + $0xcc] ss:$16 sps:$4 sm:$0xff]  }
 0x5da   :  { %v1847_v13 = vmul.f32 %v4898_v53, %v6241_v31  ;;  %v4900_v9 = vpop.eup %4899  ;;  %v7718_v31 = vld [vmem:[#allocation76_spill] sm:$0xff]  ;;  %v7720_v53 = vld [vmem:[#allocation78_spill] sm:$0xff]  ;;  %7729 = vst [vmem:[#allocation72_spill] sm:$0xff] %v6474_v49  ;;  %7730 = vst [vmem:[#allocation73_spill] sm:$0xff] %v6477_v33 }
 0x5dc   :  { %v6421_v27 = vadd.f32 %v1848_v8, %v1847_v13  ;;  %v6483_v8 = vld [vmem:[#allocation7 + $0xec] ss:$16 sps:$4 sm:$0xff]   ;;  %v6486_v13 = vld [vmem:[#allocation7 + $0xe8] ss:$16 sps:$4 sm:$0xff]  }
 0x5dd   :  { %7732 = vst [vmem:[#allocation75_spill] sm:$0xff] %v6483_v8  ;;  %7733 = vst [vmem:[#allocation46_spill] sm:$0xff] %v6486_v13 }
 0x5de   :  { %4901 = vtanh.f32 %v6421_v27 }
 0x5df   :  { %4903 = vpow2.f32 %v4117_v35 }
 0x5e0   :  { %4905 = vpow2.f32 %v4116_v6 }
 0x5e8   :  { %v4902_v26 = vpop.eup %4901 }
 0x5e9   :  { %v1851_v45 = vmul.f32 %v4902_v26, %v4900_v9  ;;  %v6489_v9 = vld [vmem:[#allocation7 + $0x10c] ss:$16 sps:$4 sm:$0xff]   ;;  %v6492_v26 = vld [vmem:[#allocation7 + $0x108] ss:$16 sps:$4 sm:$0xff]   ;;  %v4904_v62 = vpop.eup %4903 }
 0x5ea   :  { %7734 = vst [vmem:[#allocation47_spill] sm:$0xff] %v6489_v9  ;;  %7735 = vst [vmem:[#allocation49_spill] sm:$0xff] %v6492_v26  ;;  %v4906_v52 = vpop.eup %4905  ;;  %v2058_v1 = vadd.f32 1.0, %v4904_v62 }
 0x5eb   :  { %v1852_v12 = vpack.c.bf16 %v1851_v45, %v1851_v45  ;;  %v6495_v45 = vld [vmem:[#allocation7 + $0x12c] ss:$16 sps:$4 sm:$0xff]   ;;  %v2052_v57 = vadd.f32 1.0, %v4906_v52 }
 0x5ec   :  { %7736 = vst [vmem:[#allocation51_spill] sm:$0xff] %v6495_v45  ;;  %4907 = vrcp.f32 %v2058_v1 }
 0x5ed   :  { %4369 = vmatmul.mubr.bf16.vlgmr.msra.gmra.mrb[24].mxu0 %v1852_v12  ;;  %2106 = vmatprep.mubr.bf16.mxu1 %v1852_v12  ;;  %4909 = vrcp.f32 %v2052_v57  ;;  %v6571_v57 = vld [vmem:[#allocation3 + $0x60] ss:$16 sps:$4 sm:$0xff]  }
 0x5ee   :  { %2005 = vmatpush1.bf16.msra.mxu0 %v6066_v30  ;;  %2036 = vmatprep.mubr.bf16.mxu0 %v7609_v21  ;;  %v7719_v30 = vld [vmem:[#allocation77_spill] sm:$0xff]  ;;  %7755 = vst [vmem:[#allocation45_spill] sm:$0xff] %v6571_v57 }
 0x5ef   :  { %2006 = vmatprep.subr.bf16.mxu0 %v6070_v29  ;;  %v7721_v29 = vld [vmem:[#allocation79_spill] sm:$0xff] }
 0x5f2   :  { %2007 = vmatpush1.bf16.msra.mxu0 %v6073_v25  ;;  %v7722_v25 = vld [vmem:[#allocation80_spill] sm:$0xff] }
 0x5f3   :  { %2008 = vmatprep.subr.bf16.mxu0 %v6076_v32  ;;  %v7723_v32 = vld [vmem:[#allocation81_spill] sm:$0xff] }
 0x5f4   :  { %7744 = vst [vmem:[#allocation81_spill] sm:$0xff] %v6519_v44 }
 0x5f6   :  { %2009 = vmatpush1.bf16.msra.mxu0 %v6079_v34  ;;  %v6440_v34 = vld [vmem:[#allocation7 + $0xc] ss:$16 sps:$4 sm:$0xff]   ;;  %v4908_v39 = vpop.eup %4907 }
 0x5f7   :  { %2010 = vmatprep.subr.bf16.mxu0 %v6082_v36  ;;  %v6444_v36 = vld [vmem:[#allocation7 + $0x8] ss:$16 sps:$4 sm:$0xff]   ;;  %v4910_v35 = vpop.eup %4909  ;;  %v2068_v24 = vmul.f32 %v4908_v39, %v7752_v61  ;;  %v6559_v61 = vld [vmem:[#allocation3 + $0x20] ss:$16 sps:$4 sm:$0xff]  }
 0x5f8   :  { %v6577_v39 = vld [vmem:[#allocation3 + $0x80] ss:$16 sps:$4 sm:$0xff]  }
 0x5fa   :  { %2011 = vmatpush1.bf16.msra.mxu0 %v6085_v38  ;;  %v6447_v38 = vld [vmem:[#allocation7 + $0x2c] ss:$16 sps:$4 sm:$0xff]  }
 0x5fb   :  { %2012 = vmatprep.subr.bf16.mxu0 %v6088_v40  ;;  %v6450_v40 = vld [vmem:[#allocation7 + $0x28] ss:$16 sps:$4 sm:$0xff]  }
 0x5fe   :  { %2013 = vmatpush1.bf16.msra.mxu0 %v6091_v42  ;;  %v6453_v42 = vld [vmem:[#allocation7 + $0x4c] ss:$16 sps:$4 sm:$0xff]  }
 0x5ff   :  { %2014 = vmatprep.subr.bf16.mxu0 %v7718_v31  ;;  %v6501_v31 = vld [vmem:[#allocation7 + $0x14c] ss:$16 sps:$4 sm:$0xff]  }
 0x600   :  { %7738 = vst [vmem:[#allocation50_spill] sm:$0xff] %v6501_v31 }
 0x602   :  { %2015 = vmatpush1.bf16.msra.mxu0 %v7719_v30  ;;  %v6504_v30 = vld [vmem:[#allocation7 + $0x148] ss:$16 sps:$4 sm:$0xff]  }
 0x603   :  { %2016 = vmatprep.subr.bf16.mxu0 %v7720_v53  ;;  %7739 = vst [vmem:[#allocation76_spill] sm:$0xff] %v6504_v30  ;;  %v6507_v53 = vld [vmem:[#allocation7 + $0x16c] ss:$16 sps:$4 sm:$0xff]  }
 0x604   :  { %7740 = vst [vmem:[#allocation77_spill] sm:$0xff] %v6507_v53 }
 0x606   :  { %2017 = vmatpush1.bf16.msra.mxu0 %v7721_v29  ;;  %v6510_v29 = vld [vmem:[#allocation7 + $0x168] ss:$16 sps:$4 sm:$0xff]  }
 0x607   :  { %2018 = vmatprep.subr.bf16.mxu0 %v7722_v25  ;;  %7741 = vst [vmem:[#allocation78_spill] sm:$0xff] %v6510_v29  ;;  %v6513_v25 = vld [vmem:[#allocation7 + $0x18c] ss:$16 sps:$4 sm:$0xff]  }
 0x608   :  { %7742 = vst [vmem:[#allocation79_spill] sm:$0xff] %v6513_v25 }
 0x60a   :  { %2019 = vmatpush1.bf16.msra.mxu0 %v7723_v32  ;;  %v6516_v32 = vld [vmem:[#allocation7 + $0x188] ss:$16 sps:$4 sm:$0xff]  }
 0x60b   :  { %2115 = vmatprep.subr.bf16.mxu0 %v6440_v34  ;;  %7743 = vst [vmem:[#allocation80_spill] sm:$0xff] %v6516_v32 }
 0x60d   :  { %2037 = vmatmul.mubr.bf16.vlgmr.msra.gmra.mrb[40].mxu0 %v6324_v48  ;;  %v6459_v48 = vld [vmem:[#allocation7 + $0x6c] ss:$16 sps:$4 sm:$0xff]  }
 0x60e   :  { %2147 = vmatprep.mubr.bf16.mxu0 %v1852_v12  ;;  %2116 = vmatpush1.bf16.msra.mxu0 %v6444_v36  ;;  %7724 = vst [vmem:[#allocation41_spill] sm:$0xff] %v6459_v48  ;;  %v6498_v12 = vld [vmem:[#allocation7 + $0x128] ss:$16 sps:$4 sm:$0xff]  }
 0x60f   :  { %2117 = vmatprep.subr.bf16.mxu0 %v6447_v38  ;;  %7737 = vst [vmem:[#allocation48_spill] sm:$0xff] %v6498_v12 }
 0x612   :  { %2118 = vmatpush1.bf16.msra.mxu0 %v6450_v40 }
 0x613   :  { %2119 = vmatprep.subr.bf16.mxu0 %v6453_v42 }
 0x616   :  { %2120 = vmatpush1.bf16.msra.mxu0 %v6456_v0 }
 0x617   :  { %2121 = vmatprep.subr.bf16.mxu0 %v6459_v48 }
 0x61a   :  { %2122 = vmatpush1.bf16.msra.mxu0 %v6462_v56 }
 0x61b   :  { %2123 = vmatprep.subr.bf16.mxu0 %v6465_v15 }
 0x61e   :  { %2124 = vmatpush1.bf16.msra.mxu0 %v6468_v37 }
 0x61f   :  { %2125 = vmatprep.subr.bf16.mxu0 %v6471_v47 }
 0x622   :  { %2126 = vmatpush1.bf16.msra.mxu0 %v6474_v49 }
 0x623   :  { %2127 = vmatprep.subr.bf16.mxu0 %v6477_v33 }
 0x626   :  { %2128 = vmatpush1.bf16.msra.mxu0 %v6480_v43 }
 0x627   :  { %2129 = vmatprep.subr.bf16.mxu0 %v6483_v8 }
 0x62a   :  { %2130 = vmatpush1.bf16.msra.mxu0 %v6486_v13 }
 0x62b   :  { %2131 = vmatprep.subr.bf16.mxu0 %v6489_v9 }
 0x62e   :  { %2132 = vmatpush1.bf16.msra.mxu0 %v6492_v26 }
 0x62f   :  { %2133 = vmatprep.subr.bf16.mxu0 %v6495_v45 }
 0x632   :  { %2134 = vmatpush1.bf16.msra.mxu0 %v6498_v12 }
 0x633   :  { %2135 = vmatprep.subr.bf16.mxu0 %v6501_v31 }
 0x636   :  { %2136 = vmatpush1.bf16.msra.mxu0 %v6504_v30 }
 0x637   :  { %2137 = vmatprep.subr.bf16.mxu0 %v6507_v53 }
 0x63a   :  { %2138 = vmatpush1.bf16.msra.mxu0 %v6510_v29 }
 0x63b   :  { %2139 = vmatprep.subr.bf16.mxu0 %v6513_v25 }
 0x63e   :  { %2140 = vmatpush1.bf16.msra.mxu0 %v6516_v32 }
 0x63f   :  { %2141 = vmatprep.subr.bf16.mxu0 %v6519_v44 }
 0x642   :  { %2142 = vmatpush1.bf16.msra.mxu0 %v6522_v46 }
 0x643   :  { %2143 = vmatprep.subr.bf16.mxu0 %v6525_v50 }
 0x646   :  { %2144 = vmatpush1.bf16.msra.mxu0 %v6528_v16 }
 0x647   :  { %2145 = vmatprep.subr.bf16.mxu0 %v6531_v14 }
 0x64a   :  { %2146 = vmatpush1.bf16.msra.mxu0 %v6534_v2 }
 0x64b   :  { %4372 = vmatprep.subr.bf16.mxu0 %v7656_v22 }
 0x6e0   :  { %v2038_v17 = vpop.f32.mrb[40].mxu0 }
 0x6e1   :  { %v2047_v51 = vadd.f32 %v2038_v17, %v7750_v58  ;;  %v2040_v55 = vpop.f32.mrb[41].mxu0  ;;  %v6568_v17 = vld [vmem:[#allocation3 + $0x64] ss:$16 sps:$4 sm:$0xff]  }
 0x6e2   :  { %v2048_v11 = vadd.f32 %v2040_v55, %v7751_v18  ;;  %v2042_v23 = vpop.f32.mrb[42].mxu0  ;;  %7754 = vst [vmem:[#allocation53_spill] sm:$0xff] %v6568_v17 }
 0x6e3   :  { %4911 = vtanh.f32 %v2047_v51  ;;  %v2043_v20 = vpop.f32.mrb[43].mxu0  ;;  %v6565_v51 = vld [vmem:[#allocation3 + $0x40] ss:$16 sps:$4 sm:$0xff]  }
 0x6e4   :  { %v4118_v10 = vmul.f32 -1.442695, %v2048_v11  ;;  %v6550_v20 = vld [vmem:[#allocation3] ss:$16 sps:$4 sm:$0xff]   ;;  %v6562_v11 = vld [vmem:[#allocation3 + $0x44] ss:$16 sps:$4 sm:$0xff]  }
 0x6e5   :  { %7753 = vst [vmem:[#allocation52_spill] sm:$0xff] %v6550_v20 }
 0x6e6   :  { %4913 = vpow2.f32 %v4118_v10  ;;  %v6574_v10 = vld [vmem:[#allocation3 + $0x84] ss:$16 sps:$4 sm:$0xff]  }
 0x6e7   :  { %7756 = vst [vmem:[#allocation87_spill] sm:$0xff] %v6574_v10 }
 0x6ed   :  { %v4912_v6 = vpop.eup %4911 }
 0x6ee   :  { %v2069_v62 = vmul.f32 %v4912_v6, %v4910_v35  ;;  %v6580_v35 = vld [vmem:[#allocation3 + $0xa4] ss:$16 sps:$4 sm:$0xff]   ;;  %v6583_v6 = vld [vmem:[#allocation3 + $0xa0] ss:$16 sps:$4 sm:$0xff]  }
 0x6f0   :  { %v4914_v52 = vpop.eup %4913  ;;  %v6543_v3 = vadd.f32 %v2069_v62, %v2068_v24  ;;  %v6554_v24 = vld [vmem:[#allocation3 + $0x24] ss:$16 sps:$4 sm:$0xff]  }
 0x6f1   :  { %v2065_v1 = vadd.f32 1.0, %v4914_v52  ;;  %v6586_v62 = vld [vmem:[#allocation3 + $0xc4] ss:$16 sps:$4 sm:$0xff]   ;;  %v6589_v52 = vld [vmem:[#allocation3 + $0xc0] ss:$16 sps:$4 sm:$0xff]  }
 0x6f2   :  { %4915 = vtanh.f32 %v6543_v3 }
 0x6f3   :  { %4917 = vrcp.f32 %v2065_v1  ;;  %v6594_v1 = vld [vmem:[#allocation3 + $0xc] ss:$16 sps:$4 sm:$0xff]  }
 0x6f4   :  { %7757 = vst [vmem:[#allocation88_spill] sm:$0xff] %v6594_v1 }
 0x6fc   :  { %v4916_v58 = vpop.eup %4915 }
 0x6fd   :  { %v4918_v18 = vpop.eup %4917 }
 0x6fe   :  { %v2072_v23 = vmul.f32 %v4918_v18, %v4916_v58  ;;  %v6598_v58 = vld [vmem:[#allocation3 + $0x8] ss:$16 sps:$4 sm:$0xff]   ;;  %v6602_v18 = vld [vmem:[#allocation3 + $0x2c] ss:$16 sps:$4 sm:$0xff]  }
 0x6ff   :  { %7758 = vst [vmem:[#allocation89_spill] sm:$0xff] %v6598_v58  ;;  %7759 = vst [vmem:[#allocation90_spill] sm:$0xff] %v6602_v18 }
 0x700   :  { %v6546_v55 = vpack.c.bf16 %v2072_v23, %v2072_v23  ;;  %v6605_v23 = vld [vmem:[#allocation3 + $0x28] ss:$16 sps:$4 sm:$0xff]  }
 0x701   :  { %7760 = vst [vmem:[#allocation91_spill] sm:$0xff] %v6605_v23 }
 0x702   :  { %2107 = vmatmul.mubr.bf16.vlgmr.msra.gmra.mrb[48].mxu1 %v6546_v55  ;;  %2148 = vmatmul.mubr.bf16.vlgmr.msra.gmra.mrb[44].mxu0 %v6546_v55 }
 0x703   :  { %2292 = vmatpush1.bf16.msra.mxu1 %v6550_v20  ;;  %2323 = vmatprep.mubr.bf16.mxu1 %v7609_v21 }
 0x704   :  { %2293 = vmatprep.subr.bf16.mxu1 %v6554_v24  ;;  %4388 = vmatprep.mubr.msk.bf16.mxu0 %vm5424_vm2, %v7656_v22 }
 0x707   :  { %2294 = vmatpush1.bf16.msra.mxu1 %v6559_v61 }
 0x708   :  { %2295 = vmatprep.subr.bf16.mxu1 %v6562_v11 }
 0x70b   :  { %2296 = vmatpush1.bf16.msra.mxu1 %v6565_v51 }
 0x70c   :  { %2297 = vmatprep.subr.bf16.mxu1 %v6568_v17 }
 0x70f   :  { %2298 = vmatpush1.bf16.msra.mxu1 %v6571_v57 }
 0x710   :  { %2299 = vmatprep.subr.bf16.mxu1 %v6574_v10 }
 0x713   :  { %2300 = vmatpush1.bf16.msra.mxu1 %v6577_v39 }
 0x714   :  { %2301 = vmatprep.subr.bf16.mxu1 %v6580_v35 }
 0x717   :  { %2302 = vmatpush1.bf16.msra.mxu1 %v6583_v6 }
 0x718   :  { %2303 = vmatprep.subr.bf16.mxu1 %v6586_v62 }
 0x71b   :  { %2304 = vmatpush1.bf16.msra.mxu1 %v6589_v52 }
 0x71c   :  { %2305 = vmatprep.subr.bf16.mxu1 %v6170_v63  ;;  %v6608_v63 = vld [vmem:[#allocation3 + $0x4c] ss:$16 sps:$4 sm:$0xff]  }
 0x71d   :  { %7761 = vst [vmem:[#allocation92_spill] sm:$0xff] %v6608_v63 }
 0x71f   :  { %2306 = vmatpush1.bf16.msra.mxu1 %v6173_v4  ;;  %v6611_v4 = vld [vmem:[#allocation3 + $0x48] ss:$16 sps:$4 sm:$0xff]  }
 0x720   :  { %2332 = vmatprep.subr.bf16.mxu1 %v6594_v1  ;;  %7762 = vst [vmem:[#allocation93_spill] sm:$0xff] %v6611_v4  ;;  %v6614_v1 = vld [vmem:[#allocation3 + $0x6c] ss:$16 sps:$4 sm:$0xff]  }
 0x721   :  { %7763 = vst [vmem:[#allocation94_spill] sm:$0xff] %v6614_v1 }
 0x722   :  { %2324 = vmatmul.mubr.bf16.vlgmr.msra.gmra.mrb[52].mxu1 %v6546_v55 }
 0x723   :  { %2333 = vmatpush1.bf16.msra.mxu1 %v6598_v58  ;;  %2364 = vmatprep.mubr.bf16.mxu1 %v7609_v21  ;;  %v6617_v58 = vld [vmem:[#allocation3 + $0x68] ss:$16 sps:$4 sm:$0xff]  }
 0x724   :  { %2334 = vmatprep.subr.bf16.mxu1 %v6602_v18  ;;  %7764 = vst [vmem:[#allocation95_spill] sm:$0xff] %v6617_v58  ;;  %v6620_v18 = vld [vmem:[#allocation3 + $0x8c] ss:$16 sps:$4 sm:$0xff]  }
 0x725   :  { %7765 = vst [vmem:[#allocation96_spill] sm:$0xff] %v6620_v18 }
 0x727   :  { %2335 = vmatpush1.bf16.msra.mxu1 %v6605_v23  ;;  %v6623_v23 = vld [vmem:[#allocation3 + $0x88] ss:$16 sps:$4 sm:$0xff]  }
 0x728   :  { %2336 = vmatprep.subr.bf16.mxu1 %v6608_v63  ;;  %7766 = vst [vmem:[#allocation97_spill] sm:$0xff] %v6623_v23  ;;  %v6626_v63 = vld [vmem:[#allocation3 + $0xac] ss:$16 sps:$4 sm:$0xff]  }
 0x72b   :  { %2337 = vmatpush1.bf16.msra.mxu1 %v6611_v4  ;;  %v6629_v4 = vld [vmem:[#allocation3 + $0xa8] ss:$16 sps:$4 sm:$0xff]  }
 0x72c   :  { %2338 = vmatprep.subr.bf16.mxu1 %v6614_v1  ;;  %v6632_v1 = vld [vmem:[#allocation3 + $0xcc] ss:$16 sps:$4 sm:$0xff]  }
 0x72f   :  { %2339 = vmatpush1.bf16.msra.mxu1 %v6617_v58  ;;  %v6635_v58 = vld [vmem:[#allocation3 + $0xc8] ss:$16 sps:$4 sm:$0xff]  }
 0x730   :  { %2340 = vmatprep.subr.bf16.mxu1 %v6620_v18  ;;  %v6638_v18 = vld [vmem:[#allocation3 + $0xec] ss:$16 sps:$4 sm:$0xff]  }
 0x733   :  { %2341 = vmatpush1.bf16.msra.mxu1 %v6623_v23  ;;  %v6641_v23 = vld [vmem:[#allocation3 + $0xe8] ss:$16 sps:$4 sm:$0xff]  }
 0x734   :  { %2342 = vmatprep.subr.bf16.mxu1 %v6626_v63 }
 0x737   :  { %2343 = vmatpush1.bf16.msra.mxu1 %v6629_v4 }
 0x738   :  { %2344 = vmatprep.subr.bf16.mxu1 %v6632_v1 }
 0x73b   :  { %2345 = vmatpush1.bf16.msra.mxu1 %v6635_v58 }
 0x73c   :  { %2346 = vmatprep.subr.bf16.mxu1 %v6638_v18 }
 0x73f   :  { %2347 = vmatpush1.bf16.msra.mxu1 %v6641_v23 }
 0x740   :  { %2443 = vmatprep.subr.bf16.mxu1 %v6440_v34 }
 0x742   :  { %2365 = vmatmul.mubr.bf16.vlgmr.msra.gmra.mrb[56].mxu1 %v6546_v55  ;;  %v4743_v55 = vld [vmem:[#allocation8 + $0xc0] sm:$0xff]  }
 0x743   :  { %2444 = vmatpush1.bf16.msra.mxu1 %v6444_v36  ;;  %4373 = vmatpush3.bf16.msra.mxu0 %v4743_v55  ;;  %v4746_v55 = vld [vmem:[#allocation8 + $0xd8] sm:$0xff]  }
 0x744   :  { %2445 = vmatprep.subr.bf16.mxu1 %v6447_v38  ;;  %4374 = vmatprep.subr.bf16.mxu0 %v7656_v22 }
 0x747   :  { %2446 = vmatpush1.bf16.msra.mxu1 %v6450_v40 }
 0x748   :  { %2447 = vmatprep.subr.bf16.mxu1 %v6453_v42 }
 0x74b   :  { %2448 = vmatpush1.bf16.msra.mxu1 %v6456_v0 }
 0x74c   :  { %2449 = vmatprep.subr.bf16.mxu1 %v6459_v48  ;;  %v7795_v48 = vld [vmem:[#allocation36_spill] sm:$0xff] }
 0x74f   :  { %2450 = vmatpush1.bf16.msra.mxu1 %v6462_v56  ;;  %v7794_v56 = vld [vmem:[#allocation35_spill] sm:$0xff] }
 0x750   :  { %2451 = vmatprep.subr.bf16.mxu1 %v6465_v15  ;;  %v7788_v15 = vld [vmem:[#allocation29_spill] sm:$0xff] }
 0x753   :  { %2452 = vmatpush1.bf16.msra.mxu1 %v6468_v37  ;;  %v7787_v37 = vld [vmem:[#allocation28_spill] sm:$0xff] }
 0x754   :  { %2453 = vmatprep.subr.bf16.mxu1 %v6471_v47  ;;  %v7786_v47 = vld [vmem:[#allocation27_spill] sm:$0xff] }
 0x757   :  { %2454 = vmatpush1.bf16.msra.mxu1 %v6474_v49  ;;  %v7785_v49 = vld [vmem:[#allocation26_spill] sm:$0xff] }
 0x758   :  { %2455 = vmatprep.subr.bf16.mxu1 %v6477_v33  ;;  %v4744_v33 = vld [vmem:[#allocation8 + $0xc8] sm:$0xff]  }
 0x759   :  { %4375 = vmatpush3.bf16.msra.mxu0 %v4744_v33  ;;  %v4747_v33 = vld [vmem:[#allocation8 + $0xe0] sm:$0xff]  }
 0x75a   :  { %4376 = vmatprep.subr.bf16.mxu0 %v7656_v22 }
 0x75b   :  { %2456 = vmatpush1.bf16.msra.mxu1 %v6480_v43 }
 0x75c   :  { %2457 = vmatprep.subr.bf16.mxu1 %v6483_v8  ;;  %v7779_v8 = vld [vmem:[#allocation22_spill] sm:$0xff] }
 0x75f   :  { %2458 = vmatpush1.bf16.msra.mxu1 %v6486_v13 }
 0x760   :  { %2459 = vmatprep.subr.bf16.mxu1 %v6489_v9  ;;  %v4745_v9 = vld [vmem:[#allocation8 + $0xd0] sm:$0xff]  }
 0x761   :  { %4377 = vmatpush3.bf16.msra.mxu0 %v4745_v9  ;;  %v4748_v9 = vld [vmem:[#allocation8 + $0xe8] sm:$0xff]  }
 0x762   :  { %4378 = vmatprep.subr.bf16.mxu0 %v7656_v22 }
 0x763   :  { %2460 = vmatpush1.bf16.msra.mxu1 %v6492_v26 }
 0x764   :  { %2461 = vmatprep.subr.bf16.mxu1 %v6495_v45 }
 0x765   :  { %4379 = vmatpush3.bf16.msra.mxu0 %v4746_v55  ;;  %v4749_v55 = vld [vmem:[#allocation8 + $0xf0] sm:$0xff]  }
 0x766   :  { %4380 = vmatprep.subr.bf16.mxu0 %v7656_v22 }
 0x767   :  { %2462 = vmatpush1.bf16.msra.mxu1 %v6498_v12 }
 0x768   :  { %2463 = vmatprep.subr.bf16.mxu1 %v6501_v31 }
 0x769   :  { %4381 = vmatpush3.bf16.msra.mxu0 %v4747_v33  ;;  %v6684_v33 = vld [vmem:[#allocation3 + $0x4] ss:$16 sps:$4 sm:$0xff]  }
 0x76a   :  { %4382 = vmatprep.subr.bf16.mxu0 %v7656_v22 }
 0x76b   :  { %2464 = vmatpush1.bf16.msra.mxu1 %v6504_v30 }
 0x76c   :  { %2465 = vmatprep.subr.bf16.mxu1 %v6507_v53 }
 0x76d   :  { %4383 = vmatpush3.bf16.msra.mxu0 %v4748_v9 }
 0x76e   :  { %4384 = vmatprep.subr.bf16.mxu0 %v7656_v22 }
 0x76f   :  { %2466 = vmatpush1.bf16.msra.mxu1 %v6510_v29 }
 0x770   :  { %2467 = vmatprep.subr.bf16.mxu1 %v6513_v25 }
 0x771   :  { %4385 = vmatpush3.bf16.msra.mxu0 %v4749_v55 }
 0x772   :  { %4386 = vmatprep.subr.bf16.mxu0 %v7656_v22 }
 0x773   :  { %2468 = vmatpush1.bf16.msra.mxu1 %v6516_v32 }
 0x774   :  { %2469 = vmatprep.subr.bf16.mxu1 %v6519_v44 }
 0x777   :  { %2470 = vmatpush1.bf16.msra.mxu1 %v6522_v46  ;;  %v4750_v46 = vld [vmem:[#allocation8 + $0xf8] sm:$0xff]  }
 0x778   :  { %2471 = vmatprep.subr.bf16.mxu1 %v6525_v50  ;;  %4387 = vmatpush3.bf16.msra.mxu0 %v4750_v46 }
 0x779   :  { %2402 = vmatprep.subr.bf16.mxu0 %v6233_v54 }
 0x77b   :  { %2472 = vmatpush1.bf16.msra.mxu1 %v6528_v16 }
 0x77c   :  { %2473 = vmatprep.subr.bf16.mxu1 %v6531_v14 }
 0x77f   :  { %2474 = vmatpush1.bf16.msra.mxu1 %v6534_v2 }
 0x780   :  { %2619 = vmatprep.subr.bf16.mxu1 %v6684_v33 }
 0x7d5   :  { %v2108_v9 = vpop.f32.mrb[48].mxu1  ;;  %v2149_v16 = vpop.f32.mrb[44].mxu0 }
 0x7d6   :  { %v2109_v50 = vadd.f32 %v2108_v9, %v7678_v59  ;;  %v2110_v44 = vpop.f32.mrb[49].mxu1  ;;  %v2151_v14 = vpop.f32.mrb[45].mxu0  ;;  %v2150_v54 = vadd.f32 %v2149_v16, %v7681_v7  ;;  %v7767_v16 = vld [vmem:[#allocation54_spill] sm:$0xff] }
 0x7d7   :  { %v2111_v55 = vadd.f32 %v2110_v44, %v7679_v41  ;;  %v2112_v32 = vpop.f32.mrb[50].mxu1  ;;  %v2153_v2 = vpop.f32.mrb[46].mxu0  ;;  %v2152_v46 = vadd.f32 %v2151_v14, %v7680_v19 }
 0x7d8   :  { %v4119_v25 = vmul.f32 -1.442695, %v2109_v50  ;;  %v2113_v29 = vpop.f32.mrb[51].mxu1  ;;  %v2154_v53 = vpop.f32.mrb[47].mxu0 }
 0x7d9   :  { %v4120_v30 = vmul.f32 -1.442695, %v2111_v55  ;;  %v4121_v31 = vmul.f32 -1.442695, %v2152_v46 }
 0x7da   :  { %4919 = vpow2.f32 %v4119_v25 }
 0x7db   :  { %4921 = vpow2.f32 %v4120_v30 }
 0x7dc   :  { %4923 = vpow2.f32 %v4121_v31  ;;  %v7768_v31 = vld [vmem:[#allocation55_spill] sm:$0xff] }
 0x7dd   :  { %4925 = vtanh.f32 %v2150_v54 }
 0x7e4   :  { %v4920_v12 = vpop.eup %4919 }
 0x7e5   :  { %v4922_v45 = vpop.eup %4921  ;;  %v2159_v9 = vadd.f32 1.0, %v4920_v12 }
 0x7e6   :  { %v2165_v26 = vadd.f32 1.0, %v4922_v45  ;;  %v4924_v44 = vpop.eup %4923 }
 0x7e7   :  { %4927 = vrcp.f32 %v2159_v9  ;;  %v4926_v50 = vpop.eup %4925  ;;  %v2172_v25 = vadd.f32 1.0, %v4924_v44 }
 0x7e8   :  { %4929 = vrcp.f32 %v2165_v26 }
 0x7e9   :  { %4931 = vrcp.f32 %v2172_v25 }
 0x7f1   :  { %v4928_v2 = vpop.eup %4927 }
 0x7f2   :  { %v4930_v53 = vpop.eup %4929  ;;  %v2176_v29 = vmul.f32 %v4928_v2, %v4926_v50 }
 0x7f3   :  { %v2175_v30 = vmul.f32 %v4930_v53, %v6421_v27  ;;  %v4932_v54 = vpop.eup %4931  ;;  %v7769_v27 = vld [vmem:[#allocation14_spill] sm:$0xff] }
 0x7f5   :  { %v6693_v14 = vadd.f32 %v2176_v29, %v2175_v30  ;;  %v2325_v32 = vpop.f32.mrb[52].mxu1  ;;  %v7770_v29 = vld [vmem:[#allocation15_spill] sm:$0xff]  ;;  %v7771_v30 = vld [vmem:[#allocation16_spill] sm:$0xff] }
 0x7f6   :  { %v2373_v55 = vadd.f32 %v2325_v32, %v7767_v16  ;;  %v2327_v12 = vpop.f32.mrb[53].mxu1  ;;  %v7772_v16 = vld [vmem:[#allocation17_spill] sm:$0xff] }
 0x7f7   :  { %v2374_v46 = vadd.f32 %v2327_v12, %v7768_v31  ;;  %v2329_v45 = vpop.f32.mrb[54].mxu1  ;;  %4933 = vtanh.f32 %v6693_v14  ;;  %v7774_v31 = vld [vmem:[#allocation57_spill] sm:$0xff] }
 0x7f8   :  { %v2330_v26 = vpop.f32.mrb[55].mxu1  ;;  %v4130_v50 = vmul.f32 -1.442695, %v2373_v55  ;;  %v7773_v55 = vld [vmem:[#allocation18_spill] sm:$0xff] }
 0x7f9   :  { %v4131_v13 = vmul.f32 -1.442695, %v2374_v46  ;;  %v7775_v26 = vld [vmem:[#allocation59_spill] sm:$0xff] }
 0x7fb   :  { %4935 = vpow2.f32 %v4131_v13 }
 0x7fc   :  { %4937 = vpow2.f32 %v4130_v50  ;;  %v7776_v50 = vld [vmem:[#allocation19_spill] sm:$0xff] }
 0x801   :  { %v4934_v9 = vpop.eup %4933 }
 0x802   :  { %v2179_v44 = vmul.f32 %v4934_v9, %v4932_v54 }
 0x804   :  { %v2180_v2 = vpack.c.bf16 %v2179_v44, %v2179_v44 }
 0x805   :  { %v4936_v53 = vpop.eup %4935 }
 0x806   :  { %4389 = vmatmul.mubr.bf16.vlgmr.msra.gmra.mrb[24].mxu0 %v2180_v2  ;;  %2475 = vmatprep.mubr.bf16.mxu1 %v2180_v2  ;;  %v4938_v25 = vpop.eup %4937  ;;  %v2386_v32 = vadd.f32 1.0, %v4936_v53 }
 0x807   :  { %2403 = vmatpush1.bf16.msra.mxu0 %v6246_v5  ;;  %2434 = vmatprep.mubr.bf16.mxu0 %v2180_v2  ;;  %v2380_v13 = vadd.f32 1.0, %v4938_v25  ;;  %v7777_v2 = vld [vmem:[#allocation20_spill] sm:$0xff]  ;;  %v7778_v25 = vld [vmem:[#allocation21_spill] sm:$0xff] }
 0x808   :  { %2404 = vmatprep.subr.bf16.mxu0 %v6249_v28  ;;  %4939 = vrcp.f32 %v2386_v32  ;;  %v7780_v32 = vld [vmem:[#allocation23_spill] sm:$0xff] }
 0x809   :  { %4941 = vrcp.f32 %v2380_v13 }
 0x80b   :  { %2405 = vmatpush1.bf16.msra.mxu0 %v6252_v60 }
 0x80c   :  { %2406 = vmatprep.subr.bf16.mxu0 %v7769_v27 }
 0x80f   :  { %2407 = vmatpush1.bf16.msra.mxu0 %v7770_v29 }
 0x810   :  { %2408 = vmatprep.subr.bf16.mxu0 %v7771_v30 }
 0x813   :  { %2409 = vmatpush1.bf16.msra.mxu0 %v7772_v16 }
 0x814   :  { %2410 = vmatprep.subr.bf16.mxu0 %v7773_v55 }
 0x815   :  { %v2366_v12 = vpop.f32.mrb[56].mxu1 }
 0x816   :  { %v2375_v46 = vadd.f32 %v2366_v12, %v7774_v31  ;;  %v2368_v45 = vpop.f32.mrb[57].mxu1  ;;  %v4940_v12 = vpop.eup %4939  ;;  %v7781_v31 = vld [vmem:[#allocation24_spill] sm:$0xff] }
 0x817   :  { %v2376_v54 = vadd.f32 %v2368_v45, %v7775_v26  ;;  %v2370_v9 = vpop.f32.mrb[58].mxu1  ;;  %2411 = vmatpush1.bf16.msra.mxu0 %v7776_v50  ;;  %v4942_v13 = vpop.eup %4941  ;;  %v2396_v26 = vmul.f32 %v4940_v12, %v6543_v3  ;;  %v7789_v3 = vld [vmem:[#allocation30_spill] sm:$0xff]  ;;  %v7790_v12 = vld [vmem:[#allocation31_spill] sm:$0xff] }
 0x818   :  { %4943 = vtanh.f32 %v2375_v46  ;;  %v2371_v44 = vpop.f32.mrb[59].mxu1  ;;  %2412 = vmatprep.subr.bf16.mxu0 %v7777_v2  ;;  %v7782_v46 = vld [vmem:[#allocation25_spill] sm:$0xff] }
 0x819   :  { %v4132_v53 = vmul.f32 -1.442695, %v2376_v54  ;;  %v7783_v44 = vld [vmem:[#allocation44_spill] sm:$0xff] }
 0x81b   :  { %4945 = vpow2.f32 %v4132_v53  ;;  %2413 = vmatpush1.bf16.msra.mxu0 %v7778_v25 }
 0x81c   :  { %2414 = vmatprep.subr.bf16.mxu0 %v7779_v8 }
 0x81f   :  { %2415 = vmatpush1.bf16.msra.mxu0 %v7780_v32 }
 0x820   :  { %2416 = vmatprep.subr.bf16.mxu0 %v7781_v31 }
 0x822   :  { %v4944_v45 = vpop.eup %4943 }
 0x823   :  { %v2397_v9 = vmul.f32 %v4944_v45, %v4942_v13  ;;  %2417 = vmatpush1.bf16.msra.mxu0 %v7782_v46 }
 0x824   :  { %2418 = vmatprep.subr.bf16.mxu0 %v7783_v44 }
 0x825   :  { %v4946_v54 = vpop.eup %4945  ;;  %v6717_v53 = vadd.f32 %v2397_v9, %v2396_v26  ;;  %v7791_v26 = vld [vmem:[#allocation32_spill] sm:$0xff] }
 0x826   :  { %v2393_v43 = vadd.f32 1.0, %v4946_v54  ;;  %v7792_v54 = vld [vmem:[#allocation33_spill] sm:$0xff] }
 0x827   :  { %7784 = vst [vmem:[#allocation54_spill] sm:$0xff] %v6717_v53  ;;  %4947 = vtanh.f32 %v6717_v53  ;;  %2419 = vmatpush1.bf16.msra.mxu0 %v7785_v49 }
 0x828   :  { %4949 = vrcp.f32 %v2393_v43  ;;  %2420 = vmatprep.subr.bf16.mxu0 %v7786_v47  ;;  %v7793_v43 = vld [vmem:[#allocation34_spill] sm:$0xff] }
 0x82b   :  { %2421 = vmatpush1.bf16.msra.mxu0 %v7787_v37 }
 0x82c   :  { %2422 = vmatprep.subr.bf16.mxu0 %v7788_v15 }
 0x82f   :  { %2423 = vmatpush1.bf16.msra.mxu0 %v7789_v3 }
 0x830   :  { %2424 = vmatprep.subr.bf16.mxu0 %v7790_v12 }
 0x831   :  { %v4948_v13 = vpop.eup %4947 }
 0x832   :  { %v4950_v45 = vpop.eup %4949 }
 0x833   :  { %2425 = vmatpush1.bf16.msra.mxu0 %v7791_v26  ;;  %v2400_v9 = vmul.f32 %v4950_v45, %v4948_v13  ;;  %v7796_v13 = vld [vmem:[#allocation37_spill] sm:$0xff]  ;;  %v7797_v45 = vld [vmem:[#allocation38_spill] sm:$0xff] }
 0x834   :  { %2426 = vmatprep.subr.bf16.mxu0 %v7792_v54 }
 0x835   :  { %v6728_v53 = vpack.c.bf16 %v2400_v9, %v2400_v9  ;;  %v7798_v9 = vld [vmem:[#allocation39_spill] sm:$0xff] }
 0x837   :  { %2427 = vmatpush1.bf16.msra.mxu0 %v7793_v43  ;;  %2476 = vmatmul.mubr.bf16.vlgmr.msra.gmra.mrb[60].mxu1 %v6728_v53 }
 0x838   :  { %2620 = vmatpush1.bf16.msra.mxu1 %v6550_v20  ;;  %2428 = vmatprep.subr.bf16.mxu0 %v7794_v56  ;;  %v7799_v20 = vld [vmem:[#allocation40_spill] sm:$0xff] }
 0x839   :  { %2621 = vmatprep.subr.bf16.mxu1 %v6554_v24  ;;  %2651 = vmatprep.mubr.bf16.mxu1 %v7609_v21 }
 0x83b   :  { %2429 = vmatpush1.bf16.msra.mxu0 %v7795_v48 }
 0x83c   :  { %2622 = vmatpush1.bf16.msra.mxu1 %v6559_v61  ;;  %2430 = vmatprep.subr.bf16.mxu0 %v7796_v13 }
 0x83d   :  { %2623 = vmatprep.subr.bf16.mxu1 %v6562_v11 }
 0x83f   :  { %2431 = vmatpush1.bf16.msra.mxu0 %v7797_v45 }
 0x840   :  { %2624 = vmatpush1.bf16.msra.mxu1 %v6565_v51  ;;  %2432 = vmatprep.subr.bf16.mxu0 %v7798_v9 }
 0x841   :  { %2625 = vmatprep.subr.bf16.mxu1 %v6568_v17  ;;  %v6762_v17 = vld [vmem:[#allocation7 + $0x4] ss:$16 sps:$4 sm:$0xff]  }
 0x843   :  { %2433 = vmatpush1.bf16.msra.mxu0 %v7799_v20 }
 0x844   :  { %2626 = vmatpush1.bf16.msra.mxu1 %v6571_v57  ;;  %4392 = vmatprep.subr.bf16.mxu0 %v7656_v22  ;;  %v6756_v57 = vld [vmem:[#allocation3 + $0xe4] ss:$16 sps:$4 sm:$0xff]  }
 0x845   :  { %2627 = vmatprep.subr.bf16.mxu1 %v6574_v10  ;;  %v6759_v10 = vld [vmem:[#allocation3 + $0xe0] ss:$16 sps:$4 sm:$0xff]  }
 0x846   :  { %2435 = vmatmul.mubr.bf16.vlgmr.msra.gmra.mrb[48].mxu0 %v6728_v53 }
 0x847   :  { %4408 = vmatprep.mubr.msk.bf16.mxu0 %vm5424_vm2, %v7656_v22 }
 0x848   :  { %2628 = vmatpush1.bf16.msra.mxu1 %v6577_v39 }
 0x849   :  { %2629 = vmatprep.subr.bf16.mxu1 %v6580_v35 }
 0x84c   :  { %2630 = vmatpush1.bf16.msra.mxu1 %v6583_v6 }
 0x84d   :  { %2631 = vmatprep.subr.bf16.mxu1 %v6586_v62 }
 0x850   :  { %2632 = vmatpush1.bf16.msra.mxu1 %v6589_v52 }
 0x851   :  { %2633 = vmatprep.subr.bf16.mxu1 %v6756_v57 }
 0x854   :  { %2634 = vmatpush1.bf16.msra.mxu1 %v6759_v10 }
 0x855   :  { %2730 = vmatprep.subr.bf16.mxu1 %v6762_v17 }
 0x857   :  { %2652 = vmatmul.mubr.bf16.vlgmr.msra.gmra.mrb[64].mxu1 %v6728_v53 }
 0x858   :  { %2731 = vmatpush1.bf16.msra.mxu1 %v6246_v5  ;;  %v4751_v5 = vld [vmem:[#allocation8 + $0x100] sm:$0xff]  }
 0x859   :  { %2732 = vmatprep.subr.bf16.mxu1 %v6249_v28  ;;  %4393 = vmatpush3.bf16.msra.mxu0 %v4751_v5  ;;  %v4752_v28 = vld [vmem:[#allocation8 + $0x108] sm:$0xff]  }
 0x85a   :  { %4394 = vmatprep.subr.bf16.mxu0 %v7656_v22 }
 0x85c   :  { %2733 = vmatpush1.bf16.msra.mxu1 %v6252_v60  ;;  %v4753_v60 = vld [vmem:[#allocation8 + $0x110] sm:$0xff]  }
 0x85d   :  { %2734 = vmatprep.subr.bf16.mxu1 %v7769_v27  ;;  %4395 = vmatpush3.bf16.msra.mxu0 %v4752_v28  ;;  %v7802_v28 = vld [vmem:[#allocation58_spill] sm:$0xff] }
 0x85e   :  { %4396 = vmatprep.subr.bf16.mxu0 %v7656_v22 }
 0x860   :  { %2735 = vmatpush1.bf16.msra.mxu1 %v7770_v29 }
 0x861   :  { %2736 = vmatprep.subr.bf16.mxu1 %v7771_v30  ;;  %4397 = vmatpush3.bf16.msra.mxu0 %v4753_v60 }
 0x862   :  { %4398 = vmatprep.subr.bf16.mxu0 %v7656_v22 }
 0x864   :  { %2737 = vmatpush1.bf16.msra.mxu1 %v7772_v16 }
 0x865   :  { %2738 = vmatprep.subr.bf16.mxu1 %v7773_v55 }
 0x868   :  { %2739 = vmatpush1.bf16.msra.mxu1 %v7776_v50 }
 0x869   :  { %2740 = vmatprep.subr.bf16.mxu1 %v7777_v2 }
 0x86c   :  { %2741 = vmatpush1.bf16.msra.mxu1 %v7778_v25 }
 0x86d   :  { %2742 = vmatprep.subr.bf16.mxu1 %v7779_v8 }
 0x870   :  { %2743 = vmatpush1.bf16.msra.mxu1 %v7780_v32 }
 0x871   :  { %2744 = vmatprep.subr.bf16.mxu1 %v7781_v31 }
 0x874   :  { %2745 = vmatpush1.bf16.msra.mxu1 %v7782_v46 }
 0x875   :  { %2746 = vmatprep.subr.bf16.mxu1 %v7783_v44 }
 0x878   :  { %2747 = vmatpush1.bf16.msra.mxu1 %v7785_v49  ;;  %v7800_v49 = vld [vmem:[#allocation88_spill] sm:$0xff] }
 0x879   :  { %2748 = vmatprep.subr.bf16.mxu1 %v7786_v47  ;;  %v4758_v47 = vld [vmem:[#allocation8 + $0x138] sm:$0xff]  }
 0x87c   :  { %2749 = vmatpush1.bf16.msra.mxu1 %v7787_v37  ;;  %v4757_v37 = vld [vmem:[#allocation8 + $0x130] sm:$0xff]  }
 0x87d   :  { %2750 = vmatprep.subr.bf16.mxu1 %v7788_v15  ;;  %v4756_v15 = vld [vmem:[#allocation8 + $0x128] sm:$0xff]  }
 0x880   :  { %2751 = vmatpush1.bf16.msra.mxu1 %v7789_v3 }
 0x881   :  { %2752 = vmatprep.subr.bf16.mxu1 %v7790_v12 }
 0x884   :  { %2753 = vmatpush1.bf16.msra.mxu1 %v7791_v26 }
 0x885   :  { %2754 = vmatprep.subr.bf16.mxu1 %v7792_v54 }
 0x888   :  { %2755 = vmatpush1.bf16.msra.mxu1 %v7793_v43 }
 0x889   :  { %2756 = vmatprep.subr.bf16.mxu1 %v7794_v56  ;;  %v4755_v56 = vld [vmem:[#allocation8 + $0x120] sm:$0xff]  }
 0x88c   :  { %2757 = vmatpush1.bf16.msra.mxu1 %v7795_v48  ;;  %v4754_v48 = vld [vmem:[#allocation8 + $0x118] sm:$0xff]  }
 0x88d   :  { %2758 = vmatprep.subr.bf16.mxu1 %v7796_v13  ;;  %4399 = vmatpush3.bf16.msra.mxu0 %v4754_v48 }
 0x88e   :  { %4400 = vmatprep.subr.bf16.mxu0 %v7656_v22 }
 0x890   :  { %2759 = vmatpush1.bf16.msra.mxu1 %v7797_v45  ;;  %v7801_v45 = vld [vmem:[#allocation56_spill] sm:$0xff] }
 0x891   :  { %2760 = vmatprep.subr.bf16.mxu1 %v7798_v9  ;;  %4401 = vmatpush3.bf16.msra.mxu0 %v4755_v56 }
 0x892   :  { %4402 = vmatprep.subr.bf16.mxu0 %v7656_v22 }
 0x894   :  { %2761 = vmatpush1.bf16.msra.mxu1 %v7799_v20 }
 0x895   :  { %2947 = vmatprep.subr.bf16.mxu1 %v6684_v33  ;;  %4403 = vmatpush3.bf16.msra.mxu0 %v4756_v15 }
 0x896   :  { %4404 = vmatprep.subr.bf16.mxu0 %v7656_v22 }
 0x899   :  { %4405 = vmatpush3.bf16.msra.mxu0 %v4757_v37 }
 0x89a   :  { %4406 = vmatprep.subr.bf16.mxu0 %v7656_v22 }
 0x89d   :  { %4407 = vmatpush3.bf16.msra.mxu0 %v4758_v47 }
 0x89e   :  { %2660 = vmatprep.subr.bf16.mxu0 %v7800_v49 }
 0x90a   :  { %v2477_v8 = vpop.f32.mrb[60].mxu1 }
 0x90b   :  { %v2479_v20 = vpop.f32.mrb[61].mxu1  ;;  %v2478_v3 = vadd.f32 %v2477_v8, %v7681_v7 }
 0x90c   :  { %v2481_v27 = vpop.f32.mrb[62].mxu1  ;;  %v2480_v46 = vadd.f32 %v2479_v20, %v7680_v19 }
 0x90d   :  { %v2482_v29 = vpop.f32.mrb[63].mxu1 }
 0x90e   :  { %v4135_v44 = vmul.f32 -1.442695, %v2480_v46  ;;  %v7807_v46 = vld [vmem:[#allocation93_spill] sm:$0xff] }
 0x919   :  { %v2436_v30 = vpop.f32.mrb[48].mxu0 }
 0x91a   :  { %v2437_v16 = vadd.f32 %v2436_v30, %v7678_v59  ;;  %v2438_v55 = vpop.f32.mrb[49].mxu0 }
 0x91b   :  { %v2439_v50 = vadd.f32 %v2438_v55, %v7679_v41  ;;  %v2440_v2 = vpop.f32.mrb[50].mxu0 }
 0x91c   :  { %v4133_v25 = vmul.f32 -1.442695, %v2437_v16  ;;  %v2441_v32 = vpop.f32.mrb[51].mxu0 }
 0x91d   :  { %v4134_v31 = vmul.f32 -1.442695, %v2439_v50  ;;  %v7804_v32 = vld [vmem:[#allocation90_spill] sm:$0xff] }
 0x91e   :  { %4951 = vpow2.f32 %v4133_v25  ;;  %v7803_v25 = vld [vmem:[#allocation89_spill] sm:$0xff] }
 0x91f   :  { %4953 = vpow2.f32 %v4134_v31  ;;  %v7805_v31 = vld [vmem:[#allocation91_spill] sm:$0xff] }
 0x920   :  { %4955 = vpow2.f32 %v4135_v44  ;;  %v7808_v44 = vld [vmem:[#allocation94_spill] sm:$0xff] }
 0x921   :  { %4957 = vtanh.f32 %v2478_v3  ;;  %v7809_v3 = vld [vmem:[#allocation95_spill] sm:$0xff] }
 0x928   :  { %v4952_v12 = vpop.eup %4951 }
 0x929   :  { %v4954_v26 = vpop.eup %4953  ;;  %v2487_v54 = vadd.f32 1.0, %v4952_v12  ;;  %v7810_v12 = vld [vmem:[#allocation96_spill] sm:$0xff] }
 0x92a   :  { %v2493_v43 = vadd.f32 1.0, %v4954_v26  ;;  %v2653_v13 = vpop.f32.mrb[64].mxu1  ;;  %v4956_v15 = vpop.eup %4955  ;;  %v7811_v26 = vld [vmem:[#allocation97_spill] sm:$0xff] }
 0x92b   :  { %4959 = vrcp.f32 %v2487_v54  ;;  %v6811_v9 = vadd.f32 %v2653_v13, %v7801_v45  ;;  %v2655_v5 = vpop.f32.mrb[65].mxu1  ;;  %v4958_v37 = vpop.eup %4957  ;;  %v2500_v20 = vadd.f32 1.0, %v4956_v15  ;;  %v7812_v54 = vld [vmem:[#allocation41_spill] sm:$0xff]  ;;  %v7814_v13 = vld [vmem:[#allocation43_spill] sm:$0xff]  ;;  %v7817_v45 = vld [vmem:[#allocation72_spill] sm:$0xff] }
 0x92c   :  { %4961 = vrcp.f32 %v2493_v43  ;;  %v6814_v60 = vadd.f32 %v2655_v5, %v7802_v28  ;;  %v2657_v48 = vpop.f32.mrb[66].mxu1  ;;  %v7813_v43 = vld [vmem:[#allocation42_spill] sm:$0xff]  ;;  %v7823_v5 = vld [vmem:[#allocation49_spill] sm:$0xff]  ;;  %v7824_v28 = vld [vmem:[#allocation51_spill] sm:$0xff] }
 0x92d   :  { %v2658_v56 = vpop.f32.mrb[67].mxu1  ;;  %4963 = vrcp.f32 %v2500_v20  ;;  %v7825_v48 = vld [vmem:[#allocation48_spill] sm:$0xff] }
 0x92e   :  { %v7826_v56 = vld [vmem:[#allocation50_spill] sm:$0xff]  ;;  %v7827_v15 = vld [vmem:[#allocation76_spill] sm:$0xff] }
 0x92f   :  { %v7831_v20 = vld [vmem:[#allocation80_spill] sm:$0xff] }
 0x935   :  { %v4960_v47 = vpop.eup %4959 }
 0x936   :  { %v4962_v8 = vpop.eup %4961  ;;  %v2504_v27 = vmul.f32 %v4960_v47, %v4958_v37  ;;  %v7828_v37 = vld [vmem:[#allocation77_spill] sm:$0xff]  ;;  %v7829_v47 = vld [vmem:[#allocation78_spill] sm:$0xff] }
 0x937   :  { %v2503_v29 = vmul.f32 %v4962_v8, %v6693_v14  ;;  %v4964_v16 = vpop.eup %4963  ;;  %v7806_v14 = vld [vmem:[#allocation92_spill] sm:$0xff]  ;;  %v7830_v8 = vld [vmem:[#allocation79_spill] sm:$0xff] }
 0x939   :  { %v6817_v30 = vadd.f32 %v2504_v27, %v2503_v29  ;;  %v7832_v27 = vld [vmem:[#allocation81_spill] sm:$0xff]  ;;  %v7833_v29 = vld [vmem:[#allocation82_spill] sm:$0xff] }
 0x93b   :  { %4965 = vtanh.f32 %v6817_v30 }
 0x945   :  { %v4966_v55 = vpop.eup %4965 }
 0x946   :  { %v2507_v50 = vmul.f32 %v4966_v55, %v4964_v16  ;;  %v7834_v16 = vld [vmem:[#allocation83_spill] sm:$0xff]  ;;  %v7835_v55 = vld [vmem:[#allocation84_spill] sm:$0xff] }
 0x948   :  { %v2508_v2 = vpack.c.bf16 %v2507_v50, %v2507_v50  ;;  %v7836_v50 = vld [vmem:[#allocation85_spill] sm:$0xff] }
 0x94a   :  { %4409 = vmatmul.mubr.bf16.vlgmr.msra.gmra.mrb[24].mxu0 %v2508_v2  ;;  %2762 = vmatprep.mubr.bf16.mxu1 %v2508_v2 }
 0x94b   :  { %2661 = vmatpush1.bf16.msra.mxu0 %v7803_v25  ;;  %2692 = vmatprep.mubr.bf16.mxu0 %v7609_v21 }
 0x94c   :  { %2662 = vmatprep.subr.bf16.mxu0 %v7804_v32 }
 0x94f   :  { %2663 = vmatpush1.bf16.msra.mxu0 %v7805_v31 }
 0x950   :  { %2664 = vmatprep.subr.bf16.mxu0 %v7806_v14 }
 0x953   :  { %2665 = vmatpush1.bf16.msra.mxu0 %v7807_v46 }
 0x954   :  { %2666 = vmatprep.subr.bf16.mxu0 %v7808_v44 }
 0x957   :  { %2667 = vmatpush1.bf16.msra.mxu0 %v7809_v3 }
 0x958   :  { %2668 = vmatprep.subr.bf16.mxu0 %v7810_v12 }
 0x95b   :  { %2669 = vmatpush1.bf16.msra.mxu0 %v7811_v26 }
 0x95c   :  { %2670 = vmatprep.subr.bf16.mxu0 %v6626_v63 }
 0x95f   :  { %2671 = vmatpush1.bf16.msra.mxu0 %v6629_v4 }
 0x960   :  { %2672 = vmatprep.subr.bf16.mxu0 %v6632_v1 }
 0x963   :  { %2673 = vmatpush1.bf16.msra.mxu0 %v6635_v58 }
 0x964   :  { %2674 = vmatprep.subr.bf16.mxu0 %v6638_v18 }
 0x967   :  { %2675 = vmatpush1.bf16.msra.mxu0 %v6641_v23 }
 0x968   :  { %2771 = vmatprep.subr.bf16.mxu0 %v6440_v34  ;;  %v7815_v34 = vld [vmem:[#allocation70_spill] sm:$0xff] }
 0x96a   :  { %2693 = vmatmul.mubr.bf16.vlgmr.msra.gmra.mrb[52].mxu0 %v6728_v53  ;;  %v7816_v53 = vld [vmem:[#allocation71_spill] sm:$0xff] }
 0x96b   :  { %2803 = vmatprep.mubr.bf16.mxu0 %v2508_v2  ;;  %2772 = vmatpush1.bf16.msra.mxu0 %v6444_v36  ;;  %v7818_v36 = vld [vmem:[#allocation73_spill] sm:$0xff]  ;;  %v7837_v2 = vld [vmem:[#allocation86_spill] sm:$0xff] }
 0x96c   :  { %2773 = vmatprep.subr.bf16.mxu0 %v6447_v38  ;;  %v7819_v38 = vld [vmem:[#allocation74_spill] sm:$0xff] }
 0x96f   :  { %2774 = vmatpush1.bf16.msra.mxu0 %v6450_v40  ;;  %v7820_v40 = vld [vmem:[#allocation75_spill] sm:$0xff] }
 0x970   :  { %2775 = vmatprep.subr.bf16.mxu0 %v6453_v42  ;;  %v7821_v42 = vld [vmem:[#allocation46_spill] sm:$0xff] }
 0x973   :  { %2776 = vmatpush1.bf16.msra.mxu0 %v6456_v0  ;;  %v7822_v0 = vld [vmem:[#allocation47_spill] sm:$0xff] }
 0x974   :  { %2777 = vmatprep.subr.bf16.mxu0 %v7812_v54  ;;  %v4145_v54 = vmul.f32 -1.442695, %v6814_v60 }
 0x976   :  { %4967 = vpow2.f32 %v4145_v54  ;;  %v7841_v54 = vld [vmem:[#allocation52_spill] sm:$0xff] }
 0x977   :  { %2778 = vmatpush1.bf16.msra.mxu0 %v7813_v43  ;;  %v4144_v43 = vmul.f32 -1.442695, %v6811_v9 }
 0x978   :  { %2779 = vmatprep.subr.bf16.mxu0 %v7814_v13 }
 0x979   :  { %4969 = vpow2.f32 %v4144_v43  ;;  %v7842_v43 = vld [vmem:[#allocation53_spill] sm:$0xff] }
 0x97b   :  { %2780 = vmatpush1.bf16.msra.mxu0 %v7815_v34 }
 0x97c   :  { %2781 = vmatprep.subr.bf16.mxu0 %v7816_v53 }
 0x97f   :  { %2782 = vmatpush1.bf16.msra.mxu0 %v7817_v45 }
 0x980   :  { %2783 = vmatprep.subr.bf16.mxu0 %v7818_v36  ;;  %v4968_v13 = vpop.eup %4967 }
 0x981   :  { %v2714_v53 = vadd.f32 1.0, %v4968_v13  ;;  %v7843_v13 = vld [vmem:[#allocation45_spill] sm:$0xff] }
 0x983   :  { %2784 = vmatpush1.bf16.msra.mxu0 %v7819_v38  ;;  %v4970_v34 = vpop.eup %4969  ;;  %4971 = vrcp.f32 %v2714_v53  ;;  %v7838_v38 = vld [vmem:[#allocation60_spill] sm:$0xff] }
 0x984   :  { %2785 = vmatprep.subr.bf16.mxu0 %v7820_v40  ;;  %v2708_v45 = vadd.f32 1.0, %v4970_v34  ;;  %v7844_v34 = vld [vmem:[#allocation87_spill] sm:$0xff]  ;;  %v4761_v53 = vld [vmem:[#allocation8 + $0x150] sm:$0xff]  }
 0x986   :  { %4973 = vrcp.f32 %v2708_v45  ;;  %v6984_v45 = vld [vmem:[#allocation7 + $0x168] ss:$16 sps:$4 sm:$0xff]  }
 0x987   :  { %2786 = vmatpush1.bf16.msra.mxu0 %v7821_v42  ;;  %7853 = vst [vmem:[#allocation19_spill] sm:$0xff] %v6984_v45 }
 0x988   :  { %2787 = vmatprep.subr.bf16.mxu0 %v7822_v0  ;;  %v7839_v0 = vld [vmem:[#allocation61_spill] sm:$0xff] }
 0x98b   :  { %2788 = vmatpush1.bf16.msra.mxu0 %v7823_v5 }
 0x98c   :  { %2789 = vmatprep.subr.bf16.mxu0 %v7824_v28 }
 0x98d   :  { %v4972_v9 = vpop.eup %4971 }
 0x98f   :  { %2790 = vmatpush1.bf16.msra.mxu0 %v7825_v48 }
 0x990   :  { %2791 = vmatprep.subr.bf16.mxu0 %v7826_v56  ;;  %v4974_v56 = vpop.eup %4973 }
 0x993   :  { %2792 = vmatpush1.bf16.msra.mxu0 %v7827_v15 }
 0x994   :  { %2793 = vmatprep.subr.bf16.mxu0 %v7828_v37  ;;  %v7840_v37 = vld [vmem:[#allocation54_spill] sm:$0xff] }
 0x997   :  { %2794 = vmatpush1.bf16.msra.mxu0 %v7829_v47  ;;  %v2724_v47 = vmul.f32 %v4972_v9, %v7840_v37  ;;  %v7009_v9 = vld [vmem:[#allocation7 + $0x1ec] ss:$16 sps:$4 sm:$0xff]  }
 0x998   :  { %2795 = vmatprep.subr.bf16.mxu0 %v7830_v8  ;;  %7860 = vst [vmem:[#allocation44_spill] sm:$0xff] %v7009_v9  ;;  %v4766_v37 = vld [vmem:[#allocation8 + $0x178] sm:$0xff]  }
 0x99b   :  { %2796 = vmatpush1.bf16.msra.mxu0 %v7831_v20 }
 0x99c   :  { %2797 = vmatprep.subr.bf16.mxu0 %v7832_v27 }
 0x99f   :  { %2798 = vmatpush1.bf16.msra.mxu0 %v7833_v29 }
 0x9a0   :  { %2799 = vmatprep.subr.bf16.mxu0 %v7834_v16 }
 0x9a3   :  { %2800 = vmatpush1.bf16.msra.mxu0 %v7835_v55 }
 0x9a4   :  { %2801 = vmatprep.subr.bf16.mxu0 %v7836_v50 }
 0x9a7   :  { %2802 = vmatpush1.bf16.msra.mxu0 %v7837_v2 }
 0x9a8   :  { %4412 = vmatprep.subr.bf16.mxu0 %v7656_v22 }
 0xa3d   :  { %v2694_v36 = vpop.f32.mrb[52].mxu0 }
 0xa3e   :  { %v2703_v40 = vadd.f32 %v2694_v36, %v7838_v38  ;;  %v2696_v42 = vpop.f32.mrb[53].mxu0  ;;  %v6988_v36 = vld [vmem:[#allocation7 + $0x18c] ss:$16 sps:$4 sm:$0xff]  }
 0xa3f   :  { %v2704_v5 = vadd.f32 %v2696_v42, %v7839_v0  ;;  %v2698_v28 = vpop.f32.mrb[54].mxu0  ;;  %7854 = vst [vmem:[#allocation20_spill] sm:$0xff] %v6988_v36  ;;  %v4762_v38 = vld [vmem:[#allocation8 + $0x158] sm:$0xff]   ;;  %v4763_v0 = vld [vmem:[#allocation8 + $0x160] sm:$0xff]  }
 0xa40   :  { %4975 = vtanh.f32 %v2703_v40  ;;  %v2699_v48 = vpop.f32.mrb[55].mxu0  ;;  %v6991_v40 = vld [vmem:[#allocation7 + $0x188] ss:$16 sps:$4 sm:$0xff]   ;;  %v6995_v42 = vld [vmem:[#allocation7 + $0x1ac] ss:$16 sps:$4 sm:$0xff]  }
 0xa41   :  { %v4146_v60 = vmul.f32 -1.442695, %v2704_v5  ;;  %7855 = vst [vmem:[#allocation21_spill] sm:$0xff] %v6991_v40  ;;  %7856 = vst [vmem:[#allocation22_spill] sm:$0xff] %v6995_v42  ;;  %v6998_v5 = vld [vmem:[#allocation7 + $0x1a8] ss:$16 sps:$4 sm:$0xff]  }
 0xa42   :  { %7857 = vst [vmem:[#allocation23_spill] sm:$0xff] %v6998_v5  ;;  %v7002_v28 = vld [vmem:[#allocation7 + $0x1cc] ss:$16 sps:$4 sm:$0xff]  }
 0xa43   :  { %4977 = vpow2.f32 %v4146_v60  ;;  %7858 = vst [vmem:[#allocation24_spill] sm:$0xff] %v7002_v28  ;;  %v4764_v48 = vld [vmem:[#allocation8 + $0x168] sm:$0xff]  }
 0xa44   :  { %v7005_v60 = vld [vmem:[#allocation7 + $0x1c8] ss:$16 sps:$4 sm:$0xff]  }
 0xa45   :  { %7859 = vst [vmem:[#allocation25_spill] sm:$0xff] %v7005_v60 }
 0xa4a   :  { %v4976_v15 = vpop.eup %4975 }
 0xa4b   :  { %v2725_v8 = vmul.f32 %v4976_v15, %v4974_v56  ;;  %v4765_v56 = vld [vmem:[#allocation8 + $0x170] sm:$0xff]   ;;  %v7012_v15 = vld [vmem:[#allocation7 + $0x1e8] ss:$16 sps:$4 sm:$0xff]  }
 0xa4c   :  { %7861 = vst [vmem:[#allocation26_spill] sm:$0xff] %v7012_v15 }
 0xa4d   :  { %v4978_v20 = vpop.eup %4977  ;;  %v6875_v27 = vadd.f32 %v2725_v8, %v2724_v47 }
 0xa4e   :  { %v2721_v29 = vadd.f32 1.0, %v4978_v20 }
 0xa4f   :  { %4979 = vtanh.f32 %v6875_v27 }
 0xa50   :  { %4981 = vrcp.f32 %v2721_v29 }
 0xa59   :  { %v4980_v16 = vpop.eup %4979 }
 0xa5a   :  { %v4982_v55 = vpop.eup %4981 }
 0xa5b   :  { %v2728_v50 = vmul.f32 %v4982_v55, %v4980_v16 }
 0xa5d   :  { %v2729_v2 = vpack.c.bf16 %v2728_v50, %v2728_v50 }
 0xa5f   :  { %2763 = vmatmul.mubr.bf16.vlgmr.msra.gmra.mrb[68].mxu1 %v2729_v2  ;;  %2804 = vmatmul.mubr.bf16.vlgmr.msra.gmra.mrb[56].mxu0 %v2729_v2 }
 0xa60   :  { %2948 = vmatpush1.bf16.msra.mxu1 %v7841_v54  ;;  %2979 = vmatprep.mubr.bf16.mxu1 %v7609_v21 }
 0xa61   :  { %2949 = vmatprep.subr.bf16.mxu1 %v6554_v24  ;;  %4428 = vmatprep.mubr.msk.bf16.mxu0 %vm5424_vm2, %v7656_v22  ;;  %v6913_v24 = vld [vmem:[#allocation7 + $0xc] ss:$16 sps:$4 sm:$0xff]  }
 0xa64   :  { %2950 = vmatpush1.bf16.msra.mxu1 %v6559_v61  ;;  %v6916_v61 = vld [vmem:[#allocation7 + $0x8] ss:$16 sps:$4 sm:$0xff]  }
 0xa65   :  { %2951 = vmatprep.subr.bf16.mxu1 %v6562_v11  ;;  %v6919_v11 = vld [vmem:[#allocation7 + $0x2c] ss:$16 sps:$4 sm:$0xff]  }
 0xa68   :  { %2952 = vmatpush1.bf16.msra.mxu1 %v6565_v51  ;;  %v6922_v51 = vld [vmem:[#allocation7 + $0x28] ss:$16 sps:$4 sm:$0xff]  }
 0xa69   :  { %2953 = vmatprep.subr.bf16.mxu1 %v7842_v43 }
 0xa6c   :  { %2954 = vmatpush1.bf16.msra.mxu1 %v7843_v13 }
 0xa6d   :  { %2955 = vmatprep.subr.bf16.mxu1 %v7844_v34 }
 0xa70   :  { %2956 = vmatpush1.bf16.msra.mxu1 %v6577_v39  ;;  %v6925_v39 = vld [vmem:[#allocation7 + $0x4c] ss:$16 sps:$4 sm:$0xff]  }
 0xa71   :  { %2957 = vmatprep.subr.bf16.mxu1 %v6580_v35  ;;  %v6928_v35 = vld [vmem:[#allocation7 + $0x48] ss:$16 sps:$4 sm:$0xff]  }
 0xa74   :  { %2958 = vmatpush1.bf16.msra.mxu1 %v6583_v6  ;;  %v6931_v6 = vld [vmem:[#allocation7 + $0x6c] ss:$16 sps:$4 sm:$0xff]  }
 0xa75   :  { %2959 = vmatprep.subr.bf16.mxu1 %v6586_v62  ;;  %v6934_v62 = vld [vmem:[#allocation7 + $0x68] ss:$16 sps:$4 sm:$0xff]  }
 0xa78   :  { %2960 = vmatpush1.bf16.msra.mxu1 %v6589_v52  ;;  %v6937_v52 = vld [vmem:[#allocation7 + $0x8c] ss:$16 sps:$4 sm:$0xff]  }
 0xa79   :  { %2961 = vmatprep.subr.bf16.mxu1 %v6756_v57 }
 0xa7c   :  { %2962 = vmatpush1.bf16.msra.mxu1 %v6759_v10 }
 0xa7d   :  { %2988 = vmatprep.subr.bf16.mxu1 %v7800_v49  ;;  %v6958_v49 = vld [vmem:[#allocation7 + $0xe8] ss:$16 sps:$4 sm:$0xff]  }
 0xa7e   :  { %7845 = vst [vmem:[#allocation55_spill] sm:$0xff] %v6958_v49 }
 0xa7f   :  { %2980 = vmatmul.mubr.bf16.vlgmr.msra.gmra.mrb[72].mxu1 %v2729_v2 }
 0xa80   :  { %2989 = vmatpush1.bf16.msra.mxu1 %v7803_v25  ;;  %3020 = vmatprep.mubr.bf16.mxu1 %v7609_v21  ;;  %v6961_v25 = vld [vmem:[#allocation7 + $0x10c] ss:$16 sps:$4 sm:$0xff]  }
 0xa81   :  { %2990 = vmatprep.subr.bf16.mxu1 %v7804_v32  ;;  %7846 = vst [vmem:[#allocation14_spill] sm:$0xff] %v6961_v25  ;;  %v6964_v32 = vld [vmem:[#allocation7 + $0x108] ss:$16 sps:$4 sm:$0xff]  }
 0xa82   :  { %7847 = vst [vmem:[#allocation15_spill] sm:$0xff] %v6964_v32 }
 0xa84   :  { %2991 = vmatpush1.bf16.msra.mxu1 %v7805_v31  ;;  %v6967_v31 = vld [vmem:[#allocation7 + $0x12c] ss:$16 sps:$4 sm:$0xff]  }
 0xa85   :  { %2992 = vmatprep.subr.bf16.mxu1 %v7806_v14  ;;  %7848 = vst [vmem:[#allocation16_spill] sm:$0xff] %v6967_v31  ;;  %v4759_v14 = vld [vmem:[#allocation8 + $0x140] sm:$0xff]  }
 0xa86   :  { %4413 = vmatpush3.bf16.msra.mxu0 %v4759_v14 }
 0xa87   :  { %4414 = vmatprep.subr.bf16.mxu0 %v7656_v22 }
 0xa88   :  { %2993 = vmatpush1.bf16.msra.mxu1 %v7807_v46  ;;  %v6970_v46 = vld [vmem:[#allocation7 + $0x128] ss:$16 sps:$4 sm:$0xff]  }
 0xa89   :  { %2994 = vmatprep.subr.bf16.mxu1 %v7808_v44  ;;  %7849 = vst [vmem:[#allocation17_spill] sm:$0xff] %v6970_v46  ;;  %v6974_v44 = vld [vmem:[#allocation7 + $0x14c] ss:$16 sps:$4 sm:$0xff]  }
 0xa8a   :  { %7850 = vst [vmem:[#allocation18_spill] sm:$0xff] %v6974_v44 }
 0xa8c   :  { %2995 = vmatpush1.bf16.msra.mxu1 %v7809_v3  ;;  %v4760_v3 = vld [vmem:[#allocation8 + $0x148] sm:$0xff]  }
 0xa8d   :  { %2996 = vmatprep.subr.bf16.mxu1 %v7810_v12  ;;  %4415 = vmatpush3.bf16.msra.mxu0 %v4760_v3  ;;  %v6977_v12 = vld [vmem:[#allocation7 + $0x148] ss:$16 sps:$4 sm:$0xff]  }
 0xa8e   :  { %7851 = vst [vmem:[#allocation57_spill] sm:$0xff] %v6977_v12  ;;  %4416 = vmatprep.subr.bf16.mxu0 %v7656_v22 }
 0xa90   :  { %2997 = vmatpush1.bf16.msra.mxu1 %v7811_v26  ;;  %v6981_v26 = vld [vmem:[#allocation7 + $0x16c] ss:$16 sps:$4 sm:$0xff]  }
 0xa91   :  { %2998 = vmatprep.subr.bf16.mxu1 %v6626_v63  ;;  %v6952_v63 = vld [vmem:[#allocation7 + $0xc8] ss:$16 sps:$4 sm:$0xff]   ;;  %7852 = vst [vmem:[#allocation59_spill] sm:$0xff] %v6981_v26  ;;  %4417 = vmatpush3.bf16.msra.mxu0 %v4761_v53 }
 0xa92   :  { %4418 = vmatprep.subr.bf16.mxu0 %v7656_v22 }
 0xa94   :  { %2999 = vmatpush1.bf16.msra.mxu1 %v6629_v4  ;;  %v6955_v4 = vld [vmem:[#allocation7 + $0xec] ss:$16 sps:$4 sm:$0xff]  }
 0xa95   :  { %3000 = vmatprep.subr.bf16.mxu1 %v6632_v1  ;;  %v6940_v1 = vld [vmem:[#allocation7 + $0x88] ss:$16 sps:$4 sm:$0xff]   ;;  %4419 = vmatpush3.bf16.msra.mxu0 %v4762_v38 }
 0xa96   :  { %4420 = vmatprep.subr.bf16.mxu0 %v7656_v22 }
 0xa98   :  { %3001 = vmatpush1.bf16.msra.mxu1 %v6635_v58  ;;  %v6943_v58 = vld [vmem:[#allocation7 + $0xac] ss:$16 sps:$4 sm:$0xff]  }
 0xa99   :  { %3002 = vmatprep.subr.bf16.mxu1 %v6638_v18  ;;  %v6946_v18 = vld [vmem:[#allocation7 + $0xa8] ss:$16 sps:$4 sm:$0xff]   ;;  %4421 = vmatpush3.bf16.msra.mxu0 %v4763_v0 }
 0xa9a   :  { %4422 = vmatprep.subr.bf16.mxu0 %v7656_v22 }
 0xa9c   :  { %3003 = vmatpush1.bf16.msra.mxu1 %v6641_v23  ;;  %v6949_v23 = vld [vmem:[#allocation7 + $0xcc] ss:$16 sps:$4 sm:$0xff]  }
 0xa9d   :  { %3099 = vmatprep.subr.bf16.mxu1 %v6913_v24  ;;  %4423 = vmatpush3.bf16.msra.mxu0 %v4764_v48 }
 0xa9e   :  { %4424 = vmatprep.subr.bf16.mxu0 %v7656_v22 }
 0xa9f   :  { %3021 = vmatmul.mubr.bf16.vlgmr.msra.gmra.mrb[76].mxu1 %v2729_v2 }
 0xaa0   :  { %3100 = vmatpush1.bf16.msra.mxu1 %v6916_v61 }
 0xaa1   :  { %3101 = vmatprep.subr.bf16.mxu1 %v6919_v11  ;;  %4425 = vmatpush3.bf16.msra.mxu0 %v4765_v56 }
 0xaa2   :  { %4426 = vmatprep.subr.bf16.mxu0 %v7656_v22 }
 0xaa4   :  { %3102 = vmatpush1.bf16.msra.mxu1 %v6922_v51 }
 0xaa5   :  { %3103 = vmatprep.subr.bf16.mxu1 %v6925_v39  ;;  %4427 = vmatpush3.bf16.msra.mxu0 %v4766_v37 }
 0xaa6   :  { %3058 = vmatprep.subr.bf16.mxu0 %v6762_v17 }
 0xaa8   :  { %3104 = vmatpush1.bf16.msra.mxu1 %v6928_v35 }
 0xaa9   :  { %3105 = vmatprep.subr.bf16.mxu1 %v6931_v6 }
 0xaac   :  { %3106 = vmatpush1.bf16.msra.mxu1 %v6934_v62 }
 0xaad   :  { %3107 = vmatprep.subr.bf16.mxu1 %v6937_v52 }
 0xab0   :  { %3108 = vmatpush1.bf16.msra.mxu1 %v6940_v1 }
 0xab1   :  { %3109 = vmatprep.subr.bf16.mxu1 %v6943_v58 }
 0xab4   :  { %3110 = vmatpush1.bf16.msra.mxu1 %v6946_v18 }
 0xab5   :  { %3111 = vmatprep.subr.bf16.mxu1 %v6949_v23 }
 0xab8   :  { %3112 = vmatpush1.bf16.msra.mxu1 %v6952_v63 }
 0xab9   :  { %3113 = vmatprep.subr.bf16.mxu1 %v6955_v4 }
 0xabc   :  { %3114 = vmatpush1.bf16.msra.mxu1 %v6958_v49  ;;  %v5279_v49 = vld [vmem:[#allocation3 + $0xc0] ss:$16 sps:$4 sm:$0xff]  }
 0xabd   :  { %3115 = vmatprep.subr.bf16.mxu1 %v6961_v25  ;;  %v5274_v25 = vld [vmem:[#allocation3 + $0x84] ss:$16 sps:$4 sm:$0xff]  }
 0xac0   :  { %3116 = vmatpush1.bf16.msra.mxu1 %v6964_v32  ;;  %v5273_v32 = vld [vmem:[#allocation3 + $0x60] ss:$16 sps:$4 sm:$0xff]  }
 0xac1   :  { %3117 = vmatprep.subr.bf16.mxu1 %v6967_v31  ;;  %v5271_v31 = vld [vmem:[#allocation3 + $0x64] ss:$16 sps:$4 sm:$0xff]  }
 0xac4   :  { %3118 = vmatpush1.bf16.msra.mxu1 %v6970_v46  ;;  %v5270_v46 = vld [vmem:[#allocation7 + $0x1e4] ss:$16 sps:$4 sm:$0xff]  }
 0xac5   :  { %3119 = vmatprep.subr.bf16.mxu1 %v6974_v44  ;;  %v5268_v44 = vld [vmem:[#allocation7 + $0x1c0] ss:$16 sps:$4 sm:$0xff]  }
 0xac8   :  { %3120 = vmatpush1.bf16.msra.mxu1 %v6977_v12  ;;  %v5267_v12 = vld [vmem:[#allocation3 + $0x44] ss:$16 sps:$4 sm:$0xff]  }
 0xac9   :  { %3121 = vmatprep.subr.bf16.mxu1 %v6981_v26  ;;  %v5263_v26 = vld [vmem:[#allocation3 + $0x24] ss:$16 sps:$4 sm:$0xff]  }
 0xacc   :  { %3122 = vmatpush1.bf16.msra.mxu1 %v6984_v45  ;;  %v7112_v45 = vld [vmem:[#allocation7 + $0x1a4] ss:$16 sps:$4 sm:$0xff]  }
 0xacd   :  { %3123 = vmatprep.subr.bf16.mxu1 %v6988_v36  ;;  %v5261_v36 = vld [vmem:[#allocation3] ss:$16 sps:$4 sm:$0xff]  }
 0xad0   :  { %3124 = vmatpush1.bf16.msra.mxu1 %v6991_v40  ;;  %v7108_v40 = vld [vmem:[#allocation7 + $0x180] ss:$16 sps:$4 sm:$0xff]  }
 0xad1   :  { %3125 = vmatprep.subr.bf16.mxu1 %v6995_v42 }
 0xad4   :  { %3126 = vmatpush1.bf16.msra.mxu1 %v6998_v5  ;;  %v7103_v5 = vld [vmem:[#allocation7 + $0x184] ss:$16 sps:$4 sm:$0xff]  }
 0xad5   :  { %3127 = vmatprep.subr.bf16.mxu1 %v7002_v28  ;;  %v7082_v28 = vld [vmem:[#allocation7 + $0x100] ss:$16 sps:$4 sm:$0xff]  }
 0xad8   :  { %3128 = vmatpush1.bf16.msra.mxu1 %v7005_v60 }
 0xad9   :  { %3129 = vmatprep.subr.bf16.mxu1 %v7009_v9 }
 0xadc   :  { %3130 = vmatpush1.bf16.msra.mxu1 %v7012_v15 }
 0xadd   :  { %3275 = vmatprep.subr.bf16.mxu1 %v6684_v33 }
 0xb32   :  { %v2764_v47 = vpop.f32.mrb[68].mxu1  ;;  %v2805_v8 = vpop.f32.mrb[56].mxu0 }
 0xb33   :  { %v2765_v20 = vadd.f32 %v2764_v47, %v7678_v59  ;;  %v2766_v29 = vpop.f32.mrb[69].mxu1  ;;  %v2807_v16 = vpop.f32.mrb[57].mxu0  ;;  %v2806_v3 = vadd.f32 %v2805_v8, %v7681_v7  ;;  %v7862_v8 = vld [vmem:[#allocation62_spill] sm:$0xff] }
 0xb34   :  { %v2767_v55 = vadd.f32 %v2766_v29, %v7679_v41  ;;  %v2768_v50 = vpop.f32.mrb[70].mxu1  ;;  %v2809_v2 = vpop.f32.mrb[58].mxu0  ;;  %v2808_v33 = vadd.f32 %v2807_v16, %v7680_v19 }
 0xb35   :  { %v4147_v54 = vmul.f32 -1.442695, %v2765_v20  ;;  %v2769_v43 = vpop.f32.mrb[71].mxu1  ;;  %v2810_v13 = vpop.f32.mrb[59].mxu0 }
 0xb36   :  { %v4148_v34 = vmul.f32 -1.442695, %v2767_v55  ;;  %v4149_v14 = vmul.f32 -1.442695, %v2808_v33  ;;  %v7863_v13 = vld [vmem:[#allocation63_spill] sm:$0xff] }
 0xb37   :  { %4983 = vpow2.f32 %v4147_v54 }
 0xb38   :  { %4985 = vpow2.f32 %v4148_v34 }
 0xb39   :  { %4987 = vpow2.f32 %v4149_v14 }
 0xb3a   :  { %4989 = vtanh.f32 %v2806_v3 }
 0xb41   :  { %v4984_v53 = vpop.eup %4983 }
 0xb42   :  { %v4986_v38 = vpop.eup %4985  ;;  %v2815_v0 = vadd.f32 1.0, %v4984_v53 }
 0xb43   :  { %v2821_v48 = vadd.f32 1.0, %v4986_v38  ;;  %v4988_v56 = vpop.eup %4987 }
 0xb44   :  { %4991 = vrcp.f32 %v2815_v0  ;;  %v4990_v37 = vpop.eup %4989  ;;  %v2828_v55 = vadd.f32 1.0, %v4988_v56 }
 0xb45   :  { %4993 = vrcp.f32 %v2821_v48 }
 0xb46   :  { %4995 = vrcp.f32 %v2828_v55  ;;  %v7040_v55 = vld [vmem:[#allocation7 + $0x40] ss:$16 sps:$4 sm:$0xff]  }
 0xb4e   :  { %v4992_v47 = vpop.eup %4991 }
 0xb4f   :  { %v4994_v20 = vpop.eup %4993  ;;  %v2832_v29 = vmul.f32 %v4992_v47, %v4990_v37  ;;  %v7031_v37 = vld [vmem:[#allocation7 + $0x24] ss:$16 sps:$4 sm:$0xff]   ;;  %v7034_v47 = vld [vmem:[#allocation7 + $0x20] ss:$16 sps:$4 sm:$0xff]  }
 0xb50   :  { %v2831_v50 = vmul.f32 %v4994_v20, %v6817_v30  ;;  %v4996_v3 = vpop.eup %4995  ;;  %v7028_v30 = vld [vmem:[#allocation7] ss:$16 sps:$4 sm:$0xff]   ;;  %v7037_v20 = vld [vmem:[#allocation7 + $0x44] ss:$16 sps:$4 sm:$0xff]  }
 0xb52   :  { %v7023_v16 = vadd.f32 %v2832_v29, %v2831_v50  ;;  %v2981_v2 = vpop.f32.mrb[72].mxu1 }
 0xb53   :  { %v3029_v54 = vadd.f32 %v2981_v2, %v7862_v8  ;;  %v2983_v43 = vpop.f32.mrb[73].mxu1  ;;  %v7043_v2 = vld [vmem:[#allocation7 + $0x64] ss:$16 sps:$4 sm:$0xff]  }
 0xb54   :  { %v3030_v34 = vadd.f32 %v2983_v43, %v7863_v13  ;;  %v2985_v33 = vpop.f32.mrb[74].mxu1  ;;  %4997 = vtanh.f32 %v7023_v16  ;;  %v7046_v43 = vld [vmem:[#allocation7 + $0x60] ss:$16 sps:$4 sm:$0xff]   ;;  %v7049_v13 = vld [vmem:[#allocation7 + $0x84] ss:$16 sps:$4 sm:$0xff]  }
 0xb55   :  { %v2986_v14 = vpop.f32.mrb[75].mxu1  ;;  %v4158_v0 = vmul.f32 -1.442695, %v3029_v54  ;;  %v7864_v33 = vld [vmem:[#allocation65_spill] sm:$0xff] }
 0xb56   :  { %v4159_v38 = vmul.f32 -1.442695, %v3030_v34 }
 0xb58   :  { %4999 = vpow2.f32 %v4159_v38 }
 0xb59   :  { %5001 = vpow2.f32 %v4158_v0 }
 0xb5e   :  { %v4998_v53 = vpop.eup %4997 }
 0xb5f   :  { %v2835_v48 = vmul.f32 %v4998_v53, %v4996_v3  ;;  %v7865_v53 = vld [vmem:[#allocation67_spill] sm:$0xff] }
 0xb61   :  { %v2836_v56 = vpack.c.bf16 %v2835_v48, %v2835_v48  ;;  %v7054_v48 = vld [vmem:[#allocation7 + $0x80] ss:$16 sps:$4 sm:$0xff]  }
 0xb62   :  { %v5000_v29 = vpop.eup %4999 }
 0xb63   :  { %4429 = vmatmul.mubr.bf16.vlgmr.msra.gmra.mrb[24].mxu0 %v2836_v56  ;;  %3131 = vmatprep.mubr.bf16.mxu1 %v2836_v56  ;;  %v5002_v50 = vpop.eup %5001  ;;  %v3042_v8 = vadd.f32 1.0, %v5000_v29  ;;  %v7057_v29 = vld [vmem:[#allocation7 + $0xa4] ss:$16 sps:$4 sm:$0xff]  }
 0xb64   :  { %3059 = vmatpush1.bf16.msra.mxu0 %v7028_v30  ;;  %3090 = vmatprep.mubr.bf16.mxu0 %v2836_v56  ;;  %v3036_v54 = vadd.f32 1.0, %v5002_v50 }
 0xb65   :  { %3060 = vmatprep.subr.bf16.mxu0 %v7031_v37  ;;  %5003 = vrcp.f32 %v3042_v8  ;;  %v7060_v8 = vld [vmem:[#allocation7 + $0xa0] ss:$16 sps:$4 sm:$0xff]  }
 0xb66   :  { %5005 = vrcp.f32 %v3036_v54  ;;  %v7063_v54 = vld [vmem:[#allocation7 + $0xc4] ss:$16 sps:$4 sm:$0xff]  }
 0xb68   :  { %3061 = vmatpush1.bf16.msra.mxu0 %v7034_v47 }
 0xb69   :  { %3062 = vmatprep.subr.bf16.mxu0 %v7037_v20 }
 0xb6c   :  { %3063 = vmatpush1.bf16.msra.mxu0 %v7040_v55 }
 0xb6d   :  { %3064 = vmatprep.subr.bf16.mxu0 %v7043_v2 }
 0xb70   :  { %3065 = vmatpush1.bf16.msra.mxu0 %v7046_v43 }
 0xb71   :  { %3066 = vmatprep.subr.bf16.mxu0 %v7049_v13 }
 0xb72   :  { %v3022_v34 = vpop.f32.mrb[76].mxu1 }
 0xb73   :  { %v3031_v14 = vadd.f32 %v3022_v34, %v7864_v33  ;;  %v3024_v3 = vpop.f32.mrb[77].mxu1  ;;  %v7066_v34 = vld [vmem:[#allocation7 + $0xc0] ss:$16 sps:$4 sm:$0xff]   ;;  %v5004_v33 = vpop.eup %5003 }
 0xb74   :  { %v3032_v38 = vadd.f32 %v3024_v3, %v7865_v53  ;;  %v3026_v0 = vpop.f32.mrb[78].mxu1  ;;  %3067 = vmatpush1.bf16.msra.mxu0 %v7054_v48  ;;  %v5006_v3 = vpop.eup %5005 }
 0xb75   :  { %5007 = vtanh.f32 %v3031_v14  ;;  %v3027_v56 = vpop.f32.mrb[79].mxu1  ;;  %3068 = vmatprep.subr.bf16.mxu0 %v7057_v29  ;;  %v7069_v14 = vld [vmem:[#allocation7 + $0xe4] ss:$16 sps:$4 sm:$0xff]  }
 0xb76   :  { %v4160_v50 = vmul.f32 -1.442695, %v3032_v38  ;;  %v3052_v38 = vmul.f32 %v5004_v33, %v6875_v27  ;;  %v7073_v56 = vld [vmem:[#allocation7 + $0xe0] ss:$16 sps:$4 sm:$0xff]   ;;  %v7085_v27 = vld [vmem:[#allocation7 + $0x124] ss:$16 sps:$4 sm:$0xff]  }
 0xb77   :  { %v7088_v33 = vld [vmem:[#allocation7 + $0x120] ss:$16 sps:$4 sm:$0xff]  }
 0xb78   :  { %5009 = vpow2.f32 %v4160_v50  ;;  %3069 = vmatpush1.bf16.msra.mxu0 %v7060_v8  ;;  %v7076_v50 = vld [vmem:[#allocation7 + $0x104] ss:$16 sps:$4 sm:$0xff]  }
 0xb79   :  { %3070 = vmatprep.subr.bf16.mxu0 %v7063_v54 }
 0xb7c   :  { %3071 = vmatpush1.bf16.msra.mxu0 %v7066_v34 }
 0xb7d   :  { %3072 = vmatprep.subr.bf16.mxu0 %v7069_v14 }
 0xb7f   :  { %v5008_v53 = vpop.eup %5007 }
 0xb80   :  { %v3053_v0 = vmul.f32 %v5008_v53, %v5006_v3  ;;  %3073 = vmatpush1.bf16.msra.mxu0 %v7073_v56  ;;  %v7091_v3 = vld [vmem:[#allocation7 + $0x144] ss:$16 sps:$4 sm:$0xff]  }
 0xb81   :  { %3074 = vmatprep.subr.bf16.mxu0 %v7076_v50  ;;  %v7097_v53 = vld [vmem:[#allocation7 + $0x164] ss:$16 sps:$4 sm:$0xff]  }
 0xb82   :  { %v5010_v15 = vpop.eup %5009  ;;  %v7079_v9 = vadd.f32 %v3053_v0, %v3052_v38  ;;  %v7100_v0 = vld [vmem:[#allocation7 + $0x160] ss:$16 sps:$4 sm:$0xff]  }
 0xb83   :  { %v3049_v60 = vadd.f32 1.0, %v5010_v15  ;;  %v7094_v15 = vld [vmem:[#allocation7 + $0x140] ss:$16 sps:$4 sm:$0xff]  }
 0xb84   :  { %7866 = vst [vmem:[#allocation27_spill] sm:$0xff] %v7079_v9  ;;  %5011 = vtanh.f32 %v7079_v9  ;;  %3075 = vmatpush1.bf16.msra.mxu0 %v7082_v28 }
 0xb85   :  { %5013 = vrcp.f32 %v3049_v60  ;;  %3076 = vmatprep.subr.bf16.mxu0 %v7085_v27 }
 0xb88   :  { %3077 = vmatpush1.bf16.msra.mxu0 %v7088_v33 }
 0xb89   :  { %3078 = vmatprep.subr.bf16.mxu0 %v7091_v3 }
 0xb8c   :  { %3079 = vmatpush1.bf16.msra.mxu0 %v7094_v15 }
 0xb8d   :  { %3080 = vmatprep.subr.bf16.mxu0 %v7097_v53 }
 0xb8e   :  { %v5012_v60 = vpop.eup %5011 }
 0xb8f   :  { %v5014_v38 = vpop.eup %5013 }
 0xb90   :  { %3081 = vmatpush1.bf16.msra.mxu0 %v7100_v0  ;;  %v3056_v9 = vmul.f32 %v5014_v38, %v5012_v60  ;;  %v7116_v60 = vld [vmem:[#allocation7 + $0x1a0] ss:$16 sps:$4 sm:$0xff]   ;;  %v5266_v38 = vld [vmem:[#allocation7 + $0x1c4] ss:$16 sps:$4 sm:$0xff]  }
 0xb91   :  { %3082 = vmatprep.subr.bf16.mxu0 %v7103_v5 }
 0xb92   :  { %v7106_v42 = vpack.c.bf16 %v3056_v9, %v3056_v9  ;;  %v5265_v9 = vld [vmem:[#allocation3 + $0x20] ss:$16 sps:$4 sm:$0xff]  }
 0xb94   :  { %3083 = vmatpush1.bf16.msra.mxu0 %v7108_v40  ;;  %3132 = vmatmul.mubr.bf16.vlgmr.msra.gmra.mrb[80].mxu1 %v7106_v42 }
 0xb95   :  { %3276 = vmatpush1.bf16.msra.mxu1 %v5261_v36  ;;  %3084 = vmatprep.subr.bf16.mxu0 %v7112_v45  ;;  %v5269_v36 = vld [vmem:[#allocation3 + $0x40] ss:$16 sps:$4 sm:$0xff]  }
 0xb96   :  { %3277 = vmatprep.subr.bf16.mxu1 %v5263_v26  ;;  %3307 = vmatprep.mubr.bf16.mxu1 %v7609_v21  ;;  %v5272_v26 = vld [vmem:[#allocation7 + $0x1e0] ss:$16 sps:$4 sm:$0xff]  }
 0xb98   :  { %3085 = vmatpush1.bf16.msra.mxu0 %v7116_v60 }
 0xb99   :  { %3278 = vmatpush1.bf16.msra.mxu1 %v5265_v9  ;;  %3086 = vmatprep.subr.bf16.mxu0 %v5266_v38  ;;  %v5276_v9 = vld [vmem:[#allocation3 + $0xa4] ss:$16 sps:$4 sm:$0xff]  }
 0xb9a   :  { %3279 = vmatprep.subr.bf16.mxu1 %v5267_v12  ;;  %v5275_v12 = vld [vmem:[#allocation3 + $0x80] ss:$16 sps:$4 sm:$0xff]  }
 0xb9c   :  { %3087 = vmatpush1.bf16.msra.mxu0 %v5268_v44 }
 0xb9d   :  { %3280 = vmatpush1.bf16.msra.mxu1 %v5269_v36  ;;  %3088 = vmatprep.subr.bf16.mxu0 %v5270_v46  ;;  %v5277_v36 = vld [vmem:[#allocation3 + $0xa0] ss:$16 sps:$4 sm:$0xff]  }
 0xb9e   :  { %3281 = vmatprep.subr.bf16.mxu1 %v5271_v31  ;;  %v5278_v31 = vld [vmem:[#allocation3 + $0xc4] ss:$16 sps:$4 sm:$0xff]  }
 0xba0   :  { %3089 = vmatpush1.bf16.msra.mxu0 %v5272_v26 }
 0xba1   :  { %3282 = vmatpush1.bf16.msra.mxu1 %v5273_v32  ;;  %4432 = vmatprep.subr.bf16.mxu0 %v7656_v22  ;;  %v4772_v32 = vld [vmem:[#allocation8 + $0x1a8] sm:$0xff]  }
 0xba2   :  { %3283 = vmatprep.subr.bf16.mxu1 %v5274_v25  ;;  %v4771_v25 = vld [vmem:[#allocation8 + $0x1a0] sm:$0xff]  }
 0xba3   :  { %3091 = vmatmul.mubr.bf16.vlgmr.msra.gmra.mrb[60].mxu0 %v7106_v42 }
 0xba4   :  { %4448 = vmatprep.mubr.msk.bf16.mxu0 %vm5424_vm2, %v7656_v22 }
 0xba5   :  { %3284 = vmatpush1.bf16.msra.mxu1 %v5275_v12 }
 0xba6   :  { %3285 = vmatprep.subr.bf16.mxu1 %v5276_v9 }
 0xba9   :  { %3286 = vmatpush1.bf16.msra.mxu1 %v5277_v36 }
 0xbaa   :  { %3287 = vmatprep.subr.bf16.mxu1 %v5278_v31 }
 0xbad   :  { %3288 = vmatpush1.bf16.msra.mxu1 %v5279_v49  ;;  %v4770_v49 = vld [vmem:[#allocation8 + $0x198] sm:$0xff]  }
 0xbae   :  { %3289 = vmatprep.subr.bf16.mxu1 %v6756_v57  ;;  %v4768_v57 = vld [vmem:[#allocation8 + $0x188] sm:$0xff]  }
 0xbb1   :  { %3290 = vmatpush1.bf16.msra.mxu1 %v6759_v10  ;;  %v4769_v10 = vld [vmem:[#allocation8 + $0x190] sm:$0xff]  }
 0xbb2   :  { %3386 = vmatprep.subr.bf16.mxu1 %v6762_v17  ;;  %v4767_v17 = vld [vmem:[#allocation8 + $0x180] sm:$0xff]  }
 0xbb3   :  { %4433 = vmatpush3.bf16.msra.mxu0 %v4767_v17 }
 0xbb4   :  { %3308 = vmatmul.mubr.bf16.vlgmr.msra.gmra.mrb[84].mxu1 %v7106_v42  ;;  %4434 = vmatprep.subr.bf16.mxu0 %v7656_v22 }
 0xbb5   :  { %3387 = vmatpush1.bf16.msra.mxu1 %v7028_v30 }
 0xbb6   :  { %3388 = vmatprep.subr.bf16.mxu1 %v7031_v37 }
 0xbb7   :  { %4435 = vmatpush3.bf16.msra.mxu0 %v4768_v57 }
 0xbb8   :  { %4436 = vmatprep.subr.bf16.mxu0 %v7656_v22 }
 0xbb9   :  { %3389 = vmatpush1.bf16.msra.mxu1 %v7034_v47 }
 0xbba   :  { %3390 = vmatprep.subr.bf16.mxu1 %v7037_v20 }
 0xbbb   :  { %4437 = vmatpush3.bf16.msra.mxu0 %v4769_v10 }
 0xbbc   :  { %4438 = vmatprep.subr.bf16.mxu0 %v7656_v22 }
 0xbbd   :  { %3391 = vmatpush1.bf16.msra.mxu1 %v7040_v55 }
 0xbbe   :  { %3392 = vmatprep.subr.bf16.mxu1 %v7043_v2 }
 0xbbf   :  { %4439 = vmatpush3.bf16.msra.mxu0 %v4770_v49 }
 0xbc0   :  { %4440 = vmatprep.subr.bf16.mxu0 %v7656_v22 }
 0xbc1   :  { %3393 = vmatpush1.bf16.msra.mxu1 %v7046_v43 }
 0xbc2   :  { %3394 = vmatprep.subr.bf16.mxu1 %v7049_v13 }
 0xbc3   :  { %4441 = vmatpush3.bf16.msra.mxu0 %v4771_v25 }
 0xbc4   :  { %4442 = vmatprep.subr.bf16.mxu0 %v7656_v22 }
 0xbc5   :  { %3395 = vmatpush1.bf16.msra.mxu1 %v7054_v48 }
 0xbc6   :  { %3396 = vmatprep.subr.bf16.mxu1 %v7057_v29 }
 0xbc7   :  { %4443 = vmatpush3.bf16.msra.mxu0 %v4772_v32 }
 0xbc8   :  { %4444 = vmatprep.subr.bf16.mxu0 %v7656_v22 }
 0xbc9   :  { %3397 = vmatpush1.bf16.msra.mxu1 %v7060_v8 }
 0xbca   :  { %3398 = vmatprep.subr.bf16.mxu1 %v7063_v54 }
 0xbcd   :  { %3399 = vmatpush1.bf16.msra.mxu1 %v7066_v34 }
 0xbce   :  { %3400 = vmatprep.subr.bf16.mxu1 %v7069_v14 }
 0xbd1   :  { %3401 = vmatpush1.bf16.msra.mxu1 %v7073_v56 }
 0xbd2   :  { %3402 = vmatprep.subr.bf16.mxu1 %v7076_v50 }
 0xbd5   :  { %3403 = vmatpush1.bf16.msra.mxu1 %v7082_v28 }
 0xbd6   :  { %3404 = vmatprep.subr.bf16.mxu1 %v7085_v27 }
 0xbd9   :  { %3405 = vmatpush1.bf16.msra.mxu1 %v7088_v33  ;;  %v7867_v33 = vld [vmem:[#allocation64_spill] sm:$0xff] }
 0xbda   :  { %3406 = vmatprep.subr.bf16.mxu1 %v7091_v3 }
 0xbdd   :  { %3407 = vmatpush1.bf16.msra.mxu1 %v7094_v15 }
 0xbde   :  { %3408 = vmatprep.subr.bf16.mxu1 %v7097_v53  ;;  %v7868_v53 = vld [vmem:[#allocation66_spill] sm:$0xff] }
 0xbe1   :  { %3409 = vmatpush1.bf16.msra.mxu1 %v7100_v0 }
 0xbe2   :  { %3410 = vmatprep.subr.bf16.mxu1 %v7103_v5 }
 0xbe5   :  { %3411 = vmatpush1.bf16.msra.mxu1 %v7108_v40 }
 0xbe6   :  { %3412 = vmatprep.subr.bf16.mxu1 %v7112_v45  ;;  %v5280_v45 = vld [vmem:[#allocation3 + $0xc] ss:$16 sps:$4 sm:$0xff]  }
 0xbe9   :  { %3413 = vmatpush1.bf16.msra.mxu1 %v7116_v60 }
 0xbea   :  { %3414 = vmatprep.subr.bf16.mxu1 %v5266_v38 }
 0xbed   :  { %3415 = vmatpush1.bf16.msra.mxu1 %v5268_v44  ;;  %v4774_v44 = vld [vmem:[#allocation8 + $0x1b8] sm:$0xff]  }
 0xbee   :  { %3416 = vmatprep.subr.bf16.mxu1 %v5270_v46  ;;  %v4773_v46 = vld [vmem:[#allocation8 + $0x1b0] sm:$0xff]  }
 0xbef   :  { %4445 = vmatpush3.bf16.msra.mxu0 %v4773_v46 }
 0xbf0   :  { %4446 = vmatprep.subr.bf16.mxu0 %v7656_v22 }
 0xbf1   :  { %3417 = vmatpush1.bf16.msra.mxu1 %v5272_v26 }
 0xbf2   :  { %4472 = vmatprep.subr.bf16.mxu1 %v7656_v22 }
 0xbf3   :  { %4447 = vmatpush3.bf16.msra.mxu0 %v4774_v44  ;;  %v5281_v44 = vld [vmem:[#allocation3 + $0x8] ss:$16 sps:$4 sm:$0xff]  }
 0xbf4   :  { %3316 = vmatprep.subr.bf16.mxu0 %v5280_v45  ;;  %v5282_v45 = vld [vmem:[#allocation3 + $0x2c] ss:$16 sps:$4 sm:$0xff]  }
 0xc67   :  { %v3133_v40 = vpop.f32.mrb[80].mxu1 }
 0xc68   :  { %v3135_v5 = vpop.f32.mrb[81].mxu1  ;;  %v3134_v54 = vadd.f32 %v3133_v40, %v7681_v7  ;;  %v5283_v40 = vld [vmem:[#allocation3 + $0x28] ss:$16 sps:$4 sm:$0xff]  }
 0xc69   :  { %v3137_v28 = vpop.f32.mrb[82].mxu1  ;;  %v3136_v29 = vadd.f32 %v3135_v5, %v7680_v19  ;;  %v5285_v5 = vld [vmem:[#allocation3 + $0x48] ss:$16 sps:$4 sm:$0xff]  }
 0xc6a   :  { %v3138_v30 = vpop.f32.mrb[83].mxu1  ;;  %v5286_v28 = vld [vmem:[#allocation3 + $0x6c] ss:$16 sps:$4 sm:$0xff]  }
 0xc6b   :  { %v4163_v8 = vmul.f32 -1.442695, %v3136_v29  ;;  %v5287_v30 = vld [vmem:[#allocation3 + $0x68] ss:$16 sps:$4 sm:$0xff]  }
 0xc76   :  { %v3092_v37 = vpop.f32.mrb[60].mxu0 }
 0xc77   :  { %v3093_v47 = vadd.f32 %v3092_v37, %v7678_v59  ;;  %v3094_v20 = vpop.f32.mrb[61].mxu0  ;;  %v5288_v37 = vld [vmem:[#allocation3 + $0x8c] ss:$16 sps:$4 sm:$0xff]  }
 0xc78   :  { %v3095_v55 = vadd.f32 %v3094_v20, %v7679_v41  ;;  %v3096_v2 = vpop.f32.mrb[62].mxu0  ;;  %v5290_v20 = vld [vmem:[#allocation3 + $0xac] ss:$16 sps:$4 sm:$0xff]  }
 0xc79   :  { %v4161_v43 = vmul.f32 -1.442695, %v3093_v47  ;;  %v3097_v13 = vpop.f32.mrb[63].mxu0  ;;  %v5289_v47 = vld [vmem:[#allocation3 + $0x88] ss:$16 sps:$4 sm:$0xff]  }
 0xc7a   :  { %v4162_v48 = vmul.f32 -1.442695, %v3095_v55  ;;  %v5291_v55 = vld [vmem:[#allocation3 + $0xa8] ss:$16 sps:$4 sm:$0xff]  }
 0xc7b   :  { %5015 = vpow2.f32 %v4161_v43  ;;  %v5293_v2 = vld [vmem:[#allocation3 + $0xc8] ss:$16 sps:$4 sm:$0xff]   ;;  %v5294_v43 = vld [vmem:[#allocation3 + $0xec] ss:$16 sps:$4 sm:$0xff]  }
 0xc7c   :  { %5017 = vpow2.f32 %v4162_v48  ;;  %v5295_v13 = vld [vmem:[#allocation3 + $0xe8] ss:$16 sps:$4 sm:$0xff]  }
 0xc7d   :  { %5019 = vpow2.f32 %v4163_v8  ;;  %v7885_v48 = vld [vmem:[#allocation26_spill] sm:$0xff] }
 0xc7e   :  { %5021 = vtanh.f32 %v3134_v54 }
 0xc85   :  { %v5016_v34 = vpop.eup %5015 }
 0xc86   :  { %v5018_v14 = vpop.eup %5017  ;;  %v3143_v56 = vadd.f32 1.0, %v5016_v34 }
 0xc87   :  { %v3149_v50 = vadd.f32 1.0, %v5018_v14  ;;  %v3309_v27 = vpop.f32.mrb[84].mxu1  ;;  %v5020_v26 = vpop.eup %5019 }
 0xc88   :  { %5023 = vrcp.f32 %v3143_v56  ;;  %v7167_v3 = vadd.f32 %v3309_v27, %v7867_v33  ;;  %v3311_v15 = vpop.f32.mrb[85].mxu1  ;;  %v5022_v12 = vpop.eup %5021  ;;  %v3156_v31 = vadd.f32 1.0, %v5020_v26  ;;  %v7886_v27 = vld [vmem:[#allocation68_spill] sm:$0xff] }
 0xc89   :  { %5025 = vrcp.f32 %v3149_v50  ;;  %v7170_v0 = vadd.f32 %v3311_v15, %v7868_v53  ;;  %v3313_v60 = vpop.f32.mrb[86].mxu1  ;;  %v7887_v53 = vld [vmem:[#allocation69_spill] sm:$0xff] }
 0xc8a   :  { %v3314_v38 = vpop.f32.mrb[87].mxu1  ;;  %5027 = vrcp.f32 %v3156_v31  ;;  %v4172_v8 = vmul.f32 -1.442695, %v7167_v3 }
 0xc8b   :  { %v4173_v29 = vmul.f32 -1.442695, %v7170_v0 }
 0xc92   :  { %v5024_v9 = vpop.eup %5023 }
 0xc93   :  { %v5026_v36 = vpop.eup %5025  ;;  %v3160_v17 = vmul.f32 %v5024_v9, %v5022_v12 }
 0xc94   :  { %v3159_v57 = vmul.f32 %v5026_v36, %v7023_v16  ;;  %v5028_v49 = vpop.eup %5027  ;;  %v5284_v16 = vld [vmem:[#allocation3 + $0x4c] ss:$16 sps:$4 sm:$0xff]  }
 0xc95   :  { %v7888_v36 = vld [vmem:[#allocation27_spill] sm:$0xff] }
 0xc96   :  { %v7173_v10 = vadd.f32 %v3160_v17, %v3159_v57 }
 0xc98   :  { %5029 = vtanh.f32 %v7173_v10 }
 0xc99   :  { %5031 = vpow2.f32 %v4173_v29 }
 0xc9a   :  { %5033 = vpow2.f32 %v4172_v8 }
 0xca2   :  { %v5030_v25 = vpop.eup %5029 }
 0xca3   :  { %v3163_v32 = vmul.f32 %v5030_v25, %v5028_v49  ;;  %v5032_v54 = vpop.eup %5031 }
 0xca4   :  { %v5034_v34 = vpop.eup %5033  ;;  %v3370_v14 = vadd.f32 1.0, %v5032_v54 }
 0xca5   :  { %v3164_v46 = vpack.c.bf16 %v3163_v32, %v3163_v32  ;;  %v3364_v56 = vadd.f32 1.0, %v5034_v34 }
 0xca6   :  { %5035 = vrcp.f32 %v3370_v14 }
 0xca7   :  { %4449 = vmatmul.mubr.bf16.vlgmr.msra.gmra.mrb[24].mxu0 %v3164_v46  ;;  %3418 = vmatprep.mubr.bf16.mxu1 %v3164_v46  ;;  %5037 = vrcp.f32 %v3364_v56 }
 0xca8   :  { %3317 = vmatpush1.bf16.msra.mxu0 %v5281_v44  ;;  %3348 = vmatprep.mubr.bf16.mxu0 %v7609_v21  ;;  %v5292_v21 = vld [vmem:[#allocation3 + $0xcc] ss:$16 sps:$4 sm:$0xff]  }
 0xca9   :  { %3318 = vmatprep.subr.bf16.mxu0 %v5282_v45 }
 0xcac   :  { %3319 = vmatpush1.bf16.msra.mxu0 %v5283_v40  ;;  %v4775_v40 = vld [vmem:[#allocation8 + $0x1c0] sm:$0xff]  }
 0xcad   :  { %3320 = vmatprep.subr.bf16.mxu0 %v5284_v16  ;;  %v4776_v16 = vld [vmem:[#allocation8 + $0x1c8] sm:$0xff]  }
 0xcb0   :  { %3321 = vmatpush1.bf16.msra.mxu0 %v5285_v5  ;;  %v5036_v3 = vpop.eup %5035  ;;  %v4777_v5 = vld [vmem:[#allocation8 + $0x1d0] sm:$0xff]  }
 0xcb1   :  { %3322 = vmatprep.subr.bf16.mxu0 %v5286_v28  ;;  %v5038_v12 = vpop.eup %5037  ;;  %v3380_v31 = vmul.f32 %v5036_v3, %v7888_v36  ;;  %v4778_v28 = vld [vmem:[#allocation8 + $0x1d8] sm:$0xff]  }
 0xcb4   :  { %3323 = vmatpush1.bf16.msra.mxu0 %v5287_v30  ;;  %v4779_v30 = vld [vmem:[#allocation8 + $0x1e0] sm:$0xff]  }
 0xcb5   :  { %3324 = vmatprep.subr.bf16.mxu0 %v5288_v37  ;;  %v4780_v37 = vld [vmem:[#allocation8 + $0x1e8] sm:$0xff]  }
 0xcb8   :  { %3325 = vmatpush1.bf16.msra.mxu0 %v5289_v47  ;;  %v4781_v47 = vld [vmem:[#allocation8 + $0x1f0] sm:$0xff]  }
 0xcb9   :  { %3326 = vmatprep.subr.bf16.mxu0 %v5290_v20  ;;  %v4782_v20 = vld [vmem:[#allocation8 + $0x1f8] sm:$0xff]  }
 0xcbc   :  { %3327 = vmatpush1.bf16.msra.mxu0 %v5291_v55  ;;  %v4783_v55 = vld [vmem:[%s7334_s8] sm:$0xff]  }
 0xcbd   :  { %3328 = vmatprep.subr.bf16.mxu0 %v5292_v21  ;;  %v4784_v21 = vld [vmem:[%s7334_s8 + $0x8] sm:$0xff]  }
 0xcc0   :  { %3329 = vmatpush1.bf16.msra.mxu0 %v5293_v2  ;;  %v4785_v2 = vld [vmem:[%s7334_s8 + $0x10] sm:$0xff]  }
 0xcc1   :  { %3330 = vmatprep.subr.bf16.mxu0 %v5294_v43  ;;  %v4786_v43 = vld [vmem:[%s7334_s8 + $0x18] sm:$0xff]  }
 0xcc4   :  { %3331 = vmatpush1.bf16.msra.mxu0 %v5295_v13 }
 0xcc5   :  { %3427 = vmatprep.subr.bf16.mxu0 %v6913_v24  ;;  %v7869_v24 = vld [vmem:[#allocation55_spill] sm:$0xff] }
 0xcc7   :  { %3349 = vmatmul.mubr.bf16.vlgmr.msra.gmra.mrb[64].mxu0 %v7106_v42  ;;  %v7884_v42 = vld [vmem:[#allocation44_spill] sm:$0xff] }
 0xcc8   :  { %3459 = vmatprep.mubr.bf16.mxu0 %v3164_v46  ;;  %3428 = vmatpush1.bf16.msra.mxu0 %v6916_v61  ;;  %v7870_v61 = vld [vmem:[#allocation14_spill] sm:$0xff] }
 0xcc9   :  { %3429 = vmatprep.subr.bf16.mxu0 %v6919_v11  ;;  %v7871_v11 = vld [vmem:[#allocation15_spill] sm:$0xff] }
 0xccc   :  { %3430 = vmatpush1.bf16.msra.mxu0 %v6922_v51  ;;  %v7872_v51 = vld [vmem:[#allocation16_spill] sm:$0xff] }
 0xccd   :  { %3431 = vmatprep.subr.bf16.mxu0 %v6925_v39  ;;  %v7873_v39 = vld [vmem:[#allocation17_spill] sm:$0xff] }
 0xcd0   :  { %3432 = vmatpush1.bf16.msra.mxu0 %v6928_v35  ;;  %v7874_v35 = vld [vmem:[#allocation18_spill] sm:$0xff] }
 0xcd1   :  { %3433 = vmatprep.subr.bf16.mxu0 %v6931_v6  ;;  %v7875_v6 = vld [vmem:[#allocation57_spill] sm:$0xff] }
 0xcd4   :  { %3434 = vmatpush1.bf16.msra.mxu0 %v6934_v62  ;;  %v7876_v62 = vld [vmem:[#allocation59_spill] sm:$0xff] }
 0xcd5   :  { %3435 = vmatprep.subr.bf16.mxu0 %v6937_v52  ;;  %v7877_v52 = vld [vmem:[#allocation19_spill] sm:$0xff] }
 0xcd8   :  { %3436 = vmatpush1.bf16.msra.mxu0 %v6940_v1  ;;  %v7878_v1 = vld [vmem:[#allocation20_spill] sm:$0xff] }
 0xcd9   :  { %3437 = vmatprep.subr.bf16.mxu0 %v6943_v58  ;;  %v7879_v58 = vld [vmem:[#allocation21_spill] sm:$0xff] }
 0xcdc   :  { %3438 = vmatpush1.bf16.msra.mxu0 %v6946_v18  ;;  %v7880_v18 = vld [vmem:[#allocation22_spill] sm:$0xff] }
 0xcdd   :  { %3439 = vmatprep.subr.bf16.mxu0 %v6949_v23  ;;  %v7881_v23 = vld [vmem:[#allocation23_spill] sm:$0xff] }
 0xce0   :  { %3440 = vmatpush1.bf16.msra.mxu0 %v6952_v63  ;;  %v7882_v63 = vld [vmem:[#allocation24_spill] sm:$0xff] }
 0xce1   :  { %3441 = vmatprep.subr.bf16.mxu0 %v6955_v4  ;;  %v7883_v4 = vld [vmem:[#allocation25_spill] sm:$0xff] }
 0xce4   :  { %3442 = vmatpush1.bf16.msra.mxu0 %v7869_v24 }
 0xce5   :  { %3443 = vmatprep.subr.bf16.mxu0 %v7870_v61 }
 0xce8   :  { %3444 = vmatpush1.bf16.msra.mxu0 %v7871_v11 }
 0xce9   :  { %3445 = vmatprep.subr.bf16.mxu0 %v7872_v51 }
 0xcec   :  { %3446 = vmatpush1.bf16.msra.mxu0 %v7873_v39 }
 0xced   :  { %3447 = vmatprep.subr.bf16.mxu0 %v7874_v35 }
 0xcf0   :  { %3448 = vmatpush1.bf16.msra.mxu0 %v7875_v6 }
 0xcf1   :  { %3449 = vmatprep.subr.bf16.mxu0 %v7876_v62 }
 0xcf4   :  { %3450 = vmatpush1.bf16.msra.mxu0 %v7877_v52 }
 0xcf5   :  { %3451 = vmatprep.subr.bf16.mxu0 %v7878_v1 }
 0xcf8   :  { %3452 = vmatpush1.bf16.msra.mxu0 %v7879_v58 }
 0xcf9   :  { %3453 = vmatprep.subr.bf16.mxu0 %v7880_v18 }
 0xcfc   :  { %3454 = vmatpush1.bf16.msra.mxu0 %v7881_v23 }
 0xcfd   :  { %3455 = vmatprep.subr.bf16.mxu0 %v7882_v63 }
 0xd00   :  { %3456 = vmatpush1.bf16.msra.mxu0 %v7883_v4 }
 0xd01   :  { %3457 = vmatprep.subr.bf16.mxu0 %v7884_v42 }
 0xd04   :  { %3458 = vmatpush1.bf16.msra.mxu0 %v7885_v48 }
 0xd05   :  { %4452 = vmatprep.subr.bf16.mxu0 %v7656_v22 }
 0xd9a   :  { %v3350_v50 = vpop.f32.mrb[64].mxu0 }
 0xd9b   :  { %v3359_v33 = vadd.f32 %v3350_v50, %v7886_v27  ;;  %v3352_v15 = vpop.f32.mrb[65].mxu0 }
 0xd9c   :  { %v3360_v60 = vadd.f32 %v3352_v15, %v7887_v53  ;;  %v3354_v38 = vpop.f32.mrb[66].mxu0  ;;  %v4787_v15 = vld [vmem:[%s7334_s8 + $0x20] sm:$0xff]   ;;  %v4789_v53 = vld [vmem:[%s7334_s8 + $0x30] sm:$0xff]  }
 0xd9d   :  { %5039 = vtanh.f32 %v3359_v33  ;;  %v3355_v26 = vpop.f32.mrb[67].mxu0  ;;  %v3977_v38 = vld [vmem:[%s7333_s7] ss:$0 sm:$0xff] }
 0xd9e   :  { %v4174_v0 = vmul.f32 -1.442695, %v3360_v60  ;;  %v4790_v60 = vld [vmem:[%s7334_s8 + $0x38] sm:$0xff]  }
 0xda0   :  { %5041 = vpow2.f32 %v4174_v0 }
 0xda7   :  { %v5040_v9 = vpop.eup %5039 }
 0xda8   :  { %v3381_v17 = vmul.f32 %v5040_v9, %v5038_v12 }
 0xdaa   :  { %v5042_v57 = vpop.eup %5041  ;;  %v3382_v49 = vadd.f32 %v3381_v17, %v3380_v31  ;;  %v4791_v31 = vld [vmem:[%s7336_s10] sm:$0xff]  }
 0xdab   :  { %v3377_v25 = vadd.f32 1.0, %v5042_v57  ;;  %v4792_v57 = vld [vmem:[%s7336_s10 + $0x8] sm:$0xff]  }
 0xdac   :  { %5043 = vtanh.f32 %v3382_v49  ;;  %v4793_v49 = vld [vmem:[%s7336_s10 + $0x10] sm:$0xff]  }
 0xdad   :  { %5045 = vrcp.f32 %v3377_v25  ;;  %v4794_v25 = vld [vmem:[%s7336_s10 + $0x18] sm:$0xff]  }
 0xdb6   :  { %v5044_v32 = vpop.eup %5043 }
 0xdb7   :  { %v5046_v46 = vpop.eup %5045 }
 0xdb8   :  { %v3384_v44 = vmul.f32 %v5046_v46, %v5044_v32  ;;  %v4795_v32 = vld [vmem:[%s7336_s10 + $0x20] sm:$0xff]   ;;  %v4796_v46 = vld [vmem:[%s7336_s10 + $0x28] sm:$0xff]  }
 0xdba   :  { %v3385_v45 = vpack.c.bf16 %v3384_v44, %v3384_v44  ;;  %v4797_v44 = vld [vmem:[%s7336_s10 + $0x30] sm:$0xff]  }
 0xdbc   :  { %3419 = vmatmul.mubr.bf16.vlgmr.msra.gmra.mrb[88].mxu1 %v3385_v45  ;;  %3460 = vmatmul.mubr.bf16.vlgmr.msra.gmra.mrb[68].mxu0 %v3385_v45  ;;  %v4798_v45 = vld [vmem:[%s7336_s10 + $0x38] sm:$0xff]  }
 0xdbd   :  { %4468 = vmatprep.mubr.msk.bf16.mxu0 %vm5424_vm2, %v7656_v22  ;;  %4488 = vmatprep.mubr.msk.bf16.mxu1 %vm5424_vm2, %v7656_v22 }
 0xdbe   :  { %4453 = vmatpush3.bf16.msra.mxu0 %v4775_v40  ;;  %4473 = vmatpush3.bf16.msra.mxu1 %v4783_v55  ;;  %v4799_v40 = vld [vmem:[#allocation10] sm:$0xff]  }
 0xdbf   :  { %4454 = vmatprep.subr.bf16.mxu0 %v7656_v22  ;;  %4474 = vmatprep.subr.bf16.mxu1 %v7656_v22 }
 0xdc2   :  { %4455 = vmatpush3.bf16.msra.mxu0 %v4776_v16  ;;  %4475 = vmatpush3.bf16.msra.mxu1 %v4784_v21  ;;  %v4800_v16 = vld [vmem:[#allocation10 + $0x8] sm:$0xff]  }
 0xdc3   :  { %4456 = vmatprep.subr.bf16.mxu0 %v7656_v22  ;;  %4476 = vmatprep.subr.bf16.mxu1 %v7656_v22 }
 0xdc6   :  { %4457 = vmatpush3.bf16.msra.mxu0 %v4777_v5  ;;  %4477 = vmatpush3.bf16.msra.mxu1 %v4785_v2  ;;  %v4801_v5 = vld [vmem:[#allocation10 + $0x10] sm:$0xff]  }
 0xdc7   :  { %4458 = vmatprep.subr.bf16.mxu0 %v7656_v22  ;;  %4478 = vmatprep.subr.bf16.mxu1 %v7656_v22 }
 0xdca   :  { %4459 = vmatpush3.bf16.msra.mxu0 %v4778_v28  ;;  %4479 = vmatpush3.bf16.msra.mxu1 %v4786_v43  ;;  %v4802_v28 = vld [vmem:[#allocation10 + $0x18] sm:$0xff]  }
 0xdcb   :  { %4460 = vmatprep.subr.bf16.mxu0 %v7656_v22  ;;  %4480 = vmatprep.subr.bf16.mxu1 %v7656_v22 }
 0xdce   :  { %4461 = vmatpush3.bf16.msra.mxu0 %v4779_v30  ;;  %4481 = vmatpush3.bf16.msra.mxu1 %v4787_v15  ;;  %v4186_v30 = vld [vmem:[%s7335_s9] ss:$0 sm:$0xff] }
 0xdcf   :  { %4462 = vmatprep.subr.bf16.mxu0 %v7656_v22  ;;  %4482 = vmatprep.subr.bf16.mxu1 %v7656_v22 }
 0xdd2   :  { %4463 = vmatpush3.bf16.msra.mxu0 %v4780_v37 }
 0xdd3   :  { %4464 = vmatprep.subr.bf16.mxu0 %v7656_v22 }
 0xdd6   :  { %4465 = vmatpush3.bf16.msra.mxu0 %v4781_v47 }
 0xdd7   :  { %4466 = vmatprep.subr.bf16.mxu0 %v7656_v22 }
 0xdda   :  { %4467 = vmatpush3.bf16.msra.mxu0 %v4782_v20 }
 0xddb   :  { %4512 = vmatprep.subr.bf16.mxu0 %v7656_v22 }
 0xe8f   :  { %v3420_v13 = vpop.f32.mrb[88].mxu1  ;;  %v3461_v24 = vpop.f32.mrb[68].mxu0 }
 0xe90   :  { %v3421_v61 = vadd.f32 %v3420_v13, %v7678_v59  ;;  %v3422_v11 = vpop.f32.mrb[89].mxu1  ;;  %v3463_v51 = vpop.f32.mrb[69].mxu0  ;;  %v3462_v63 = vadd.f32 %v3461_v24, %v7681_v7  ;;  %v4803_v13 = vld [vmem:[#allocation10 + $0x20] sm:$0xff]   ;;  %v4804_v24 = vld [vmem:[#allocation10 + $0x28] sm:$0xff]  }
 0xe91   :  { %v3423_v39 = vadd.f32 %v3422_v11, %v7679_v41  ;;  %v3424_v35 = vpop.f32.mrb[90].mxu1  ;;  %v3465_v6 = vpop.f32.mrb[70].mxu0  ;;  %v3464_v18 = vadd.f32 %v3463_v51, %v7680_v19  ;;  %v4806_v11 = vld [vmem:[#allocation10 + $0x38] sm:$0xff]  }
 0xe92   :  { %v4175_v62 = vmul.f32 -1.442695, %v3421_v61  ;;  %v3425_v52 = vpop.f32.mrb[91].mxu1  ;;  %v3466_v1 = vpop.f32.mrb[71].mxu0  ;;  %v4805_v61 = vld [vmem:[#allocation10 + $0x30] sm:$0xff]  }
 0xe93   :  { %v4176_v58 = vmul.f32 -1.442695, %v3423_v39  ;;  %v4177_v23 = vmul.f32 -1.442695, %v3464_v18  ;;  %v4195_v51 = vld [vmem:[%s7337_s11] ss:$0 sm:$0xff]  ;;  %v7889_v18 = vlaneseq }
 0xe94   :  { %5047 = vpow2.f32 %v4175_v62 }
 0xe95   :  { %5049 = vpow2.f32 %v4176_v58 }
 0xe96   :  { %5051 = vpow2.f32 %v4177_v23  ;;  %v3939_v23 = vand.u32 127, %v7889_v18 }
 0xe97   :  { %5053 = vtanh.f32 %v3462_v63 }
 0xe98   :  { %vm3940_vm3 = vcmp.lt.s32.totalorder %v3939_v23, 10  ;;  %vm3941_vm4 = vcmp.ge.s32.totalorder %v3939_v23, 70  ;;  %vm3942_vm5 = vcmp.lt.s32.totalorder %v3939_v23, 100 }
 0xe99   :  { %vm3943_vm6 = vmand %vm3941_vm4, %vm3942_vm5 }
 0xe9e   :  { %v5048_v4 = vpop.eup %5047 }
 0xe9f   :  { %v5050_v42 = vpop.eup %5049  ;;  %v3471_v59 = vadd.f32 1.0, %v5048_v4 }
 0xea0   :  { %v3477_v48 = vadd.f32 1.0, %v5050_v42  ;;  %v5052_v41 = vpop.eup %5051 }
 0xea1   :  { %5055 = vrcp.f32 %v3471_v59  ;;  %v5054_v29 = vpop.eup %5053  ;;  %v3484_v14 = vadd.f32 1.0, %v5052_v41 }
 0xea2   :  { %5057 = vrcp.f32 %v3477_v48 }
 0xea3   :  { %5059 = vrcp.f32 %v3484_v14 }
 0xeab   :  { %v5056_v8 = vpop.eup %5055 }
 0xeac   :  { %v5058_v54 = vpop.eup %5057  ;;  %v3488_v34 = vmul.f32 %v5056_v8, %v5054_v29 }
 0xead   :  { %v3487_v56 = vmul.f32 %v5058_v54, %v7173_v10  ;;  %v5060_v7 = vpop.eup %5059  ;;  %v4788_v10 = vld [vmem:[%s7334_s8 + $0x28] sm:$0xff]  }
 0xeae   :  { %4483 = vmatpush3.bf16.msra.mxu1 %v4788_v10 }
 0xeaf   :  { %v3489_v19 = vadd.f32 %v3488_v34, %v3487_v56  ;;  %4484 = vmatprep.subr.bf16.mxu1 %v7656_v22 }
 0xeb1   :  { %5061 = vtanh.f32 %v3489_v19 }
 0xeb2   :  { %4485 = vmatpush3.bf16.msra.mxu1 %v4789_v53 }
 0xeb3   :  { %4486 = vmatprep.subr.bf16.mxu1 %v7656_v22 }
 0xeb6   :  { %4487 = vmatpush3.bf16.msra.mxu1 %v4790_v60 }
 0xeb7   :  { %4492 = vmatprep.subr.bf16.mxu1 %v7656_v22 }
 0xebb   :  { %v5062_v50 = vpop.eup %5061 }
 0xebc   :  { %v3491_v27 = vmul.f32 %v5062_v50, %v5060_v7 }
 0xebe   :  { %v3492_v33 = vpack.c.bf16 %v3491_v27, %v3491_v27 }
 0xec0   :  { %4469 = vmatmul.mubr.bf16.vlgmr.msra.gmra.mrb[24].mxu0 %v3492_v33 }
 0xec1   :  { %4528 = vmatprep.mubr.msk.bf16.mxu0 %vm5424_vm2, %v7656_v22  ;;  %4513 = vmatpush3.bf16.msra.mxu0 %v4799_v40 }
 0xec2   :  { %4514 = vmatprep.subr.bf16.mxu0 %v7656_v22 }
 0xec5   :  { %4515 = vmatpush3.bf16.msra.mxu0 %v4800_v16 }
 0xec6   :  { %4516 = vmatprep.subr.bf16.mxu0 %v7656_v22 }
 0xec9   :  { %4517 = vmatpush3.bf16.msra.mxu0 %v4801_v5 }
 0xeca   :  { %4518 = vmatprep.subr.bf16.mxu0 %v7656_v22 }
 0xecd   :  { %4519 = vmatpush3.bf16.msra.mxu0 %v4802_v28 }
 0xece   :  { %4520 = vmatprep.subr.bf16.mxu0 %v7656_v22 }
 0xed1   :  { %4521 = vmatpush3.bf16.msra.mxu0 %v4803_v13 }
 0xed2   :  { %4522 = vmatprep.subr.bf16.mxu0 %v7656_v22 }
 0xed5   :  { %4523 = vmatpush3.bf16.msra.mxu0 %v4804_v24 }
 0xed6   :  { %4524 = vmatprep.subr.bf16.mxu0 %v7656_v22 }
 0xed9   :  { %4525 = vmatpush3.bf16.msra.mxu0 %v4805_v61 }
 0xeda   :  { %4526 = vmatprep.subr.bf16.mxu0 %v7656_v22 }
 0xedd   :  { %4527 = vmatpush3.bf16.msra.mxu0 %v4806_v11 }
 0xf93   :  { %v3592_v26 = vpop.f32.mrb[24].mxu0 }
 0xf94   :  { %v4532_v0 = vadd.f32 %v3977_v38, %v3592_v26  ;;  %v4470_v3 = vpop.f32.mrb[25].mxu0 }
 0xf95   :  { %v3595_v12 = vpop.f32.mrb[26].mxu0 }
 0xf96   :  { %5063 = vtanh.f32 %v4532_v0  ;;  %v4471_v9 = vpop.f32.mrb[27].mxu0 }
 0xfa0   :  { %v5064_v36 = vpop.eup %5063 }
 0xfa1   :  { %v3600_v17 = vpack.c.bf16 %v5064_v36, %v5064_v36 }
 0xfa3   :  { %4489 = vmatmul.mubr.bf16.vlgmr.msra.gmra.mrb[92].mxu1 %v3600_v17 }
 0xfa4   :  { %4493 = vmatpush3.bf16.msra.mxu1 %v4791_v31  ;;  %4508 = vmatprep.mubr.msk.bf16.mxu1 %vm5424_vm2, %v7656_v22 }
 0xfa5   :  { %4494 = vmatprep.subr.bf16.mxu1 %v7656_v22 }
 0xfa8   :  { %4495 = vmatpush3.bf16.msra.mxu1 %v4792_v57 }
 0xfa9   :  { %4496 = vmatprep.subr.bf16.mxu1 %v7656_v22 }
 0xfac   :  { %4497 = vmatpush3.bf16.msra.mxu1 %v4793_v49 }
 0xfad   :  { %4498 = vmatprep.subr.bf16.mxu1 %v7656_v22 }
 0xfb0   :  { %4499 = vmatpush3.bf16.msra.mxu1 %v4794_v25 }
 0xfb1   :  { %4500 = vmatprep.subr.bf16.mxu1 %v7656_v22 }
 0xfb4   :  { %4501 = vmatpush3.bf16.msra.mxu1 %v4795_v32 }
 0xfb5   :  { %4502 = vmatprep.subr.bf16.mxu1 %v7656_v22 }
 0xfb8   :  { %4503 = vmatpush3.bf16.msra.mxu1 %v4796_v46 }
 0xfb9   :  { %4504 = vmatprep.subr.bf16.mxu1 %v7656_v22 }
 0xfbc   :  { %4505 = vmatpush3.bf16.msra.mxu1 %v4797_v44 }
 0xfbd   :  { %4506 = vmatprep.subr.bf16.mxu1 %v7656_v22  ;;  %v4204_v22 = vld [vmem:[%s7339_s13] ss:$0 sm:$0xff] }
 0xfc0   :  { %4507 = vmatpush3.bf16.msra.mxu1 %v4798_v45 }
0x1076   :  { %v3706_v37 = vpop.f32.mrb[92].mxu1 }
0x1077   :  { %v3707_v47 = vadd.f32 %v4186_v30, %v3706_v37  ;;  %v4490_v20 = vpop.f32.mrb[93].mxu1 }
0x1078   :  { %v3709_v55 = vpop.f32.mrb[94].mxu1 }
0x1079   :  { %5065 = vtanh.f32 %v3707_v47  ;;  %v4491_v21 = vpop.f32.mrb[95].mxu1 }
0x1083   :  { %v5066_v2 = vpop.eup %5065 }
0x1084   :  { %v3713_v43 = vpack.c.bf16 %v5066_v2, %v5066_v2 }
0x1086   :  { %4509 = vmatmul.mubr.bf16.vlgmr.msra.gmra.mrb[96].mxu1 %v3713_v43 }
0x1159   :  { %v3819_v39 = vpop.f32.mrb[96].mxu1 }
0x115a   :  { %v3820_v35 = vadd.f32 %v4195_v51, %v3819_v39  ;;  %v4510_v6 = vpop.f32.mrb[97].mxu1 }
0x115b   :  { %v3822_v62 = vpop.f32.mrb[98].mxu1 }
0x115c   :  { %5067 = vtanh.f32 %v3820_v35  ;;  %v4511_v52 = vpop.f32.mrb[99].mxu1 }
0x1166   :  { %v5068_v1 = vpop.eup %5067 }
0x1167   :  { %v3826_v58 = vpack.c.bf16 %v5068_v1, %v5068_v1 }
0x1169   :  { %4529 = vmatmul.mubr.bf16.vlgmr.msra.gmra.mrb[72].mxu0 %v3826_v58 }
0x123c   :  { %v3932_v63 = vpop.f32.mrb[72].mxu0 }
0x123d   :  { %v3933_v4 = vadd.f32 %v4204_v22, %v3932_v63  ;;  %v4530_v42 = vpop.f32.mrb[73].mxu0 }
0x123e   :  { %v3935_v59 = vpop.f32.mrb[74].mxu0 }
0x123f   :  { %v4531_v48 = vpop.f32.mrb[75].mxu0  ;;  %v3944_v41 = vsel %vm3940_vm3, %v3933_v4, -inf  ;;  %v3955_v56 = vmul.f32 1.442695, %v3933_v4 }
0x1240   :  { %3945 = vmax.xlane.f32.xlu0 %v3944_v41 }
0x12cd   :  { %v3946_v29 = vpop.xlane.xlu0 %3945 }
0x12ce   :  { %v3947_v8 = vsub.f32 %v3933_v4, %v3946_v29 }
0x12d0   :  { %v3948_v54 = vmul.f32 1.442695, %v3947_v8 }
0x12d2   :  { %5069 = vpow2.f32 %v3948_v54 }
0x12d3   :  { %5071 = vpow2.f32 %v3955_v56 }
0x12dc   :  { %v5070_v34 = vpop.eup %5069 }
0x12dd   :  { %v3950_v14 = vsel %vm3940_vm3, %v5070_v34, 0.0  ;;  %v5072_v7 = vpop.eup %5071 }
0x12de   :  { %3951 = vadd.xlane.f32.xlu0 %v3950_v14  ;;  %v3957_v33 = vsel %vm3943_vm6, %v5072_v7, %v3933_v4 }
0x136b   :  { %v3952_v19 = vpop.xlane.xlu0 %3951 }
0x136c   :  { %5073 = vrcp.f32 %v3952_v19 }
0x1376   :  { %v5074_v50 = vpop.eup %5073 }
0x1377   :  { %v3954_v27 = vmul.f32 %v5074_v50, %v3950_v14 }
0x1379   :  { %v3958_v15 = vsel %vm3940_vm3, %v3954_v27, %v3957_v33 }
0x137a   :  { %3959 = vst [vmem:[%s7340_s14] sm:$0xff] %v3958_v15 }
0x137b   :  { %3964 = vsyncpa [#allocation4], 1 }
0x137c   :  { %3965 = vsyncpa [#allocation6], 1 }
0x137d   :  { %3966 = vsyncpa [#allocation9], 1 }

</bundles_post_ra>
